<compile_context>
chip_gen: v6e
topology: v6e:2x2x1
jax: 0.10.0
libtpu: 0.0.40
codegen_flags: <defaults>
</compile_context>

<pallas_src>
import functools

import jax
import jax.numpy as jnp
from jax.experimental import pallas as pl
from jax.experimental.pallas import tpu as pltpu

# MXU operand / weight-storage dtype (accumulation and element-wise math stay f32).
MXU_DTYPE = jnp.bfloat16


# ----------------------------- packing helpers -----------------------------

def _rup8(n):
    return -(-n // 8) * 8


def _offs(*rows):
    """Sublane-aligned start offsets of consecutive row blocks (each padded to 8 rows)."""
    out, o = [], 0
    for r in rows:
        out.append(o)
        o += _rup8(r)
    return out


def _pack_rows(blocks):
    """Concat along -2, padding each block's rows to a multiple of 8 so every sub-block
    starts at a sublane-aligned offset (all in-kernel slices become zero-cost views)."""
    padded = []
    for b in blocks:
        pad = _rup8(b.shape[-2]) - b.shape[-2]
        if pad:
            b = jnp.pad(b, [(0, 0)] * (b.ndim - 2) + [(0, pad), (0, 0)])
        padded.append(b)
    return jnp.concatenate(padded, axis=-2)


# ----------------------------- in-kernel helpers -----------------------------

def _mm(a, b):
    """MXU matmul: bf16 operands, f32 accumulation (weights are already bf16)."""
    return jnp.dot(a.astype(MXU_DTYPE), b.astype(MXU_DTYPE),
                   preferred_element_type=jnp.float32)


def _layer_norm(x, g, b, eps=1e-5):
    mu = jnp.mean(x, axis=-1, keepdims=True)
    xc = x - mu
    var = jnp.mean(xc * xc, axis=-1, keepdims=True)
    return xc * jax.lax.rsqrt(var + eps) * g + b


def _softmax_approx(x):          # internal attention softmax (EUP reciprocal, ~free slot)
    x = x - jnp.max(x, axis=-1, keepdims=True)
    e = jnp.exp(x)
    return e * pl.reciprocal(jnp.sum(e, axis=-1, keepdims=True), approx=True)


def _softmax_exact(x):           # returned probabilities: exact division
    x = x - jnp.max(x, axis=-1, keepdims=True)
    e = jnp.exp(x)
    return e / jnp.sum(e, axis=-1, keepdims=True)


def _masked_lstm(xp, length, pack, *, T, F, Hh):
    """Length-masked LSTM (zero init); returns the final hidden state.

    xp:     (R, T*F) time-packed rows (lane-dense; no per-step (T*N, F) pad blowup)
    length: (R, 1) float lengths; step t is valid while t < length  (length 0 -> h stays 0)
    pack:   sublane-aligned rows [W_ih; W_hh; b_ih+b_hh], bf16
    """
    o_wih, o_whh, o_b = _offs(F, Hh, 1)
    wih = pack[o_wih:o_wih + F]
    whh = pack[o_whh:o_whh + Hh]
    b = pack[o_b:o_b + 1]
    R = xp.shape[0]
    h = jnp.zeros((R, Hh), jnp.float32)
    c = jnp.zeros((R, Hh), jnp.float32)
    for t in range(T):                                       # static unroll, T = 3-4
        g = _mm(xp[:, t * F:(t + 1) * F], wih) + _mm(h, whh) + b
        i = jax.nn.sigmoid(g[:, 0 * Hh:1 * Hh])
        f = jax.nn.sigmoid(g[:, 1 * Hh:2 * Hh])
        gg = jnp.tanh(g[:, 2 * Hh:3 * Hh])
        o = jax.nn.sigmoid(g[:, 3 * Hh:4 * Hh])
        c_new = f * c + i * gg
        h_new = o * jnp.tanh(c_new)
        m = (length > float(t)).astype(jnp.float32)          # (R, 1) mask built in-kernel
        h = m * h_new + (1.0 - m) * h
        c = m * c_new + (1.0 - m) * c
    return h


# ----------------------------- kernels -----------------------------

def _shared_kernel(nr_ref, xg_ref, glen_ref, req_ref, full_ref, er_ref, egw_ref,
                   *, Tg, F, Hh, dim_req):
    # RequireEmbedding: relu(conv1d_require(k=1)) as a row-wise linear.
    rp = req_ref[...]
    ob = _offs(dim_req, 1)[1]
    er_ref[...] = jnp.maximum(_mm(nr_ref[...], rp[0:dim_req]) + rp[ob:ob + 1], 0.0)
    # FullEmbedding: length-masked LSTM over the global windows.
    egw_ref[...] = _masked_lstm(xg_ref[...], glen_ref[...], full_ref[...], T=Tg, F=F, Hh=Hh)


def _agent_kernel(er_ref, egw_ref, xl_ref, llen_ref, state_ref, seq_ref, mask_ref,
                  emb_lstm_ref, emb_post_ref, qkv_ref, wo_ref, ff_ref,
                  dec_fc_ref, dec_lstm_ref, dec_att_ref,
                  enc_ref, alpha_ref, ht_ref, ct_ref,
                  *, bsz, task, nh, Tl, F, H):
    Hh = H // 2
    dh = H // nh
    R = bsz * task                                            # rows in this tile

    # ---------------- AgentEmbedding ----------------
    bw = _masked_lstm(xl_ref[...], llen_ref[...], emb_lstm_ref[...], T=Tl, F=F, Hh=Hh)
    post = emb_post_ref[...]
    o_pb, o_pg, o_pbt = _offs(H, 1, 1, 1)[1:]
    # cat(er, egw + bw) @ W  ==  er @ W[:Hh] + (egw + bw) @ W[Hh:]  (no lane concat)
    bwr = (_mm(er_ref[...], post[0:Hh]) + _mm(egw_ref[...] + bw, post[Hh:H])
           + post[o_pb:o_pb + 1])
    bwr = _layer_norm(bwr, post[o_pg:o_pg + 1], post[o_pbt:o_pbt + 1])

    # ---------------- AgentEncoder (dropout = eval-mode identity) ----------------
    qkvp = qkv_ref[...]
    o_qb = _offs(H, 1)[1]
    qkv = _mm(bwr, qkvp[0:H]) + qkvp[o_qb:o_qb + 1]           # fused QKV, one matmul
    q3 = qkv[:, 0:H].reshape(bsz, task, H)
    k3 = qkv[:, H:2 * H].reshape(bsz, task, H)
    v3 = qkv[:, 2 * H:3 * H].reshape(bsz, task, H)
    wop = wo_ref[...]
    o_wob = _offs(H, 1)[1]
    scale = 1.0 / float(dh) ** 0.5
    attn = jnp.zeros((R, H), jnp.float32)
    for head in range(nh):                                    # static unroll; Wo folded in,
        lo, hi = head * dh, (head + 1) * dh                   # so no per-head concat
        qh = q3[:, :, lo:hi].astype(MXU_DTYPE)
        kh = k3[:, :, lo:hi].astype(MXU_DTYPE)
        vh = v3[:, :, lo:hi].astype(MXU_DTYPE)
        s = jnp.einsum("bqd,bkd->bqk", qh, kh,
                       preferred_element_type=jnp.float32) * scale
        p = _softmax_approx(s)
        ctx = jnp.einsum("bqk,bkd->bqd", p.astype(MXU_DTYPE), vh,
                         preferred_element_type=jnp.float32)
        attn = attn + _mm(ctx.reshape(R, dh), wop[lo:hi])
    attn = attn + wop[o_wob:o_wob + 1]

    ffp = ff_ref[...]
    o_fb1, o_fw2, o_fb2, o_fg, o_fbt = _offs(H, 1, H, 1, 1, 1)[1:]
    g_ln, b_ln = ffp[o_fg:o_fg + 1], ffp[o_fbt:o_fbt + 1]      # shared LN (applied twice)
    x1 = _layer_norm(bwr + attn, g_ln, b_ln)                   # residual fused
    y = jnp.maximum(_mm(x1, ffp[0:H]) + ffp[o_fb1:o_fb1 + 1], 0.0)   # conv1 + relu
    y = _mm(y, ffp[o_fw2:o_fw2 + H]) + ffp[o_fb2:o_fb2 + 1]          # conv2
    enc = _layer_norm(x1 + y, g_ln, b_ln)                      # residual fused
    enc_ref[...] = enc

    # ---------------- AgentDecoder: first pointer step (h0 = c0 = 0) ----------------
    fcp = dec_fc_ref[...]
    o_db1, o_dw2, o_db2 = _offs(6, 1, 2 * H, 1)[1:]
    xs = _mm(state_ref[...], fcp[0:6]) + fcp[o_db1:o_db1 + 1]  # linear1
    # relu(cat(xs, xe) @ W2) == relu(xs @ W2[:H] + xe @ W2[H:] + b2)  (no concat)
    xse = jnp.maximum(_mm(xs, fcp[o_dw2:o_dw2 + H])
                      + _mm(seq_ref[...], fcp[o_dw2 + H:o_dw2 + 2 * H])
                      + fcp[o_db2:o_db2 + 1], 0.0)

    dl = dec_lstm_ref[...]
    o_lb = _offs(H, H, 1)[2]
    # h0 = c0 = 0 on the first step: the W_hh matmul, forget gate and f*c0 term are dead.
    g = _mm(xse, dl[0:H]) + dl[o_lb:o_lb + 1]
    i = jax.nn.sigmoid(g[:, 0:H])
    gg = jnp.tanh(g[:, 2 * H:3 * H])
    o = jax.nn.sigmoid(g[:, 3 * H:4 * H])
    ct = i * gg
    ht = o * jnp.tanh(ct)
    ht_ref[...] = ht
    ct_ref[...] = ct

    ap = dec_att_ref[...]
    o_ab1, o_aw2, o_ab2, o_v = _offs(H, 1, H, 1, 1)[1:]
    inp = _mm(ht, ap[0:H]) + ap[o_ab1:o_ab1 + 1]               # input_linear
    ctx = (_mm(enc, ap[o_aw2:o_aw2 + H]) + ap[o_ab2:o_ab2 + 1]).reshape(bsz, task, H)
    V = ap[o_v:o_v + 1].reshape(1, 1, H)
    u = jnp.tanh(inp.reshape(bsz, 1, H) + ctx)                 # (bsz, task, H)
    att = jnp.sum(u * V, axis=-1)                              # bmm(V, tanh(.))
    # -1e30 instead of -inf: avoids NaN when every task of a batch row is masked.
    att = jnp.where(mask_ref[...] > 0.5, -1e30, att)
    alpha_ref[...] = _softmax_exact(att)                       # exact: returned probability


# ----------------------------- parameters -----------------------------

def init_params(key, dim_require, dim_vtw, dim_hidden, num_heads, num_agent):
    """Weights packed as sublane-aligned [W; b; ...] row blocks, stored in bf16;
    per-agent packs stacked on a leading num_agent axis."""
    del num_heads  # only affects how H is split inside the kernel
    H, Hh, F, A = dim_hidden, dim_hidden // 2, dim_vtw, num_agent
    counter = [0]

    def u(shape, scale=0.1):
        counter[0] += 1
        return jax.random.uniform(jax.random.fold_in(key, counter[0]), shape,
                                  jnp.float32, -scale, scale)

    def lin(prefix, fi, fo):         # [W (fi,fo); b (1,fo)]
        return [u(prefix + (fi, fo)), u(prefix + (1, fo))]

    def ln(prefix, d):               # [gamma; beta]
        return [jnp.ones(prefix + (1, d), jnp.float32),
                jnp.zeros(prefix + (1, d), jnp.float32)]

    def lstm(prefix, fi, ho):        # [W_ih; W_hh; b_ih + b_hh]
        return [u(prefix + (fi, 4 * ho)), u(prefix + (ho, 4 * ho)), u(prefix + (1, 4 * ho))]

    def pack(blocks):
        return _pack_rows(blocks).astype(MXU_DTYPE)

    a = (A,)
    return {
        # shared
        "req_pack": pack(lin((), dim_require, Hh)),
        "full_pack": pack(lstm((), F, Hh)),
        # per-agent, stacked on leading num_agent axis
        "emb_lstm": pack(lstm(a, F, Hh)),
        "emb_post": pack(lin(a, H, H) + ln(a, H)),
        "enc_qkv": pack(lin(a, H, 3 * H)),
        "enc_wo": pack(lin(a, H, H)),
        "enc_ff": pack(lin(a, H, H) + lin(a, H, H) + ln(a, H)),
        "dec_fc": pack(lin(a, 6, H) + lin(a, 2 * H, H)),
        "dec_lstm": pack(lstm(a, H, H)),      # W_hh kept for module fidelity (unused step 0)
        "dec_att": pack(lin(a, H, H) + lin(a, H, H)
                        + [jax.random.uniform(jax.random.fold_in(key, 10_000),
                                              a + (1, H), jnp.float32, -1.0, 1.0)]),
    }


# ----------------------------- model forward -----------------------------

def model_forward(params, nr, ngw, dn, nlw, norm_state, seq_input, sat_masks, *, num_heads):
    bs, task_num, dim_req = nr.shape
    num_sat = nlw.shape[2]
    Tg, Tl, F = ngw.shape[2], nlw.shape[3], ngw.shape[3]
    H = params["enc_wo"].shape[-1]
    Hh = H // 2
    N = bs * task_num

    # ---------- shared: RequireEmbedding + FullEmbedding (row-tiled pallas_call) ----------
    nr2 = nr.reshape(N, dim_req)
    xg = ngw.reshape(N, Tg * F)                                   # time-packed, lane-dense
    glen = dn[:, :, -1].reshape(N, 1).astype(jnp.float32)         # lengths, mask built in-kernel

    rt = N if N <= 512 else 512                                   # row tile (full N at demo)
    er, egw = pl.pallas_call(
        functools.partial(_shared_kernel, Tg=Tg, F=F, Hh=Hh, dim_req=dim_req),
        grid=(pl.cdiv(N, rt),),
        in_specs=[
            pl.BlockSpec((rt, dim_req), lambda r: (r, 0)),
            pl.BlockSpec((rt, Tg * F), lambda r: (r, 0)),
            pl.BlockSpec((rt, 1), lambda r: (r, 0)),
            pl.BlockSpec(params["req_pack"].shape, lambda r: (0, 0)),
            pl.BlockSpec(params["full_pack"].shape, lambda r: (0, 0)),
        ],
        out_specs=(pl.BlockSpec((rt, Hh), lambda r: (r, 0)),
                   pl.BlockSpec((rt, Hh), lambda r: (r, 0))),
        out_shape=(jax.ShapeDtypeStruct((N, Hh), jnp.float32),
                   jax.ShapeDtypeStruct((N, Hh), jnp.float32)),
        compiler_params=pltpu.CompilerParams(
            dimension_semantics=("parallel",),
            vmem_limit_bytes=48 * 1024 * 1024),
    )(nr2, xg, glen, params["req_pack"], params["full_pack"])

    # ---------- per-satellite fused kernel (grid = (sat, batch-row tiles)) ----------
    # One-time host relayout to the lane-dense (sat, N, Tl*F) layout; production data prep
    # should emit this layout directly to avoid the extra HBM round trip.
    xl = nlw.transpose(2, 0, 1, 3, 4).reshape(num_sat, N, Tl * F)
    llen = dn[:, :, :num_sat].transpose(2, 0, 1).reshape(num_sat, N, 1).astype(jnp.float32)

    # batch-row tile: full bs at small shapes; a multiple of 8 when tiling big batches.
    bs_tile = bs if bs <= 8 else 8
    Nt = bs_tile * task_num

    def sat_rows(*dims):       # per-satellite block, tiled over batch rows
        nz = len(dims) - 1
        return pl.BlockSpec((None,) + dims, lambda s, r, _nz=nz: (s, r) + (0,) * _nz)

    def shared_rows(*dims):    # shared across satellites, tiled over batch rows
        nz = len(dims) - 1
        return pl.BlockSpec(dims, lambda s, r, _nz=nz: (r,) + (0,) * _nz)

    def sat_pack(p):           # per-satellite weight pack, constant across row tiles
        return pl.BlockSpec((None,) + p.shape[1:], lambda s, r: (s, 0, 0))

    enc, alphas, hts, cts = pl.pallas_call(
        functools.partial(_agent_kernel, bsz=bs_tile, task=task_num, nh=num_heads,
                          Tl=Tl, F=F, H=H),
        grid=(num_sat, pl.cdiv(bs, bs_tile)),        # row axis innermost: weight DMA elided
        in_specs=[
            shared_rows(Nt, Hh),                     # er
            shared_rows(Nt, Hh),                     # egw
            sat_rows(Nt, Tl * F),                    # local windows (time-packed)
            sat_rows(Nt, 1),                         # local lengths
            shared_rows(bs_tile, 6),                 # norm_state
            shared_rows(bs_tile, H),                 # seq_input
            sat_rows(bs_tile, task_num),             # sat_task_mask
            sat_pack(params["emb_lstm"]),
            sat_pack(params["emb_post"]),
            sat_pack(params["enc_qkv"]),
            sat_pack(params["enc_wo"]),
            sat_pack(params["enc_ff"]),
            sat_pack(params["dec_fc"]),
            sat_pack(params["dec_lstm"]),
            sat_pack(params["dec_att"]),
        ],
        out_specs=(
            sat_rows(Nt, H),                         # encodings
            sat_rows(bs_tile, task_num),             # alpha
            sat_rows(bs_tile, H),                    # h_t
            sat_rows(bs_tile, H),                    # c_t
        ),
        out_shape=(
            jax.ShapeDtypeStruct((num_sat, N, H), jnp.float32),
            jax.ShapeDtypeStruct((num_sat, bs, task_num), jnp.float32),
            jax.ShapeDtypeStruct((num_sat, bs, H), jnp.float32),
            jax.ShapeDtypeStruct((num_sat, bs, H), jnp.float32),
        ),
        compiler_params=pltpu.CompilerParams(
            dimension_semantics=("parallel", "parallel"),
            # 48 MiB is safe under v7x's 64 MiB physical VMEM; raise toward 96 MiB on v5e/v6e.
            vmem_limit_bytes=48 * 1024 * 1024),
    )(er, egw, xl, llen, norm_state, seq_input, sat_masks,
      params["emb_lstm"], params["emb_post"], params["enc_qkv"], params["enc_wo"],
      params["enc_ff"], params["dec_fc"], params["dec_lstm"], params["dec_att"])

    encodings = enc.reshape(num_sat, bs, task_num, H)
    # TODO(synk): the scheduling while-loop / SingleAgent_StepScheduler / result_evaluation
    # (host-side dynamic control flow with an undefined external helper) is not reproducible
    # as a TPU kernel; batch_prob is the first decoder-step distribution of satellite 0.
    batch_prob = alphas[0]
    return batch_prob, alphas, encodings, hts, cts


# ----------------------------- demo -----------------------------

if __name__ == "__main__":
    key = jax.random.PRNGKey(0)
    bs, task_num, num_sat = 2, 8, 2
    dim_require, dim_vtw, dim_hidden, num_heads = 4, 5, 32, 4
    Tg, Tl = 4, 3

    kp, kd = jax.random.split(key)
    params = init_params(kp, dim_require, dim_vtw, dim_hidden, num_heads, num_sat)

    ks = jax.random.split(kd, 5)
    nr = jax.random.uniform(ks[0], (bs, task_num, dim_require), jnp.float32)
    ngw = jax.random.uniform(ks[1], (bs, task_num, Tg, dim_vtw), jnp.float32)
    nlw = jax.random.uniform(ks[2], (bs, task_num, num_sat, Tl, dim_vtw), jnp.float32)
    dn_sat = jax.random.randint(ks[3], (bs, task_num, num_sat), 0, Tl + 1)
    dn_tot = jax.random.randint(ks[4], (bs, task_num, 1), 1, Tg + 1)
    dn = jnp.concatenate([dn_sat, dn_tot], axis=-1).astype(jnp.int32)

    # initial normalized satellite state (orbit/period/pitch/roll/memory/energy)
    norm_state = jnp.tile(jnp.array([[1.0 / 15.0, 0.0, 0.0, 0.0, 1.0, 1.0]], jnp.float32),
                          (bs, 1))
    seq_input = jnp.zeros((bs, dim_hidden), jnp.float32)
    # sat_task_mask: 1.0 = masked (-1e30 before softmax); keep most tasks unmasked
    sat_masks = jnp.zeros((num_sat, bs, task_num), jnp.float32).at[:, :, :2].set(1.0)

    fwd = jax.jit(functools.partial(model_forward, num_heads=num_heads))
    outs = fwd(params, nr, ngw, dn, nlw, norm_state, seq_input, sat_masks)
    outs = jax.block_until_ready(outs)
    print("KERNEL_OK")
</pallas_src>

<mosaic_0001>
module attributes {stable_mosaic.version = 11 : i64} {
  func.func @_shared_kernel(%arg0: i32, %arg1: memref<16x4xf32, #tpu.memory_space<vmem>>, %arg2: memref<16x20xf32, #tpu.memory_space<vmem>>, %arg3: memref<16x1xf32, #tpu.memory_space<vmem>>, %arg4: memref<16x16xbf16, #tpu.memory_space<vmem>>, %arg5: memref<32x64xbf16, #tpu.memory_space<vmem>>, %arg6: memref<16x16xf32, #tpu.memory_space<vmem>>, %arg7: memref<16x16xf32, #tpu.memory_space<vmem>>) attributes {dimension_semantics = [#tpu.dimension_semantics<parallel>], iteration_bounds = array<i64: 1>, scalar_prefetch = 0 : i64, scratch_operands = 0 : i64, tpu.core_type = #tpu.core_type<tc>, window_params = [{transform_indices = @transform_0, window_bounds = array<i64: 16, 4>}, {transform_indices = @transform_1, window_bounds = array<i64: 16, 20>}, {transform_indices = @transform_2, window_bounds = array<i64: 16, 1>}, {pipeline_mode = #tpu.pipeline_mode<synchronous>, transform_indices = @transform_3, window_bounds = array<i64: 16, 16>}, {pipeline_mode = #tpu.pipeline_mode<synchronous>, transform_indices = @transform_4, window_bounds = array<i64: 32, 64>}, {transform_indices = @transform_5, window_bounds = array<i64: 16, 16>}, {transform_indices = @transform_6, window_bounds = array<i64: 16, 16>}]} {
    %c0 = arith.constant 0 : index
    %c0_0 = arith.constant 0 : index
    %0 = vector.load %arg4[%c0, %c0_0] : memref<16x16xbf16, #tpu.memory_space<vmem>>, vector<16x16xbf16>
    %c0_1 = arith.constant 0 : index
    %c0_2 = arith.constant 0 : index
    %1 = vector.load %arg1[%c0_1, %c0_2] : memref<16x4xf32, #tpu.memory_space<vmem>>, vector<16x4xf32>
    %2 = vector.extract_strided_slice %0 {offsets = [0, 0], sizes = [4, 16], strides = [1, 1]} : vector<16x16xbf16> to vector<4x16xbf16>
    %3 = arith.truncf %1 : vector<16x4xf32> to vector<16x4xbf16>
    %cst = arith.constant dense<0.000000e+00> : vector<16x16xf32>
    %4 = tpu.matmul %3, %2, %cst {dimension_numbers = #tpu.dot_dimension_numbers<[1], [0], [0], [1], [0, 0, 1, 1], [], []>} : vector<16x4xbf16>, vector<4x16xbf16>, vector<16x16xf32> -> vector<16x16xf32>
    %5 = vector.extract_strided_slice %0 {offsets = [8, 0], sizes = [1, 16], strides = [1, 1]} : vector<16x16xbf16> to vector<1x16xbf16>
    %6 = arith.extf %5 : vector<1x16xbf16> to vector<1x16xf32>
    %7 = vector.broadcast %6 : vector<1x16xf32> to vector<16x16xf32>
    %8 = arith.addf %4, %7 : vector<16x16xf32>
    %cst_3 = arith.constant 0.000000e+00 : f32
    %9 = vector.broadcast %cst_3 : f32 to vector<16x16xf32>
    %10 = arith.maximumf %8, %9 : vector<16x16xf32>
    %c0_4 = arith.constant 0 : index
    %c0_5 = arith.constant 0 : index
    %11 = vector.load %arg6[%c0_4, %c0_5] : memref<16x16xf32, #tpu.memory_space<vmem>>, vector<16x16xf32>
    tpu.vector_store %arg6[%c0_4, %c0_5], %10 {strides = array<i32>} : memref<16x16xf32, #tpu.memory_space<vmem>>, vector<16x16xf32>,
    %c0_6 = arith.constant 0 : index
    %c0_7 = arith.constant 0 : index
    %12 = vector.load %arg2[%c0_6, %c0_7] : memref<16x20xf32, #tpu.memory_space<vmem>>, vector<16x20xf32>
    %c0_8 = arith.constant 0 : index
    %c0_9 = arith.constant 0 : index
    %13 = vector.load %arg3[%c0_8, %c0_9] : memref<16x1xf32, #tpu.memory_space<vmem>>, vector<16x1xf32>
    %c0_10 = arith.constant 0 : index
    %c0_11 = arith.constant 0 : index
    %14 = vector.load %arg5[%c0_10, %c0_11] : memref<32x64xbf16, #tpu.memory_space<vmem>>, vector<32x64xbf16>
    %15 = vector.extract_strided_slice %14 {offsets = [0, 0], sizes = [5, 64], strides = [1, 1]} : vector<32x64xbf16> to vector<5x64xbf16>
    %16 = vector.extract_strided_slice %14 {offsets = [8, 0], sizes = [16, 64], strides = [1, 1]} : vector<32x64xbf16> to vector<16x64xbf16>
    %17 = vector.extract_strided_slice %14 {offsets = [24, 0], sizes = [1, 64], strides = [1, 1]} : vector<32x64xbf16> to vector<1x64xbf16>
    %cst_12 = arith.constant 0.000000e+00 : f32
    %18 = vector.broadcast %cst_12 : f32 to vector<16x16xf32>
    %cst_13 = arith.constant 0.000000e+00 : f32
    %19 = vector.broadcast %cst_13 : f32 to vector<16x16xf32>
    %20 = vector.extract_strided_slice %12 {offsets = [0, 0], sizes = [16, 5], strides = [1, 1]} : vector<16x20xf32> to vector<16x5xf32>
    %21 = arith.truncf %20 : vector<16x5xf32> to vector<16x5xbf16>
    %cst_14 = arith.constant dense<0.000000e+00> : vector<16x64xf32>
    %22 = tpu.matmul %21, %15, %cst_14 {dimension_numbers = #tpu.dot_dimension_numbers<[1], [0], [0], [1], [0, 0, 1, 1], [], []>} : vector<16x5xbf16>, vector<5x64xbf16>, vector<16x64xf32> -> vector<16x64xf32>
    %23 = arith.truncf %18 : vector<16x16xf32> to vector<16x16xbf16>
    %cst_15 = arith.constant dense<0.000000e+00> : vector<16x64xf32>
    %24 = tpu.matmul %23, %16, %cst_15 {dimension_numbers = #tpu.dot_dimension_numbers<[1], [0], [0], [1], [0, 0, 1, 1], [], []>} : vector<16x16xbf16>, vector<16x64xbf16>, vector<16x64xf32> -> vector<16x64xf32>
    %25 = arith.addf %22, %24 : vector<16x64xf32>
    %26 = arith.extf %17 : vector<1x64xbf16> to vector<1x64xf32>
    %27 = vector.broadcast %26 : vector<1x64xf32> to vector<16x64xf32>
    %28 = arith.addf %25, %27 : vector<16x64xf32>
    %29 = vector.extract_strided_slice %28 {offsets = [0, 0], sizes = [16, 16], strides = [1, 1]} : vector<16x64xf32> to vector<16x16xf32>
    %30 = arith.negf %29 : vector<16x16xf32>
    %31 = math.exp %30 : vector<16x16xf32>
    %cst_16 = arith.constant 1.000000e+00 : f32
    %32 = vector.broadcast %cst_16 : f32 to vector<16x16xf32>
    %33 = arith.addf %32, %31 : vector<16x16xf32>
    %34 = arith.divf %32, %33 : vector<16x16xf32>
    %35 = vector.extract_strided_slice %28 {offsets = [0, 16], sizes = [16, 16], strides = [1, 1]} : vector<16x64xf32> to vector<16x16xf32>
    %36 = arith.negf %35 : vector<16x16xf32>
    %37 = math.exp %36 : vector<16x16xf32>
    %cst_17 = arith.constant 1.000000e+00 : f32
    %38 = vector.broadcast %cst_17 : f32 to vector<16x16xf32>
    %39 = arith.addf %38, %37 : vector<16x16xf32>
    %40 = arith.divf %38, %39 : vector<16x16xf32>
    %41 = vector.extract_strided_slice %28 {offsets = [0, 32], sizes = [16, 16], strides = [1, 1]} : vector<16x64xf32> to vector<16x16xf32>
    %42 = math.tanh %41 : vector<16x16xf32>
    %43 = vector.extract_strided_slice %28 {offsets = [0, 48], sizes = [16, 16], strides = [1, 1]} : vector<16x64xf32> to vector<16x16xf32>
    %44 = arith.negf %43 : vector<16x16xf32>
    %45 = math.exp %44 : vector<16x16xf32>
    %cst_18 = arith.constant 1.000000e+00 : f32
    %46 = vector.broadcast %cst_18 : f32 to vector<16x16xf32>
    %47 = arith.addf %46, %45 : vector<16x16xf32>
    %48 = arith.divf %46, %47 : vector<16x16xf32>
    %49 = arith.mulf %40, %19 : vector<16x16xf32>
    %50 = arith.mulf %34, %42 : vector<16x16xf32>
    %51 = arith.addf %49, %50 : vector<16x16xf32>
    %52 = math.tanh %51 : vector<16x16xf32>
    %53 = arith.mulf %48, %52 : vector<16x16xf32>
    %cst_19 = arith.constant 0.000000e+00 : f32
    %54 = vector.broadcast %cst_19 : f32 to vector<16x1xf32>
    %55 = arith.cmpf ogt, %13, %54 : vector<16x1xf32>
    %56 = arith.extui %55 : vector<16x1xi1> to vector<16x1xi32>
    %57 = arith.sitofp %56 : vector<16x1xi32> to vector<16x1xf32>
    %58 = vector.broadcast %57 : vector<16x1xf32> to vector<16x16xf32>
    %59 = arith.mulf %58, %53 : vector<16x16xf32>
    %cst_20 = arith.constant 1.000000e+00 : f32
    %60 = vector.broadcast %cst_20 : f32 to vector<16x1xf32>
    %61 = arith.subf %60, %57 : vector<16x1xf32>
    %62 = vector.broadcast %61 : vector<16x1xf32> to vector<16x16xf32>
    %63 = arith.mulf %62, %18 : vector<16x16xf32>
    %64 = arith.addf %59, %63 : vector<16x16xf32>
    %65 = vector.broadcast %57 : vector<16x1xf32> to vector<16x16xf32>
    %66 = arith.mulf %65, %51 : vector<16x16xf32>
    %cst_21 = arith.constant 1.000000e+00 : f32
    %67 = vector.broadcast %cst_21 : f32 to vector<16x1xf32>
    %68 = arith.subf %67, %57 : vector<16x1xf32>
    %69 = vector.broadcast %68 : vector<16x1xf32> to vector<16x16xf32>
    %70 = arith.mulf %69, %19 : vector<16x16xf32>
    %71 = arith.addf %66, %70 : vector<16x16xf32>
    %72 = vector.extract_strided_slice %12 {offsets = [0, 5], sizes = [16, 5], strides = [1, 1]} : vector<16x20xf32> to vector<16x5xf32>
    %73 = arith.truncf %72 : vector<16x5xf32> to vector<16x5xbf16>
    %cst_22 = arith.constant dense<0.000000e+00> : vector<16x64xf32>
    %74 = tpu.matmul %73, %15, %cst_22 {dimension_numbers = #tpu.dot_dimension_numbers<[1], [0], [0], [1], [0, 0, 1, 1], [], []>} : vector<16x5xbf16>, vector<5x64xbf16>, vector<16x64xf32> -> vector<16x64xf32>
    %75 = arith.truncf %64 : vector<16x16xf32> to vector<16x16xbf16>
    %cst_23 = arith.constant dense<0.000000e+00> : vector<16x64xf32>
    %76 = tpu.matmul %75, %16, %cst_23 {dimension_numbers = #tpu.dot_dimension_numbers<[1], [0], [0], [1], [0, 0, 1, 1], [], []>} : vector<16x16xbf16>, vector<16x64xbf16>, vector<16x64xf32> -> vector<16x64xf32>
    %77 = arith.addf %74, %76 : vector<16x64xf32>
    %78 = arith.extf %17 : vector<1x64xbf16> to vector<1x64xf32>
    %79 = vector.broadcast %78 : vector<1x64xf32> to vector<16x64xf32>
    %80 = arith.addf %77, %79 : vector<16x64xf32>
    %81 = vector.extract_strided_slice %80 {offsets = [0, 0], sizes = [16, 16], strides = [1, 1]} : vector<16x64xf32> to vector<16x16xf32>
    %82 = arith.negf %81 : vector<16x16xf32>
    %83 = math.exp %82 : vector<16x16xf32>
    %cst_24 = arith.constant 1.000000e+00 : f32
    %84 = vector.broadcast %cst_24 : f32 to vector<16x16xf32>
    %85 = arith.addf %84, %83 : vector<16x16xf32>
    %86 = arith.divf %84, %85 : vector<16x16xf32>
    %87 = vector.extract_strided_slice %80 {offsets = [0, 16], sizes = [16, 16], strides = [1, 1]} : vector<16x64xf32> to vector<16x16xf32>
    %88 = arith.negf %87 : vector<16x16xf32>
    %89 = math.exp %88 : vector<16x16xf32>
    %cst_25 = arith.constant 1.000000e+00 : f32
    %90 = vector.broadcast %cst_25 : f32 to vector<16x16xf32>
    %91 = arith.addf %90, %89 : vector<16x16xf32>
    %92 = arith.divf %90, %91 : vector<16x16xf32>
    %93 = vector.extract_strided_slice %80 {offsets = [0, 32], sizes = [16, 16], strides = [1, 1]} : vector<16x64xf32> to vector<16x16xf32>
    %94 = math.tanh %93 : vector<16x16xf32>
    %95 = vector.extract_strided_slice %80 {offsets = [0, 48], sizes = [16, 16], strides = [1, 1]} : vector<16x64xf32> to vector<16x16xf32>
    %96 = arith.negf %95 : vector<16x16xf32>
    %97 = math.exp %96 : vector<16x16xf32>
    %cst_26 = arith.constant 1.000000e+00 : f32
    %98 = vector.broadcast %cst_26 : f32 to vector<16x16xf32>
    %99 = arith.addf %98, %97 : vector<16x16xf32>
    %100 = arith.divf %98, %99 : vector<16x16xf32>
    %101 = arith.mulf %92, %71 : vector<16x16xf32>
    %102 = arith.mulf %86, %94 : vector<16x16xf32>
    %103 = arith.addf %101, %102 : vector<16x16xf32>
    %104 = math.tanh %103 : vector<16x16xf32>
    %105 = arith.mulf %100, %104 : vector<16x16xf32>
    %cst_27 = arith.constant 1.000000e+00 : f32
    %106 = vector.broadcast %cst_27 : f32 to vector<16x1xf32>
    %107 = arith.cmpf ogt, %13, %106 : vector<16x1xf32>
    %108 = arith.extui %107 : vector<16x1xi1> to vector<16x1xi32>
    %109 = arith.sitofp %108 : vector<16x1xi32> to vector<16x1xf32>
    %110 = vector.broadcast %109 : vector<16x1xf32> to vector<16x16xf32>
    %111 = arith.mulf %110, %105 : vector<16x16xf32>
    %cst_28 = arith.constant 1.000000e+00 : f32
    %112 = vector.broadcast %cst_28 : f32 to vector<16x1xf32>
    %113 = arith.subf %112, %109 : vector<16x1xf32>
    %114 = vector.broadcast %113 : vector<16x1xf32> to vector<16x16xf32>
    %115 = arith.mulf %114, %64 : vector<16x16xf32>
    %116 = arith.addf %111, %115 : vector<16x16xf32>
    %117 = vector.broadcast %109 : vector<16x1xf32> to vector<16x16xf32>
    %118 = arith.mulf %117, %103 : vector<16x16xf32>
    %cst_29 = arith.constant 1.000000e+00 : f32
    %119 = vector.broadcast %cst_29 : f32 to vector<16x1xf32>
    %120 = arith.subf %119, %109 : vector<16x1xf32>
    %121 = vector.broadcast %120 : vector<16x1xf32> to vector<16x16xf32>
    %122 = arith.mulf %121, %71 : vector<16x16xf32>
    %123 = arith.addf %118, %122 : vector<16x16xf32>
    %124 = vector.extract_strided_slice %12 {offsets = [0, 10], sizes = [16, 5], strides = [1, 1]} : vector<16x20xf32> to vector<16x5xf32>
    %125 = arith.truncf %124 : vector<16x5xf32> to vector<16x5xbf16>
    %cst_30 = arith.constant dense<0.000000e+00> : vector<16x64xf32>
    %126 = tpu.matmul %125, %15, %cst_30 {dimension_numbers = #tpu.dot_dimension_numbers<[1], [0], [0], [1], [0, 0, 1, 1], [], []>} : vector<16x5xbf16>, vector<5x64xbf16>, vector<16x64xf32> -> vector<16x64xf32>
    %127 = arith.truncf %116 : vector<16x16xf32> to vector<16x16xbf16>
    %cst_31 = arith.constant dense<0.000000e+00> : vector<16x64xf32>
    %128 = tpu.matmul %127, %16, %cst_31 {dimension_numbers = #tpu.dot_dimension_numbers<[1], [0], [0], [1], [0, 0, 1, 1], [], []>} : vector<16x16xbf16>, vector<16x64xbf16>, vector<16x64xf32> -> vector<16x64xf32>
    %129 = arith.addf %126, %128 : vector<16x64xf32>
    %130 = arith.extf %17 : vector<1x64xbf16> to vector<1x64xf32>
    %131 = vector.broadcast %130 : vector<1x64xf32> to vector<16x64xf32>
    %132 = arith.addf %129, %131 : vector<16x64xf32>
    %133 = vector.extract_strided_slice %132 {offsets = [0, 0], sizes = [16, 16], strides = [1, 1]} : vector<16x64xf32> to vector<16x16xf32>
    %134 = arith.negf %133 : vector<16x16xf32>
    %135 = math.exp %134 : vector<16x16xf32>
    %cst_32 = arith.constant 1.000000e+00 : f32
    %136 = vector.broadcast %cst_32 : f32 to vector<16x16xf32>
    %137 = arith.addf %136, %135 : vector<16x16xf32>
    %138 = arith.divf %136, %137 : vector<16x16xf32>
    %139 = vector.extract_strided_slice %132 {offsets = [0, 16], sizes = [16, 16], strides = [1, 1]} : vector<16x64xf32> to vector<16x16xf32>
    %140 = arith.negf %139 : vector<16x16xf32>
    %141 = math.exp %140 : vector<16x16xf32>
    %cst_33 = arith.constant 1.000000e+00 : f32
    %142 = vector.broadcast %cst_33 : f32 to vector<16x16xf32>
    %143 = arith.addf %142, %141 : vector<16x16xf32>
    %144 = arith.divf %142, %143 : vector<16x16xf32>
    %145 = vector.extract_strided_slice %132 {offsets = [0, 32], sizes = [16, 16], strides = [1, 1]} : vector<16x64xf32> to vector<16x16xf32>
    %146 = math.tanh %145 : vector<16x16xf32>
    %147 = vector.extract_strided_slice %132 {offsets = [0, 48], sizes = [16, 16], strides = [1, 1]} : vector<16x64xf32> to vector<16x16xf32>
    %148 = arith.negf %147 : vector<16x16xf32>
    %149 = math.exp %148 : vector<16x16xf32>
    %cst_34 = arith.constant 1.000000e+00 : f32
    %150 = vector.broadcast %cst_34 : f32 to vector<16x16xf32>
    %151 = arith.addf %150, %149 : vector<16x16xf32>
    %152 = arith.divf %150, %151 : vector<16x16xf32>
    %153 = arith.mulf %144, %123 : vector<16x16xf32>
    %154 = arith.mulf %138, %146 : vector<16x16xf32>
    %155 = arith.addf %153, %154 : vector<16x16xf32>
    %156 = math.tanh %155 : vector<16x16xf32>
    %157 = arith.mulf %152, %156 : vector<16x16xf32>
    %cst_35 = arith.constant 2.000000e+00 : f32
    %158 = vector.broadcast %cst_35 : f32 to vector<16x1xf32>
    %159 = arith.cmpf ogt, %13, %158 : vector<16x1xf32>
    %160 = arith.extui %159 : vector<16x1xi1> to vector<16x1xi32>
    %161 = arith.sitofp %160 : vector<16x1xi32> to vector<16x1xf32>
    %162 = vector.broadcast %161 : vector<16x1xf32> to vector<16x16xf32>
    %163 = arith.mulf %162, %157 : vector<16x16xf32>
    %cst_36 = arith.constant 1.000000e+00 : f32
    %164 = vector.broadcast %cst_36 : f32 to vector<16x1xf32>
    %165 = arith.subf %164, %161 : vector<16x1xf32>
    %166 = vector.broadcast %165 : vector<16x1xf32> to vector<16x16xf32>
    %167 = arith.mulf %166, %116 : vector<16x16xf32>
    %168 = arith.addf %163, %167 : vector<16x16xf32>
    %169 = vector.broadcast %161 : vector<16x1xf32> to vector<16x16xf32>
    %170 = arith.mulf %169, %155 : vector<16x16xf32>
    %cst_37 = arith.constant 1.000000e+00 : f32
    %171 = vector.broadcast %cst_37 : f32 to vector<16x1xf32>
    %172 = arith.subf %171, %161 : vector<16x1xf32>
    %173 = vector.broadcast %172 : vector<16x1xf32> to vector<16x16xf32>
    %174 = arith.mulf %173, %123 : vector<16x16xf32>
    %175 = arith.addf %170, %174 : vector<16x16xf32>
    %176 = vector.extract_strided_slice %12 {offsets = [0, 15], sizes = [16, 5], strides = [1, 1]} : vector<16x20xf32> to vector<16x5xf32>
    %177 = arith.truncf %176 : vector<16x5xf32> to vector<16x5xbf16>
    %cst_38 = arith.constant dense<0.000000e+00> : vector<16x64xf32>
    %178 = tpu.matmul %177, %15, %cst_38 {dimension_numbers = #tpu.dot_dimension_numbers<[1], [0], [0], [1], [0, 0, 1, 1], [], []>} : vector<16x5xbf16>, vector<5x64xbf16>, vector<16x64xf32> -> vector<16x64xf32>
    %179 = arith.truncf %168 : vector<16x16xf32> to vector<16x16xbf16>
    %cst_39 = arith.constant dense<0.000000e+00> : vector<16x64xf32>
    %180 = tpu.matmul %179, %16, %cst_39 {dimension_numbers = #tpu.dot_dimension_numbers<[1], [0], [0], [1], [0, 0, 1, 1], [], []>} : vector<16x16xbf16>, vector<16x64xbf16>, vector<16x64xf32> -> vector<16x64xf32>
    %181 = arith.addf %178, %180 : vector<16x64xf32>
    %182 = arith.extf %17 : vector<1x64xbf16> to vector<1x64xf32>
    %183 = vector.broadcast %182 : vector<1x64xf32> to vector<16x64xf32>
    %184 = arith.addf %181, %183 : vector<16x64xf32>
    %185 = vector.extract_strided_slice %184 {offsets = [0, 0], sizes = [16, 16], strides = [1, 1]} : vector<16x64xf32> to vector<16x16xf32>
    %186 = arith.negf %185 : vector<16x16xf32>
    %187 = math.exp %186 : vector<16x16xf32>
    %cst_40 = arith.constant 1.000000e+00 : f32
    %188 = vector.broadcast %cst_40 : f32 to vector<16x16xf32>
    %189 = arith.addf %188, %187 : vector<16x16xf32>
    %190 = arith.divf %188, %189 : vector<16x16xf32>
    %191 = vector.extract_strided_slice %184 {offsets = [0, 16], sizes = [16, 16], strides = [1, 1]} : vector<16x64xf32> to vector<16x16xf32>
    %192 = arith.negf %191 : vector<16x16xf32>
    %193 = math.exp %192 : vector<16x16xf32>
    %cst_41 = arith.constant 1.000000e+00 : f32
    %194 = vector.broadcast %cst_41 : f32 to vector<16x16xf32>
    %195 = arith.addf %194, %193 : vector<16x16xf32>
    %196 = arith.divf %194, %195 : vector<16x16xf32>
    %197 = vector.extract_strided_slice %184 {offsets = [0, 32], sizes = [16, 16], strides = [1, 1]} : vector<16x64xf32> to vector<16x16xf32>
    %198 = math.tanh %197 : vector<16x16xf32>
    %199 = vector.extract_strided_slice %184 {offsets = [0, 48], sizes = [16, 16], strides = [1, 1]} : vector<16x64xf32> to vector<16x16xf32>
    %200 = arith.negf %199 : vector<16x16xf32>
    %201 = math.exp %200 : vector<16x16xf32>
    %cst_42 = arith.constant 1.000000e+00 : f32
    %202 = vector.broadcast %cst_42 : f32 to vector<16x16xf32>
    %203 = arith.addf %202, %201 : vector<16x16xf32>
    %204 = arith.divf %202, %203 : vector<16x16xf32>
    %205 = arith.mulf %196, %175 : vector<16x16xf32>
    %206 = arith.mulf %190, %198 : vector<16x16xf32>
    %207 = arith.addf %205, %206 : vector<16x16xf32>
    %208 = math.tanh %207 : vector<16x16xf32>
    %209 = arith.mulf %204, %208 : vector<16x16xf32>
    %cst_43 = arith.constant 3.000000e+00 : f32
    %210 = vector.broadcast %cst_43 : f32 to vector<16x1xf32>
    %211 = arith.cmpf ogt, %13, %210 : vector<16x1xf32>
    %212 = arith.extui %211 : vector<16x1xi1> to vector<16x1xi32>
    %213 = arith.sitofp %212 : vector<16x1xi32> to vector<16x1xf32>
    %214 = vector.broadcast %213 : vector<16x1xf32> to vector<16x16xf32>
    %215 = arith.mulf %214, %209 : vector<16x16xf32>
    %cst_44 = arith.constant 1.000000e+00 : f32
    %216 = vector.broadcast %cst_44 : f32 to vector<16x1xf32>
    %217 = arith.subf %216, %213 : vector<16x1xf32>
    %218 = vector.broadcast %217 : vector<16x1xf32> to vector<16x16xf32>
    %219 = arith.mulf %218, %168 : vector<16x16xf32>
    %220 = arith.addf %215, %219 : vector<16x16xf32>
    %c0_45 = arith.constant 0 : index
    %c0_46 = arith.constant 0 : index
    %221 = vector.load %arg7[%c0_45, %c0_46] : memref<16x16xf32, #tpu.memory_space<vmem>>, vector<16x16xf32>
    tpu.vector_store %arg7[%c0_45, %c0_46], %220 {strides = array<i32>} : memref<16x16xf32, #tpu.memory_space<vmem>>, vector<16x16xf32>,
    return
  }
  func.func @transform_0(%arg0: i32) -> (i32, i32) {
    %c0_i32 = arith.constant 0 : i32
    %c0_i32_0 = arith.constant 0 : i32
    return %arg0, %c0_i32 : i32, i32
  }
  func.func @transform_1(%arg0: i32) -> (i32, i32) {
    %c0_i32 = arith.constant 0 : i32
    %c0_i32_0 = arith.constant 0 : i32
    return %arg0, %c0_i32 : i32, i32
  }
  func.func @transform_2(%arg0: i32) -> (i32, i32) {
    %c0_i32 = arith.constant 0 : i32
    %c0_i32_0 = arith.constant 0 : i32
    return %arg0, %c0_i32 : i32, i32
  }
  func.func @transform_3(%arg0: i32) -> (i32, i32) {
    %c0_i32 = arith.constant 0 : i32
    %c0_i32_0 = arith.constant 0 : i32
    %c0_i32_1 = arith.constant 0 : i32
    return %c0_i32, %c0_i32_0 : i32, i32
  }
  func.func @transform_4(%arg0: i32) -> (i32, i32) {
    %c0_i32 = arith.constant 0 : i32
    %c0_i32_0 = arith.constant 0 : i32
    %c0_i32_1 = arith.constant 0 : i32
    return %c0_i32, %c0_i32_0 : i32, i32
  }
  func.func @transform_5(%arg0: i32) -> (i32, i32) {
    %c0_i32 = arith.constant 0 : i32
    %c0_i32_0 = arith.constant 0 : i32
    return %arg0, %c0_i32 : i32, i32
  }
  func.func @transform_6(%arg0: i32) -> (i32, i32) {
    %c0_i32 = arith.constant 0 : i32
    %c0_i32_0 = arith.constant 0 : i32
    return %arg0, %c0_i32 : i32, i32
  }
}

module attributes {stable_mosaic.version = 11 : i64} {
  func.func @_agent_kernel(%arg0: i32, %arg1: i32, %arg2: memref<16x16xf32, #tpu.memory_space<vmem>>, %arg3: memref<16x16xf32, #tpu.memory_space<vmem>>, %arg4: memref<1x16x15xf32, #tpu.memory_space<vmem>>, %arg5: memref<1x16x1xf32, #tpu.memory_space<vmem>>, %arg6: memref<2x6xf32, #tpu.memory_space<vmem>>, %arg7: memref<2x32xf32, #tpu.memory_space<vmem>>, %arg8: memref<1x2x8xf32, #tpu.memory_space<vmem>>, %arg9: memref<1x32x64xbf16, #tpu.memory_space<vmem>>, %arg10: memref<1x56x32xbf16, #tpu.memory_space<vmem>>, %arg11: memref<1x40x96xbf16, #tpu.memory_space<vmem>>, %arg12: memref<1x40x32xbf16, #tpu.memory_space<vmem>>, %arg13: memref<1x96x32xbf16, #tpu.memory_space<vmem>>, %arg14: memref<1x88x32xbf16, #tpu.memory_space<vmem>>, %arg15: memref<1x72x128xbf16, #tpu.memory_space<vmem>>, %arg16: memref<1x88x32xbf16, #tpu.memory_space<vmem>>, %arg17: memref<1x16x32xf32, #tpu.memory_space<vmem>>, %arg18: memref<1x2x8xf32, #tpu.memory_space<vmem>>, %arg19: memref<1x2x32xf32, #tpu.memory_space<vmem>>, %arg20: memref<1x2x32xf32, #tpu.memory_space<vmem>>) attributes {dimension_semantics = [#tpu.dimension_semantics<parallel>, #tpu.dimension_semantics<parallel>], iteration_bounds = array<i64: 2, 1>, scalar_prefetch = 0 : i64, scratch_operands = 0 : i64, tpu.core_type = #tpu.core_type<tc>, window_params = [{transform_indices = @transform_0, window_bounds = array<i64: 16, 16>}, {transform_indices = @transform_1, window_bounds = array<i64: 16, 16>}, {transform_indices = @transform_2, window_bounds = array<i64: 1, 16, 15>}, {transform_indices = @transform_3, window_bounds = array<i64: 1, 16, 1>}, {transform_indices = @transform_4, window_bounds = array<i64: 2, 6>}, {transform_indices = @transform_5, window_bounds = array<i64: 2, 32>}, {transform_indices = @transform_6, window_bounds = array<i64: 1, 2, 8>}, {transform_indices = @transform_7, window_bounds = array<i64: 1, 32, 64>}, {transform_indices = @transform_8, window_bounds = array<i64: 1, 56, 32>}, {transform_indices = @transform_9, window_bounds = array<i64: 1, 40, 96>}, {transform_indices = @transform_10, window_bounds = array<i64: 1, 40, 32>}, {transform_indices = @transform_11, window_bounds = array<i64: 1, 96, 32>}, {transform_indices = @transform_12, window_bounds = array<i64: 1, 88, 32>}, {transform_indices = @transform_13, window_bounds = array<i64: 1, 72, 128>}, {transform_indices = @transform_14, window_bounds = array<i64: 1, 88, 32>}, {transform_indices = @transform_15, window_bounds = array<i64: 1, 16, 32>}, {transform_indices = @transform_16, window_bounds = array<i64: 1, 2, 8>}, {transform_indices = @transform_17, window_bounds = array<i64: 1, 2, 32>}, {transform_indices = @transform_18, window_bounds = array<i64: 1, 2, 32>}]} {
    %c0 = arith.constant 0 : index
    %c0_0 = arith.constant 0 : index
    %c0_1 = arith.constant 0 : index
    %0 = vector.load %arg4[%c0, %c0_0, %c0_1] : memref<1x16x15xf32, #tpu.memory_space<vmem>>, vector<1x16x15xf32>
    %1 = vector.shape_cast %0 : vector<1x16x15xf32> to vector<16x15xf32>
    %c0_2 = arith.constant 0 : index
    %c0_3 = arith.constant 0 : index
    %c0_4 = arith.constant 0 : index
    %2 = vector.load %arg5[%c0_2, %c0_3, %c0_4] : memref<1x16x1xf32, #tpu.memory_space<vmem>>, vector<1x16x1xf32>
    %3 = vector.shape_cast %2 : vector<1x16x1xf32> to vector<16x1xf32>
    %c0_5 = arith.constant 0 : index
    %c0_6 = arith.constant 0 : index
    %c0_7 = arith.constant 0 : index
    %4 = vector.load %arg9[%c0_5, %c0_6, %c0_7] : memref<1x32x64xbf16, #tpu.memory_space<vmem>>, vector<1x32x64xbf16>
    %5 = vector.shape_cast %4 : vector<1x32x64xbf16> to vector<32x64xbf16>
    %6 = vector.extract_strided_slice %5 {offsets = [0, 0], sizes = [5, 64], strides = [1, 1]} : vector<32x64xbf16> to vector<5x64xbf16>
    %7 = vector.extract_strided_slice %5 {offsets = [8, 0], sizes = [16, 64], strides = [1, 1]} : vector<32x64xbf16> to vector<16x64xbf16>
    %8 = vector.extract_strided_slice %5 {offsets = [24, 0], sizes = [1, 64], strides = [1, 1]} : vector<32x64xbf16> to vector<1x64xbf16>
    %cst = arith.constant 0.000000e+00 : f32
    %9 = vector.broadcast %cst : f32 to vector<16x16xf32>
    %cst_8 = arith.constant 0.000000e+00 : f32
    %10 = vector.broadcast %cst_8 : f32 to vector<16x16xf32>
    %11 = vector.extract_strided_slice %1 {offsets = [0, 0], sizes = [16, 5], strides = [1, 1]} : vector<16x15xf32> to vector<16x5xf32>
    %12 = arith.truncf %11 : vector<16x5xf32> to vector<16x5xbf16>
    %cst_9 = arith.constant dense<0.000000e+00> : vector<16x64xf32>
    %13 = tpu.matmul %12, %6, %cst_9 {dimension_numbers = #tpu.dot_dimension_numbers<[1], [0], [0], [1], [0, 0, 1, 1], [], []>} : vector<16x5xbf16>, vector<5x64xbf16>, vector<16x64xf32> -> vector<16x64xf32>
    %14 = arith.truncf %9 : vector<16x16xf32> to vector<16x16xbf16>
    %cst_10 = arith.constant dense<0.000000e+00> : vector<16x64xf32>
    %15 = tpu.matmul %14, %7, %cst_10 {dimension_numbers = #tpu.dot_dimension_numbers<[1], [0], [0], [1], [0, 0, 1, 1], [], []>} : vector<16x16xbf16>, vector<16x64xbf16>, vector<16x64xf32> -> vector<16x64xf32>
    %16 = arith.addf %13, %15 : vector<16x64xf32>
    %17 = arith.extf %8 : vector<1x64xbf16> to vector<1x64xf32>
    %18 = vector.broadcast %17 : vector<1x64xf32> to vector<16x64xf32>
    %19 = arith.addf %16, %18 : vector<16x64xf32>
    %20 = vector.extract_strided_slice %19 {offsets = [0, 0], sizes = [16, 16], strides = [1, 1]} : vector<16x64xf32> to vector<16x16xf32>
    %21 = arith.negf %20 : vector<16x16xf32>
    %22 = math.exp %21 : vector<16x16xf32>
    %cst_11 = arith.constant 1.000000e+00 : f32
    %23 = vector.broadcast %cst_11 : f32 to vector<16x16xf32>
    %24 = arith.addf %23, %22 : vector<16x16xf32>
    %25 = arith.divf %23, %24 : vector<16x16xf32>
    %26 = vector.extract_strided_slice %19 {offsets = [0, 16], sizes = [16, 16], strides = [1, 1]} : vector<16x64xf32> to vector<16x16xf32>
    %27 = arith.negf %26 : vector<16x16xf32>
    %28 = math.exp %27 : vector<16x16xf32>
    %cst_12 = arith.constant 1.000000e+00 : f32
    %29 = vector.broadcast %cst_12 : f32 to vector<16x16xf32>
    %30 = arith.addf %29, %28 : vector<16x16xf32>
    %31 = arith.divf %29, %30 : vector<16x16xf32>
    %32 = vector.extract_strided_slice %19 {offsets = [0, 32], sizes = [16, 16], strides = [1, 1]} : vector<16x64xf32> to vector<16x16xf32>
    %33 = math.tanh %32 : vector<16x16xf32>
    %34 = vector.extract_strided_slice %19 {offsets = [0, 48], sizes = [16, 16], strides = [1, 1]} : vector<16x64xf32> to vector<16x16xf32>
    %35 = arith.negf %34 : vector<16x16xf32>
    %36 = math.exp %35 : vector<16x16xf32>
    %cst_13 = arith.constant 1.000000e+00 : f32
    %37 = vector.broadcast %cst_13 : f32 to vector<16x16xf32>
    %38 = arith.addf %37, %36 : vector<16x16xf32>
    %39 = arith.divf %37, %38 : vector<16x16xf32>
    %40 = arith.mulf %31, %10 : vector<16x16xf32>
    %41 = arith.mulf %25, %33 : vector<16x16xf32>
    %42 = arith.addf %40, %41 : vector<16x16xf32>
    %43 = math.tanh %42 : vector<16x16xf32>
    %44 = arith.mulf %39, %43 : vector<16x16xf32>
    %cst_14 = arith.constant 0.000000e+00 : f32
    %45 = vector.broadcast %cst_14 : f32 to vector<16x1xf32>
    %46 = arith.cmpf ogt, %3, %45 : vector<16x1xf32>
    %47 = arith.extui %46 : vector<16x1xi1> to vector<16x1xi32>
    %48 = arith.sitofp %47 : vector<16x1xi32> to vector<16x1xf32>
    %49 = vector.broadcast %48 : vector<16x1xf32> to vector<16x16xf32>
    %50 = arith.mulf %49, %44 : vector<16x16xf32>
    %cst_15 = arith.constant 1.000000e+00 : f32
    %51 = vector.broadcast %cst_15 : f32 to vector<16x1xf32>
    %52 = arith.subf %51, %48 : vector<16x1xf32>
    %53 = vector.broadcast %52 : vector<16x1xf32> to vector<16x16xf32>
    %54 = arith.mulf %53, %9 : vector<16x16xf32>
    %55 = arith.addf %50, %54 : vector<16x16xf32>
    %56 = vector.broadcast %48 : vector<16x1xf32> to vector<16x16xf32>
    %57 = arith.mulf %56, %42 : vector<16x16xf32>
    %cst_16 = arith.constant 1.000000e+00 : f32
    %58 = vector.broadcast %cst_16 : f32 to vector<16x1xf32>
    %59 = arith.subf %58, %48 : vector<16x1xf32>
    %60 = vector.broadcast %59 : vector<16x1xf32> to vector<16x16xf32>
    %61 = arith.mulf %60, %10 : vector<16x16xf32>
    %62 = arith.addf %57, %61 : vector<16x16xf32>
    %63 = vector.extract_strided_slice %1 {offsets = [0, 5], sizes = [16, 5], strides = [1, 1]} : vector<16x15xf32> to vector<16x5xf32>
    %64 = arith.truncf %63 : vector<16x5xf32> to vector<16x5xbf16>
    %cst_17 = arith.constant dense<0.000000e+00> : vector<16x64xf32>
    %65 = tpu.matmul %64, %6, %cst_17 {dimension_numbers = #tpu.dot_dimension_numbers<[1], [0], [0], [1], [0, 0, 1, 1], [], []>} : vector<16x5xbf16>, vector<5x64xbf16>, vector<16x64xf32> -> vector<16x64xf32>
    %66 = arith.truncf %55 : vector<16x16xf32> to vector<16x16xbf16>
    %cst_18 = arith.constant dense<0.000000e+00> : vector<16x64xf32>
    %67 = tpu.matmul %66, %7, %cst_18 {dimension_numbers = #tpu.dot_dimension_numbers<[1], [0], [0], [1], [0, 0, 1, 1], [], []>} : vector<16x16xbf16>, vector<16x64xbf16>, vector<16x64xf32> -> vector<16x64xf32>
    %68 = arith.addf %65, %67 : vector<16x64xf32>
    %69 = arith.extf %8 : vector<1x64xbf16> to vector<1x64xf32>
    %70 = vector.broadcast %69 : vector<1x64xf32> to vector<16x64xf32>
    %71 = arith.addf %68, %70 : vector<16x64xf32>
    %72 = vector.extract_strided_slice %71 {offsets = [0, 0], sizes = [16, 16], strides = [1, 1]} : vector<16x64xf32> to vector<16x16xf32>
    %73 = arith.negf %72 : vector<16x16xf32>
    %74 = math.exp %73 : vector<16x16xf32>
    %cst_19 = arith.constant 1.000000e+00 : f32
    %75 = vector.broadcast %cst_19 : f32 to vector<16x16xf32>
    %76 = arith.addf %75, %74 : vector<16x16xf32>
    %77 = arith.divf %75, %76 : vector<16x16xf32>
    %78 = vector.extract_strided_slice %71 {offsets = [0, 16], sizes = [16, 16], strides = [1, 1]} : vector<16x64xf32> to vector<16x16xf32>
    %79 = arith.negf %78 : vector<16x16xf32>
    %80 = math.exp %79 : vector<16x16xf32>
    %cst_20 = arith.constant 1.000000e+00 : f32
    %81 = vector.broadcast %cst_20 : f32 to vector<16x16xf32>
    %82 = arith.addf %81, %80 : vector<16x16xf32>
    %83 = arith.divf %81, %82 : vector<16x16xf32>
    %84 = vector.extract_strided_slice %71 {offsets = [0, 32], sizes = [16, 16], strides = [1, 1]} : vector<16x64xf32> to vector<16x16xf32>
    %85 = math.tanh %84 : vector<16x16xf32>
    %86 = vector.extract_strided_slice %71 {offsets = [0, 48], sizes = [16, 16], strides = [1, 1]} : vector<16x64xf32> to vector<16x16xf32>
    %87 = arith.negf %86 : vector<16x16xf32>
    %88 = math.exp %87 : vector<16x16xf32>
    %cst_21 = arith.constant 1.000000e+00 : f32
    %89 = vector.broadcast %cst_21 : f32 to vector<16x16xf32>
    %90 = arith.addf %89, %88 : vector<16x16xf32>
    %91 = arith.divf %89, %90 : vector<16x16xf32>
    %92 = arith.mulf %83, %62 : vector<16x16xf32>
    %93 = arith.mulf %77, %85 : vector<16x16xf32>
    %94 = arith.addf %92, %93 : vector<16x16xf32>
    %95 = math.tanh %94 : vector<16x16xf32>
    %96 = arith.mulf %91, %95 : vector<16x16xf32>
    %cst_22 = arith.constant 1.000000e+00 : f32
    %97 = vector.broadcast %cst_22 : f32 to vector<16x1xf32>
    %98 = arith.cmpf ogt, %3, %97 : vector<16x1xf32>
    %99 = arith.extui %98 : vector<16x1xi1> to vector<16x1xi32>
    %100 = arith.sitofp %99 : vector<16x1xi32> to vector<16x1xf32>
    %101 = vector.broadcast %100 : vector<16x1xf32> to vector<16x16xf32>
    %102 = arith.mulf %101, %96 : vector<16x16xf32>
    %cst_23 = arith.constant 1.000000e+00 : f32
    %103 = vector.broadcast %cst_23 : f32 to vector<16x1xf32>
    %104 = arith.subf %103, %100 : vector<16x1xf32>
    %105 = vector.broadcast %104 : vector<16x1xf32> to vector<16x16xf32>
    %106 = arith.mulf %105, %55 : vector<16x16xf32>
    %107 = arith.addf %102, %106 : vector<16x16xf32>
    %108 = vector.broadcast %100 : vector<16x1xf32> to vector<16x16xf32>
    %109 = arith.mulf %108, %94 : vector<16x16xf32>
    %cst_24 = arith.constant 1.000000e+00 : f32
    %110 = vector.broadcast %cst_24 : f32 to vector<16x1xf32>
    %111 = arith.subf %110, %100 : vector<16x1xf32>
    %112 = vector.broadcast %111 : vector<16x1xf32> to vector<16x16xf32>
    %113 = arith.mulf %112, %62 : vector<16x16xf32>
    %114 = arith.addf %109, %113 : vector<16x16xf32>
    %115 = vector.extract_strided_slice %1 {offsets = [0, 10], sizes = [16, 5], strides = [1, 1]} : vector<16x15xf32> to vector<16x5xf32>
    %116 = arith.truncf %115 : vector<16x5xf32> to vector<16x5xbf16>
    %cst_25 = arith.constant dense<0.000000e+00> : vector<16x64xf32>
    %117 = tpu.matmul %116, %6, %cst_25 {dimension_numbers = #tpu.dot_dimension_numbers<[1], [0], [0], [1], [0, 0, 1, 1], [], []>} : vector<16x5xbf16>, vector<5x64xbf16>, vector<16x64xf32> -> vector<16x64xf32>
    %118 = arith.truncf %107 : vector<16x16xf32> to vector<16x16xbf16>
    %cst_26 = arith.constant dense<0.000000e+00> : vector<16x64xf32>
    %119 = tpu.matmul %118, %7, %cst_26 {dimension_numbers = #tpu.dot_dimension_numbers<[1], [0], [0], [1], [0, 0, 1, 1], [], []>} : vector<16x16xbf16>, vector<16x64xbf16>, vector<16x64xf32> -> vector<16x64xf32>
    %120 = arith.addf %117, %119 : vector<16x64xf32>
    %121 = arith.extf %8 : vector<1x64xbf16> to vector<1x64xf32>
    %122 = vector.broadcast %121 : vector<1x64xf32> to vector<16x64xf32>
    %123 = arith.addf %120, %122 : vector<16x64xf32>
    %124 = vector.extract_strided_slice %123 {offsets = [0, 0], sizes = [16, 16], strides = [1, 1]} : vector<16x64xf32> to vector<16x16xf32>
    %125 = arith.negf %124 : vector<16x16xf32>
    %126 = math.exp %125 : vector<16x16xf32>
    %cst_27 = arith.constant 1.000000e+00 : f32
    %127 = vector.broadcast %cst_27 : f32 to vector<16x16xf32>
    %128 = arith.addf %127, %126 : vector<16x16xf32>
    %129 = arith.divf %127, %128 : vector<16x16xf32>
    %130 = vector.extract_strided_slice %123 {offsets = [0, 16], sizes = [16, 16], strides = [1, 1]} : vector<16x64xf32> to vector<16x16xf32>
    %131 = arith.negf %130 : vector<16x16xf32>
    %132 = math.exp %131 : vector<16x16xf32>
    %cst_28 = arith.constant 1.000000e+00 : f32
    %133 = vector.broadcast %cst_28 : f32 to vector<16x16xf32>
    %134 = arith.addf %133, %132 : vector<16x16xf32>
    %135 = arith.divf %133, %134 : vector<16x16xf32>
    %136 = vector.extract_strided_slice %123 {offsets = [0, 32], sizes = [16, 16], strides = [1, 1]} : vector<16x64xf32> to vector<16x16xf32>
    %137 = math.tanh %136 : vector<16x16xf32>
    %138 = vector.extract_strided_slice %123 {offsets = [0, 48], sizes = [16, 16], strides = [1, 1]} : vector<16x64xf32> to vector<16x16xf32>
    %139 = arith.negf %138 : vector<16x16xf32>
    %140 = math.exp %139 : vector<16x16xf32>
    %cst_29 = arith.constant 1.000000e+00 : f32
    %141 = vector.broadcast %cst_29 : f32 to vector<16x16xf32>
    %142 = arith.addf %141, %140 : vector<16x16xf32>
    %143 = arith.divf %141, %142 : vector<16x16xf32>
    %144 = arith.mulf %135, %114 : vector<16x16xf32>
    %145 = arith.mulf %129, %137 : vector<16x16xf32>
    %146 = arith.addf %144, %145 : vector<16x16xf32>
    %147 = math.tanh %146 : vector<16x16xf32>
    %148 = arith.mulf %143, %147 : vector<16x16xf32>
    %cst_30 = arith.constant 2.000000e+00 : f32
    %149 = vector.broadcast %cst_30 : f32 to vector<16x1xf32>
    %150 = arith.cmpf ogt, %3, %149 : vector<16x1xf32>
    %151 = arith.extui %150 : vector<16x1xi1> to vector<16x1xi32>
    %152 = arith.sitofp %151 : vector<16x1xi32> to vector<16x1xf32>
    %153 = vector.broadcast %152 : vector<16x1xf32> to vector<16x16xf32>
    %154 = arith.mulf %153, %148 : vector<16x16xf32>
    %cst_31 = arith.constant 1.000000e+00 : f32
    %155 = vector.broadcast %cst_31 : f32 to vector<16x1xf32>
    %156 = arith.subf %155, %152 : vector<16x1xf32>
    %157 = vector.broadcast %156 : vector<16x1xf32> to vector<16x16xf32>
    %158 = arith.mulf %157, %107 : vector<16x16xf32>
    %159 = arith.addf %154, %158 : vector<16x16xf32>
    %c0_32 = arith.constant 0 : index
    %c0_33 = arith.constant 0 : index
    %c0_34 = arith.constant 0 : index
    %160 = vector.load %arg10[%c0_32, %c0_33, %c0_34] : memref<1x56x32xbf16, #tpu.memory_space<vmem>>, vector<1x56x32xbf16>
    %161 = vector.shape_cast %160 : vector<1x56x32xbf16> to vector<56x32xbf16>
    %c0_35 = arith.constant 0 : index
    %c0_36 = arith.constant 0 : index
    %162 = vector.load %arg2[%c0_35, %c0_36] : memref<16x16xf32, #tpu.memory_space<vmem>>, vector<16x16xf32>
    %163 = vector.extract_strided_slice %161 {offsets = [0, 0], sizes = [16, 32], strides = [1, 1]} : vector<56x32xbf16> to vector<16x32xbf16>
    %164 = arith.truncf %162 : vector<16x16xf32> to vector<16x16xbf16>
    %cst_37 = arith.constant dense<0.000000e+00> : vector<16x32xf32>
    %165 = tpu.matmul %164, %163, %cst_37 {dimension_numbers = #tpu.dot_dimension_numbers<[1], [0], [0], [1], [0, 0, 1, 1], [], []>} : vector<16x16xbf16>, vector<16x32xbf16>, vector<16x32xf32> -> vector<16x32xf32>
    %c0_38 = arith.constant 0 : index
    %c0_39 = arith.constant 0 : index
    %166 = vector.load %arg3[%c0_38, %c0_39] : memref<16x16xf32, #tpu.memory_space<vmem>>, vector<16x16xf32>
    %167 = arith.addf %166, %159 : vector<16x16xf32>
    %168 = vector.extract_strided_slice %161 {offsets = [16, 0], sizes = [16, 32], strides = [1, 1]} : vector<56x32xbf16> to vector<16x32xbf16>
    %169 = arith.truncf %167 : vector<16x16xf32> to vector<16x16xbf16>
    %cst_40 = arith.constant dense<0.000000e+00> : vector<16x32xf32>
    %170 = tpu.matmul %169, %168, %cst_40 {dimension_numbers = #tpu.dot_dimension_numbers<[1], [0], [0], [1], [0, 0, 1, 1], [], []>} : vector<16x16xbf16>, vector<16x32xbf16>, vector<16x32xf32> -> vector<16x32xf32>
    %171 = arith.addf %165, %170 : vector<16x32xf32>
    %172 = vector.extract_strided_slice %161 {offsets = [32, 0], sizes = [1, 32], strides = [1, 1]} : vector<56x32xbf16> to vector<1x32xbf16>
    %173 = arith.extf %172 : vector<1x32xbf16> to vector<1x32xf32>
    %174 = vector.broadcast %173 : vector<1x32xf32> to vector<16x32xf32>
    %175 = arith.addf %171, %174 : vector<16x32xf32>
    %176 = vector.extract_strided_slice %161 {offsets = [40, 0], sizes = [1, 32], strides = [1, 1]} : vector<56x32xbf16> to vector<1x32xbf16>
    %177 = vector.extract_strided_slice %161 {offsets = [48, 0], sizes = [1, 32], strides = [1, 1]} : vector<56x32xbf16> to vector<1x32xbf16>
    %cst_41 = arith.constant dense<0.000000e+00> : vector<16xf32>
    %178 = vector.multi_reduction <add>, %175, %cst_41 [1] : vector<16x32xf32> to vector<16xf32>
    %179 = vector.shape_cast %178 : vector<16xf32> to vector<16x1xf32>
    %cst_42 = arith.constant 3.200000e+01 : f32
    %180 = vector.broadcast %cst_42 : f32 to vector<16x1xf32>
    %181 = arith.divf %179, %180 : vector<16x1xf32>
    %182 = vector.broadcast %181 : vector<16x1xf32> to vector<16x32xf32>
    %183 = arith.subf %175, %182 : vector<16x32xf32>
    %184 = arith.mulf %183, %183 : vector<16x32xf32>
    %cst_43 = arith.constant dense<0.000000e+00> : vector<16xf32>
    %185 = vector.multi_reduction <add>, %184, %cst_43 [1] : vector<16x32xf32> to vector<16xf32>
    %186 = vector.shape_cast %185 : vector<16xf32> to vector<16x1xf32>
    %cst_44 = arith.constant 3.200000e+01 : f32
    %187 = vector.broadcast %cst_44 : f32 to vector<16x1xf32>
    %188 = arith.divf %186, %187 : vector<16x1xf32>
    %cst_45 = arith.constant 9.99999974E-6 : f32
    %189 = vector.broadcast %cst_45 : f32 to vector<16x1xf32>
    %190 = arith.addf %188, %189 : vector<16x1xf32>
    %191 = math.rsqrt %190 : vector<16x1xf32>
    %192 = vector.broadcast %191 : vector<16x1xf32> to vector<16x32xf32>
    %193 = arith.mulf %183, %192 : vector<16x32xf32>
    %194 = arith.extf %176 : vector<1x32xbf16> to vector<1x32xf32>
    %195 = vector.broadcast %194 : vector<1x32xf32> to vector<16x32xf32>
    %196 = arith.mulf %193, %195 : vector<16x32xf32>
    %197 = arith.extf %177 : vector<1x32xbf16> to vector<1x32xf32>
    %198 = vector.broadcast %197 : vector<1x32xf32> to vector<16x32xf32>
    %199 = arith.addf %196, %198 : vector<16x32xf32>
    %c0_46 = arith.constant 0 : index
    %c0_47 = arith.constant 0 : index
    %c0_48 = arith.constant 0 : index
    %200 = vector.load %arg11[%c0_46, %c0_47, %c0_48] : memref<1x40x96xbf16, #tpu.memory_space<vmem>>, vector<1x40x96xbf16>
    %201 = vector.shape_cast %200 : vector<1x40x96xbf16> to vector<40x96xbf16>
    %202 = vector.extract_strided_slice %201 {offsets = [0, 0], sizes = [32, 96], strides = [1, 1]} : vector<40x96xbf16> to vector<32x96xbf16>
    %203 = arith.truncf %199 : vector<16x32xf32> to vector<16x32xbf16>
    %cst_49 = arith.constant dense<0.000000e+00> : vector<16x96xf32>
    %204 = tpu.matmul %203, %202, %cst_49 {dimension_numbers = #tpu.dot_dimension_numbers<[1], [0], [0], [1], [0, 0, 1, 1], [], []>} : vector<16x32xbf16>, vector<32x96xbf16>, vector<16x96xf32> -> vector<16x96xf32>
    %205 = vector.extract_strided_slice %201 {offsets = [32, 0], sizes = [1, 96], strides = [1, 1]} : vector<40x96xbf16> to vector<1x96xbf16>
    %206 = arith.extf %205 : vector<1x96xbf16> to vector<1x96xf32>
    %207 = vector.broadcast %206 : vector<1x96xf32> to vector<16x96xf32>
    %208 = arith.addf %204, %207 : vector<16x96xf32>
    %209 = vector.extract_strided_slice %208 {offsets = [0, 0], sizes = [16, 32], strides = [1, 1]} : vector<16x96xf32> to vector<16x32xf32>
    %210 = vector.shape_cast %209 : vector<16x32xf32> to vector<2x8x32xf32>
    %211 = vector.extract_strided_slice %208 {offsets = [0, 32], sizes = [16, 32], strides = [1, 1]} : vector<16x96xf32> to vector<16x32xf32>
    %212 = vector.shape_cast %211 : vector<16x32xf32> to vector<2x8x32xf32>
    %213 = vector.extract_strided_slice %208 {offsets = [0, 64], sizes = [16, 32], strides = [1, 1]} : vector<16x96xf32> to vector<16x32xf32>
    %214 = vector.shape_cast %213 : vector<16x32xf32> to vector<2x8x32xf32>
    %c0_50 = arith.constant 0 : index
    %c0_51 = arith.constant 0 : index
    %c0_52 = arith.constant 0 : index
    %215 = vector.load %arg12[%c0_50, %c0_51, %c0_52] : memref<1x40x32xbf16, #tpu.memory_space<vmem>>, vector<1x40x32xbf16>
    %216 = vector.shape_cast %215 : vector<1x40x32xbf16> to vector<40x32xbf16>
    %cst_53 = arith.constant 0.000000e+00 : f32
    %217 = vector.broadcast %cst_53 : f32 to vector<16x32xf32>
    %218 = vector.extract_strided_slice %210 {offsets = [0, 0, 0], sizes = [2, 8, 8], strides = [1, 1, 1]} : vector<2x8x32xf32> to vector<2x8x8xf32>
    %219 = arith.truncf %218 : vector<2x8x8xf32> to vector<2x8x8xbf16>
    %220 = vector.extract_strided_slice %212 {offsets = [0, 0, 0], sizes = [2, 8, 8], strides = [1, 1, 1]} : vector<2x8x32xf32> to vector<2x8x8xf32>
    %221 = arith.truncf %220 : vector<2x8x8xf32> to vector<2x8x8xbf16>
    %222 = vector.extract_strided_slice %214 {offsets = [0, 0, 0], sizes = [2, 8, 8], strides = [1, 1, 1]} : vector<2x8x32xf32> to vector<2x8x8xf32>
    %223 = arith.truncf %222 : vector<2x8x8xf32> to vector<2x8x8xbf16>
    "tpu.trace_start"() <{level = 10 : i32, message = "bqd,bkd->bqk"}> : () -> ()
    %cst_54 = arith.constant dense<0.000000e+00> : vector<2x8x8xf32>
    %224 = tpu.matmul %219, %221, %cst_54 {dimension_numbers = #tpu.dot_dimension_numbers<[2], [2], [1], [1], [0, 0, 0, 1, 1, 1], [0], [0]>} : vector<2x8x8xbf16>, vector<2x8x8xbf16>, vector<2x8x8xf32> -> vector<2x8x8xf32>
    "tpu.trace_stop"() : () -> ()
    %cst_55 = arith.constant 0.353553385 : f32
    %225 = vector.broadcast %cst_55 : f32 to vector<2x8x8xf32>
    %226 = arith.mulf %224, %225 : vector<2x8x8xf32>
    %cst_56 = arith.constant dense<0xFF800000> : vector<2x8xf32>
    %227 = vector.multi_reduction <maximumf>, %226, %cst_56 [2] : vector<2x8x8xf32> to vector<2x8xf32>
    %228 = vector.shape_cast %227 : vector<2x8xf32> to vector<2x8x1xf32>
    %229 = vector.broadcast %228 : vector<2x8x1xf32> to vector<2x8x8xf32>
    %230 = arith.subf %226, %229 : vector<2x8x8xf32>
    %231 = math.exp %230 : vector<2x8x8xf32>
    %cst_57 = arith.constant dense<0.000000e+00> : vector<2x8xf32>
    %232 = vector.multi_reduction <add>, %231, %cst_57 [2] : vector<2x8x8xf32> to vector<2x8xf32>
    %233 = vector.shape_cast %232 : vector<2x8xf32> to vector<2x8x1xf32>
    %234 = tpu.reciprocal %233 {approx = true} : vector<2x8x1xf32> -> vector<2x8x1xf32>
    %235 = vector.broadcast %234 : vector<2x8x1xf32> to vector<2x8x8xf32>
    %236 = arith.mulf %231, %235 : vector<2x8x8xf32>
    %237 = arith.truncf %236 : vector<2x8x8xf32> to vector<2x8x8xbf16>
    "tpu.trace_start"() <{level = 10 : i32, message = "bqk,bkd->bqd"}> : () -> ()
    %cst_58 = arith.constant dense<0.000000e+00> : vector<2x8x8xf32>
    %238 = tpu.matmul %237, %223, %cst_58 {dimension_numbers = #tpu.dot_dimension_numbers<[2], [1], [1], [2], [0, 0, 0, 1, 1, 2], [0], [0]>} : vector<2x8x8xbf16>, vector<2x8x8xbf16>, vector<2x8x8xf32> -> vector<2x8x8xf32>
    "tpu.trace_stop"() : () -> ()
    %239 = vector.shape_cast %238 : vector<2x8x8xf32> to vector<16x8xf32>
    %240 = vector.extract_strided_slice %216 {offsets = [0, 0], sizes = [8, 32], strides = [1, 1]} : vector<40x32xbf16> to vector<8x32xbf16>
    %241 = arith.truncf %239 : vector<16x8xf32> to vector<16x8xbf16>
    %cst_59 = arith.constant dense<0.000000e+00> : vector<16x32xf32>
    %242 = tpu.matmul %241, %240, %cst_59 {dimension_numbers = #tpu.dot_dimension_numbers<[1], [0], [0], [1], [0, 0, 1, 1], [], []>} : vector<16x8xbf16>, vector<8x32xbf16>, vector<16x32xf32> -> vector<16x32xf32>
    %243 = arith.addf %217, %242 : vector<16x32xf32>
    %244 = vector.extract_strided_slice %210 {offsets = [0, 0, 8], sizes = [2, 8, 8], strides = [1, 1, 1]} : vector<2x8x32xf32> to vector<2x8x8xf32>
    %245 = arith.truncf %244 : vector<2x8x8xf32> to vector<2x8x8xbf16>
    %246 = vector.extract_strided_slice %212 {offsets = [0, 0, 8], sizes = [2, 8, 8], strides = [1, 1, 1]} : vector<2x8x32xf32> to vector<2x8x8xf32>
    %247 = arith.truncf %246 : vector<2x8x8xf32> to vector<2x8x8xbf16>
    %248 = vector.extract_strided_slice %214 {offsets = [0, 0, 8], sizes = [2, 8, 8], strides = [1, 1, 1]} : vector<2x8x32xf32> to vector<2x8x8xf32>
    %249 = arith.truncf %248 : vector<2x8x8xf32> to vector<2x8x8xbf16>
    "tpu.trace_start"() <{level = 10 : i32, message = "bqd,bkd->bqk"}> : () -> ()
    %cst_60 = arith.constant dense<0.000000e+00> : vector<2x8x8xf32>
    %250 = tpu.matmul %245, %247, %cst_60 {dimension_numbers = #tpu.dot_dimension_numbers<[2], [2], [1], [1], [0, 0, 0, 1, 1, 1], [0], [0]>} : vector<2x8x8xbf16>, vector<2x8x8xbf16>, vector<2x8x8xf32> -> vector<2x8x8xf32>
    "tpu.trace_stop"() : () -> ()
    %cst_61 = arith.constant 0.353553385 : f32
    %251 = vector.broadcast %cst_61 : f32 to vector<2x8x8xf32>
    %252 = arith.mulf %250, %251 : vector<2x8x8xf32>
    %cst_62 = arith.constant dense<0xFF800000> : vector<2x8xf32>
    %253 = vector.multi_reduction <maximumf>, %252, %cst_62 [2] : vector<2x8x8xf32> to vector<2x8xf32>
    %254 = vector.shape_cast %253 : vector<2x8xf32> to vector<2x8x1xf32>
    %255 = vector.broadcast %254 : vector<2x8x1xf32> to vector<2x8x8xf32>
    %256 = arith.subf %252, %255 : vector<2x8x8xf32>
    %257 = math.exp %256 : vector<2x8x8xf32>
    %cst_63 = arith.constant dense<0.000000e+00> : vector<2x8xf32>
    %258 = vector.multi_reduction <add>, %257, %cst_63 [2] : vector<2x8x8xf32> to vector<2x8xf32>
    %259 = vector.shape_cast %258 : vector<2x8xf32> to vector<2x8x1xf32>
    %260 = tpu.reciprocal %259 {approx = true} : vector<2x8x1xf32> -> vector<2x8x1xf32>
    %261 = vector.broadcast %260 : vector<2x8x1xf32> to vector<2x8x8xf32>
    %262 = arith.mulf %257, %261 : vector<2x8x8xf32>
    %263 = arith.truncf %262 : vector<2x8x8xf32> to vector<2x8x8xbf16>
    "tpu.trace_start"() <{level = 10 : i32, message = "bqk,bkd->bqd"}> : () -> ()
    %cst_64 = arith.constant dense<0.000000e+00> : vector<2x8x8xf32>
    %264 = tpu.matmul %263, %249, %cst_64 {dimension_numbers = #tpu.dot_dimension_numbers<[2], [1], [1], [2], [0, 0, 0, 1, 1, 2], [0], [0]>} : vector<2x8x8xbf16>, vector<2x8x8xbf16>, vector<2x8x8xf32> -> vector<2x8x8xf32>
    "tpu.trace_stop"() : () -> ()
    %265 = vector.shape_cast %264 : vector<2x8x8xf32> to vector<16x8xf32>
    %266 = vector.extract_strided_slice %216 {offsets = [8, 0], sizes = [8, 32], strides = [1, 1]} : vector<40x32xbf16> to vector<8x32xbf16>
    %267 = arith.truncf %265 : vector<16x8xf32> to vector<16x8xbf16>
    %cst_65 = arith.constant dense<0.000000e+00> : vector<16x32xf32>
    %268 = tpu.matmul %267, %266, %cst_65 {dimension_numbers = #tpu.dot_dimension_numbers<[1], [0], [0], [1], [0, 0, 1, 1], [], []>} : vector<16x8xbf16>, vector<8x32xbf16>, vector<16x32xf32> -> vector<16x32xf32>
    %269 = arith.addf %243, %268 : vector<16x32xf32>
    %270 = vector.extract_strided_slice %210 {offsets = [0, 0, 16], sizes = [2, 8, 8], strides = [1, 1, 1]} : vector<2x8x32xf32> to vector<2x8x8xf32>
    %271 = arith.truncf %270 : vector<2x8x8xf32> to vector<2x8x8xbf16>
    %272 = vector.extract_strided_slice %212 {offsets = [0, 0, 16], sizes = [2, 8, 8], strides = [1, 1, 1]} : vector<2x8x32xf32> to vector<2x8x8xf32>
    %273 = arith.truncf %272 : vector<2x8x8xf32> to vector<2x8x8xbf16>
    %274 = vector.extract_strided_slice %214 {offsets = [0, 0, 16], sizes = [2, 8, 8], strides = [1, 1, 1]} : vector<2x8x32xf32> to vector<2x8x8xf32>
    %275 = arith.truncf %274 : vector<2x8x8xf32> to vector<2x8x8xbf16>
    "tpu.trace_start"() <{level = 10 : i32, message = "bqd,bkd->bqk"}> : () -> ()
    %cst_66 = arith.constant dense<0.000000e+00> : vector<2x8x8xf32>
    %276 = tpu.matmul %271, %273, %cst_66 {dimension_numbers = #tpu.dot_dimension_numbers<[2], [2], [1], [1], [0, 0, 0, 1, 1, 1], [0], [0]>} : vector<2x8x8xbf16>, vector<2x8x8xbf16>, vector<2x8x8xf32> -> vector<2x8x8xf32>
    "tpu.trace_stop"() : () -> ()
    %cst_67 = arith.constant 0.353553385 : f32
    %277 = vector.broadcast %cst_67 : f32 to vector<2x8x8xf32>
    %278 = arith.mulf %276, %277 : vector<2x8x8xf32>
    %cst_68 = arith.constant dense<0xFF800000> : vector<2x8xf32>
    %279 = vector.multi_reduction <maximumf>, %278, %cst_68 [2] : vector<2x8x8xf32> to vector<2x8xf32>
    %280 = vector.shape_cast %279 : vector<2x8xf32> to vector<2x8x1xf32>
    %281 = vector.broadcast %280 : vector<2x8x1xf32> to vector<2x8x8xf32>
    %282 = arith.subf %278, %281 : vector<2x8x8xf32>
    %283 = math.exp %282 : vector<2x8x8xf32>
    %cst_69 = arith.constant dense<0.000000e+00> : vector<2x8xf32>
    %284 = vector.multi_reduction <add>, %283, %cst_69 [2] : vector<2x8x8xf32> to vector<2x8xf32>
    %285 = vector.shape_cast %284 : vector<2x8xf32> to vector<2x8x1xf32>
    %286 = tpu.reciprocal %285 {approx = true} : vector<2x8x1xf32> -> vector<2x8x1xf32>
    %287 = vector.broadcast %286 : vector<2x8x1xf32> to vector<2x8x8xf32>
    %288 = arith.mulf %283, %287 : vector<2x8x8xf32>
    %289 = arith.truncf %288 : vector<2x8x8xf32> to vector<2x8x8xbf16>
    "tpu.trace_start"() <{level = 10 : i32, message = "bqk,bkd->bqd"}> : () -> ()
    %cst_70 = arith.constant dense<0.000000e+00> : vector<2x8x8xf32>
    %290 = tpu.matmul %289, %275, %cst_70 {dimension_numbers = #tpu.dot_dimension_numbers<[2], [1], [1], [2], [0, 0, 0, 1, 1, 2], [0], [0]>} : vector<2x8x8xbf16>, vector<2x8x8xbf16>, vector<2x8x8xf32> -> vector<2x8x8xf32>
    "tpu.trace_stop"() : () -> ()
    %291 = vector.shape_cast %290 : vector<2x8x8xf32> to vector<16x8xf32>
    %292 = vector.extract_strided_slice %216 {offsets = [16, 0], sizes = [8, 32], strides = [1, 1]} : vector<40x32xbf16> to vector<8x32xbf16>
    %293 = arith.truncf %291 : vector<16x8xf32> to vector<16x8xbf16>
    %cst_71 = arith.constant dense<0.000000e+00> : vector<16x32xf32>
    %294 = tpu.matmul %293, %292, %cst_71 {dimension_numbers = #tpu.dot_dimension_numbers<[1], [0], [0], [1], [0, 0, 1, 1], [], []>} : vector<16x8xbf16>, vector<8x32xbf16>, vector<16x32xf32> -> vector<16x32xf32>
    %295 = arith.addf %269, %294 : vector<16x32xf32>
    %296 = vector.extract_strided_slice %210 {offsets = [0, 0, 24], sizes = [2, 8, 8], strides = [1, 1, 1]} : vector<2x8x32xf32> to vector<2x8x8xf32>
    %297 = arith.truncf %296 : vector<2x8x8xf32> to vector<2x8x8xbf16>
    %298 = vector.extract_strided_slice %212 {offsets = [0, 0, 24], sizes = [2, 8, 8], strides = [1, 1, 1]} : vector<2x8x32xf32> to vector<2x8x8xf32>
    %299 = arith.truncf %298 : vector<2x8x8xf32> to vector<2x8x8xbf16>
    %300 = vector.extract_strided_slice %214 {offsets = [0, 0, 24], sizes = [2, 8, 8], strides = [1, 1, 1]} : vector<2x8x32xf32> to vector<2x8x8xf32>
    %301 = arith.truncf %300 : vector<2x8x8xf32> to vector<2x8x8xbf16>
    "tpu.trace_start"() <{level = 10 : i32, message = "bqd,bkd->bqk"}> : () -> ()
    %cst_72 = arith.constant dense<0.000000e+00> : vector<2x8x8xf32>
    %302 = tpu.matmul %297, %299, %cst_72 {dimension_numbers = #tpu.dot_dimension_numbers<[2], [2], [1], [1], [0, 0, 0, 1, 1, 1], [0], [0]>} : vector<2x8x8xbf16>, vector<2x8x8xbf16>, vector<2x8x8xf32> -> vector<2x8x8xf32>
    "tpu.trace_stop"() : () -> ()
    %cst_73 = arith.constant 0.353553385 : f32
    %303 = vector.broadcast %cst_73 : f32 to vector<2x8x8xf32>
    %304 = arith.mulf %302, %303 : vector<2x8x8xf32>
    %cst_74 = arith.constant dense<0xFF800000> : vector<2x8xf32>
    %305 = vector.multi_reduction <maximumf>, %304, %cst_74 [2] : vector<2x8x8xf32> to vector<2x8xf32>
    %306 = vector.shape_cast %305 : vector<2x8xf32> to vector<2x8x1xf32>
    %307 = vector.broadcast %306 : vector<2x8x1xf32> to vector<2x8x8xf32>
    %308 = arith.subf %304, %307 : vector<2x8x8xf32>
    %309 = math.exp %308 : vector<2x8x8xf32>
    %cst_75 = arith.constant dense<0.000000e+00> : vector<2x8xf32>
    %310 = vector.multi_reduction <add>, %309, %cst_75 [2] : vector<2x8x8xf32> to vector<2x8xf32>
    %311 = vector.shape_cast %310 : vector<2x8xf32> to vector<2x8x1xf32>
    %312 = tpu.reciprocal %311 {approx = true} : vector<2x8x1xf32> -> vector<2x8x1xf32>
    %313 = vector.broadcast %312 : vector<2x8x1xf32> to vector<2x8x8xf32>
    %314 = arith.mulf %309, %313 : vector<2x8x8xf32>
    %315 = arith.truncf %314 : vector<2x8x8xf32> to vector<2x8x8xbf16>
    "tpu.trace_start"() <{level = 10 : i32, message = "bqk,bkd->bqd"}> : () -> ()
    %cst_76 = arith.constant dense<0.000000e+00> : vector<2x8x8xf32>
    %316 = tpu.matmul %315, %301, %cst_76 {dimension_numbers = #tpu.dot_dimension_numbers<[2], [1], [1], [2], [0, 0, 0, 1, 1, 2], [0], [0]>} : vector<2x8x8xbf16>, vector<2x8x8xbf16>, vector<2x8x8xf32> -> vector<2x8x8xf32>
    "tpu.trace_stop"() : () -> ()
    %317 = vector.shape_cast %316 : vector<2x8x8xf32> to vector<16x8xf32>
    %318 = vector.extract_strided_slice %216 {offsets = [24, 0], sizes = [8, 32], strides = [1, 1]} : vector<40x32xbf16> to vector<8x32xbf16>
    %319 = arith.truncf %317 : vector<16x8xf32> to vector<16x8xbf16>
    %cst_77 = arith.constant dense<0.000000e+00> : vector<16x32xf32>
    %320 = tpu.matmul %319, %318, %cst_77 {dimension_numbers = #tpu.dot_dimension_numbers<[1], [0], [0], [1], [0, 0, 1, 1], [], []>} : vector<16x8xbf16>, vector<8x32xbf16>, vector<16x32xf32> -> vector<16x32xf32>
    %321 = arith.addf %295, %320 : vector<16x32xf32>
    %322 = vector.extract_strided_slice %216 {offsets = [32, 0], sizes = [1, 32], strides = [1, 1]} : vector<40x32xbf16> to vector<1x32xbf16>
    %323 = arith.extf %322 : vector<1x32xbf16> to vector<1x32xf32>
    %324 = vector.broadcast %323 : vector<1x32xf32> to vector<16x32xf32>
    %325 = arith.addf %321, %324 : vector<16x32xf32>
    %c0_78 = arith.constant 0 : index
    %c0_79 = arith.constant 0 : index
    %c0_80 = arith.constant 0 : index
    %326 = vector.load %arg13[%c0_78, %c0_79, %c0_80] : memref<1x96x32xbf16, #tpu.memory_space<vmem>>, vector<1x96x32xbf16>
    %327 = vector.shape_cast %326 : vector<1x96x32xbf16> to vector<96x32xbf16>
    %328 = vector.extract_strided_slice %327 {offsets = [80, 0], sizes = [1, 32], strides = [1, 1]} : vector<96x32xbf16> to vector<1x32xbf16>
    %329 = vector.extract_strided_slice %327 {offsets = [88, 0], sizes = [1, 32], strides = [1, 1]} : vector<96x32xbf16> to vector<1x32xbf16>
    %330 = arith.addf %199, %325 : vector<16x32xf32>
    %cst_81 = arith.constant dense<0.000000e+00> : vector<16xf32>
    %331 = vector.multi_reduction <add>, %330, %cst_81 [1] : vector<16x32xf32> to vector<16xf32>
    %332 = vector.shape_cast %331 : vector<16xf32> to vector<16x1xf32>
    %cst_82 = arith.constant 3.200000e+01 : f32
    %333 = vector.broadcast %cst_82 : f32 to vector<16x1xf32>
    %334 = arith.divf %332, %333 : vector<16x1xf32>
    %335 = vector.broadcast %334 : vector<16x1xf32> to vector<16x32xf32>
    %336 = arith.subf %330, %335 : vector<16x32xf32>
    %337 = arith.mulf %336, %336 : vector<16x32xf32>
    %cst_83 = arith.constant dense<0.000000e+00> : vector<16xf32>
    %338 = vector.multi_reduction <add>, %337, %cst_83 [1] : vector<16x32xf32> to vector<16xf32>
    %339 = vector.shape_cast %338 : vector<16xf32> to vector<16x1xf32>
    %cst_84 = arith.constant 3.200000e+01 : f32
    %340 = vector.broadcast %cst_84 : f32 to vector<16x1xf32>
    %341 = arith.divf %339, %340 : vector<16x1xf32>
    %cst_85 = arith.constant 9.99999974E-6 : f32
    %342 = vector.broadcast %cst_85 : f32 to vector<16x1xf32>
    %343 = arith.addf %341, %342 : vector<16x1xf32>
    %344 = math.rsqrt %343 : vector<16x1xf32>
    %345 = vector.broadcast %344 : vector<16x1xf32> to vector<16x32xf32>
    %346 = arith.mulf %336, %345 : vector<16x32xf32>
    %347 = arith.extf %328 : vector<1x32xbf16> to vector<1x32xf32>
    %348 = vector.broadcast %347 : vector<1x32xf32> to vector<16x32xf32>
    %349 = arith.mulf %346, %348 : vector<16x32xf32>
    %350 = arith.extf %329 : vector<1x32xbf16> to vector<1x32xf32>
    %351 = vector.broadcast %350 : vector<1x32xf32> to vector<16x32xf32>
    %352 = arith.addf %349, %351 : vector<16x32xf32>
    %353 = vector.extract_strided_slice %327 {offsets = [0, 0], sizes = [32, 32], strides = [1, 1]} : vector<96x32xbf16> to vector<32x32xbf16>
    %354 = arith.truncf %352 : vector<16x32xf32> to vector<16x32xbf16>
    %cst_86 = arith.constant dense<0.000000e+00> : vector<16x32xf32>
    %355 = tpu.matmul %354, %353, %cst_86 {dimension_numbers = #tpu.dot_dimension_numbers<[1], [0], [0], [1], [0, 0, 1, 1], [], []>} : vector<16x32xbf16>, vector<32x32xbf16>, vector<16x32xf32> -> vector<16x32xf32>
    %356 = vector.extract_strided_slice %327 {offsets = [32, 0], sizes = [1, 32], strides = [1, 1]} : vector<96x32xbf16> to vector<1x32xbf16>
    %357 = arith.extf %356 : vector<1x32xbf16> to vector<1x32xf32>
    %358 = vector.broadcast %357 : vector<1x32xf32> to vector<16x32xf32>
    %359 = arith.addf %355, %358 : vector<16x32xf32>
    %cst_87 = arith.constant 0.000000e+00 : f32
    %360 = vector.broadcast %cst_87 : f32 to vector<16x32xf32>
    %361 = arith.maximumf %359, %360 : vector<16x32xf32>
    %362 = vector.extract_strided_slice %327 {offsets = [40, 0], sizes = [32, 32], strides = [1, 1]} : vector<96x32xbf16> to vector<32x32xbf16>
    %363 = arith.truncf %361 : vector<16x32xf32> to vector<16x32xbf16>
    %cst_88 = arith.constant dense<0.000000e+00> : vector<16x32xf32>
    %364 = tpu.matmul %363, %362, %cst_88 {dimension_numbers = #tpu.dot_dimension_numbers<[1], [0], [0], [1], [0, 0, 1, 1], [], []>} : vector<16x32xbf16>, vector<32x32xbf16>, vector<16x32xf32> -> vector<16x32xf32>
    %365 = vector.extract_strided_slice %327 {offsets = [72, 0], sizes = [1, 32], strides = [1, 1]} : vector<96x32xbf16> to vector<1x32xbf16>
    %366 = arith.extf %365 : vector<1x32xbf16> to vector<1x32xf32>
    %367 = vector.broadcast %366 : vector<1x32xf32> to vector<16x32xf32>
    %368 = arith.addf %364, %367 : vector<16x32xf32>
    %369 = arith.addf %352, %368 : vector<16x32xf32>
    %cst_89 = arith.constant dense<0.000000e+00> : vector<16xf32>
    %370 = vector.multi_reduction <add>, %369, %cst_89 [1] : vector<16x32xf32> to vector<16xf32>
    %371 = vector.shape_cast %370 : vector<16xf32> to vector<16x1xf32>
    %cst_90 = arith.constant 3.200000e+01 : f32
    %372 = vector.broadcast %cst_90 : f32 to vector<16x1xf32>
    %373 = arith.divf %371, %372 : vector<16x1xf32>
    %374 = vector.broadcast %373 : vector<16x1xf32> to vector<16x32xf32>
    %375 = arith.subf %369, %374 : vector<16x32xf32>
    %376 = arith.mulf %375, %375 : vector<16x32xf32>
    %cst_91 = arith.constant dense<0.000000e+00> : vector<16xf32>
    %377 = vector.multi_reduction <add>, %376, %cst_91 [1] : vector<16x32xf32> to vector<16xf32>
    %378 = vector.shape_cast %377 : vector<16xf32> to vector<16x1xf32>
    %cst_92 = arith.constant 3.200000e+01 : f32
    %379 = vector.broadcast %cst_92 : f32 to vector<16x1xf32>
    %380 = arith.divf %378, %379 : vector<16x1xf32>
    %cst_93 = arith.constant 9.99999974E-6 : f32
    %381 = vector.broadcast %cst_93 : f32 to vector<16x1xf32>
    %382 = arith.addf %380, %381 : vector<16x1xf32>
    %383 = math.rsqrt %382 : vector<16x1xf32>
    %384 = vector.broadcast %383 : vector<16x1xf32> to vector<16x32xf32>
    %385 = arith.mulf %375, %384 : vector<16x32xf32>
    %386 = arith.extf %328 : vector<1x32xbf16> to vector<1x32xf32>
    %387 = vector.broadcast %386 : vector<1x32xf32> to vector<16x32xf32>
    %388 = arith.mulf %385, %387 : vector<16x32xf32>
    %389 = arith.extf %329 : vector<1x32xbf16> to vector<1x32xf32>
    %390 = vector.broadcast %389 : vector<1x32xf32> to vector<16x32xf32>
    %391 = arith.addf %388, %390 : vector<16x32xf32>
    %c0_94 = arith.constant 0 : index
    %c0_95 = arith.constant 0 : index
    %c0_96 = arith.constant 0 : index
    %392 = vector.load %arg17[%c0_94, %c0_95, %c0_96] : memref<1x16x32xf32, #tpu.memory_space<vmem>>, vector<1x16x32xf32>
    %393 = vector.shape_cast %392 : vector<1x16x32xf32> to vector<16x32xf32>
    %394 = vector.shape_cast %391 : vector<16x32xf32> to vector<1x16x32xf32>
    tpu.vector_store %arg17[%c0_94, %c0_95, %c0_96], %394 {strides = array<i32>} : memref<1x16x32xf32, #tpu.memory_space<vmem>>, vector<1x16x32xf32>,
    %c0_97 = arith.constant 0 : index
    %c0_98 = arith.constant 0 : index
    %c0_99 = arith.constant 0 : index
    %395 = vector.load %arg14[%c0_97, %c0_98, %c0_99] : memref<1x88x32xbf16, #tpu.memory_space<vmem>>, vector<1x88x32xbf16>
    %396 = vector.shape_cast %395 : vector<1x88x32xbf16> to vector<88x32xbf16>
    %c0_100 = arith.constant 0 : index
    %c0_101 = arith.constant 0 : index
    %397 = vector.load %arg6[%c0_100, %c0_101] : memref<2x6xf32, #tpu.memory_space<vmem>>, vector<2x6xf32>
    %398 = vector.extract_strided_slice %396 {offsets = [0, 0], sizes = [6, 32], strides = [1, 1]} : vector<88x32xbf16> to vector<6x32xbf16>
    %399 = arith.truncf %397 : vector<2x6xf32> to vector<2x6xbf16>
    %cst_102 = arith.constant dense<0.000000e+00> : vector<2x32xf32>
    %400 = tpu.matmul %399, %398, %cst_102 {dimension_numbers = #tpu.dot_dimension_numbers<[1], [0], [0], [1], [0, 0, 1, 1], [], []>} : vector<2x6xbf16>, vector<6x32xbf16>, vector<2x32xf32> -> vector<2x32xf32>
    %401 = vector.extract_strided_slice %396 {offsets = [8, 0], sizes = [1, 32], strides = [1, 1]} : vector<88x32xbf16> to vector<1x32xbf16>
    %402 = arith.extf %401 : vector<1x32xbf16> to vector<1x32xf32>
    %403 = vector.broadcast %402 : vector<1x32xf32> to vector<2x32xf32>
    %404 = arith.addf %400, %403 : vector<2x32xf32>
    %405 = vector.extract_strided_slice %396 {offsets = [16, 0], sizes = [32, 32], strides = [1, 1]} : vector<88x32xbf16> to vector<32x32xbf16>
    %406 = arith.truncf %404 : vector<2x32xf32> to vector<2x32xbf16>
    %cst_103 = arith.constant dense<0.000000e+00> : vector<2x32xf32>
    %407 = tpu.matmul %406, %405, %cst_103 {dimension_numbers = #tpu.dot_dimension_numbers<[1], [0], [0], [1], [0, 0, 1, 1], [], []>} : vector<2x32xbf16>, vector<32x32xbf16>, vector<2x32xf32> -> vector<2x32xf32>
    %c0_104 = arith.constant 0 : index
    %c0_105 = arith.constant 0 : index
    %408 = vector.load %arg7[%c0_104, %c0_105] : memref<2x32xf32, #tpu.memory_space<vmem>>, vector<2x32xf32>
    %409 = vector.extract_strided_slice %396 {offsets = [48, 0], sizes = [32, 32], strides = [1, 1]} : vector<88x32xbf16> to vector<32x32xbf16>
    %410 = arith.truncf %408 : vector<2x32xf32> to vector<2x32xbf16>
    %cst_106 = arith.constant dense<0.000000e+00> : vector<2x32xf32>
    %411 = tpu.matmul %410, %409, %cst_106 {dimension_numbers = #tpu.dot_dimension_numbers<[1], [0], [0], [1], [0, 0, 1, 1], [], []>} : vector<2x32xbf16>, vector<32x32xbf16>, vector<2x32xf32> -> vector<2x32xf32>
    %412 = arith.addf %407, %411 : vector<2x32xf32>
    %413 = vector.extract_strided_slice %396 {offsets = [80, 0], sizes = [1, 32], strides = [1, 1]} : vector<88x32xbf16> to vector<1x32xbf16>
    %414 = arith.extf %413 : vector<1x32xbf16> to vector<1x32xf32>
    %415 = vector.broadcast %414 : vector<1x32xf32> to vector<2x32xf32>
    %416 = arith.addf %412, %415 : vector<2x32xf32>
    %cst_107 = arith.constant 0.000000e+00 : f32
    %417 = vector.broadcast %cst_107 : f32 to vector<2x32xf32>
    %418 = arith.maximumf %416, %417 : vector<2x32xf32>
    %c0_108 = arith.constant 0 : index
    %c0_109 = arith.constant 0 : index
    %c0_110 = arith.constant 0 : index
    %419 = vector.load %arg15[%c0_108, %c0_109, %c0_110] : memref<1x72x128xbf16, #tpu.memory_space<vmem>>, vector<1x72x128xbf16>
    %420 = vector.shape_cast %419 : vector<1x72x128xbf16> to vector<72x128xbf16>
    %421 = vector.extract_strided_slice %420 {offsets = [0, 0], sizes = [32, 128], strides = [1, 1]} : vector<72x128xbf16> to vector<32x128xbf16>
    %422 = arith.truncf %418 : vector<2x32xf32> to vector<2x32xbf16>
    %cst_111 = arith.constant dense<0.000000e+00> : vector<2x128xf32>
    %423 = tpu.matmul %422, %421, %cst_111 {dimension_numbers = #tpu.dot_dimension_numbers<[1], [0], [0], [1], [0, 0, 1, 1], [], []>} : vector<2x32xbf16>, vector<32x128xbf16>, vector<2x128xf32> -> vector<2x128xf32>
    %424 = vector.extract_strided_slice %420 {offsets = [64, 0], sizes = [1, 128], strides = [1, 1]} : vector<72x128xbf16> to vector<1x128xbf16>
    %425 = arith.extf %424 : vector<1x128xbf16> to vector<1x128xf32>
    %426 = vector.broadcast %425 : vector<1x128xf32> to vector<2x128xf32>
    %427 = arith.addf %423, %426 : vector<2x128xf32>
    %428 = vector.extract_strided_slice %427 {offsets = [0, 0], sizes = [2, 32], strides = [1, 1]} : vector<2x128xf32> to vector<2x32xf32>
    %429 = arith.negf %428 : vector<2x32xf32>
    %430 = math.exp %429 : vector<2x32xf32>
    %cst_112 = arith.constant 1.000000e+00 : f32
    %431 = vector.broadcast %cst_112 : f32 to vector<2x32xf32>
    %432 = arith.addf %431, %430 : vector<2x32xf32>
    %433 = arith.divf %431, %432 : vector<2x32xf32>
    %434 = vector.extract_strided_slice %427 {offsets = [0, 64], sizes = [2, 32], strides = [1, 1]} : vector<2x128xf32> to vector<2x32xf32>
    %435 = math.tanh %434 : vector<2x32xf32>
    %436 = vector.extract_strided_slice %427 {offsets = [0, 96], sizes = [2, 32], strides = [1, 1]} : vector<2x128xf32> to vector<2x32xf32>
    %437 = arith.negf %436 : vector<2x32xf32>
    %438 = math.exp %437 : vector<2x32xf32>
    %cst_113 = arith.constant 1.000000e+00 : f32
    %439 = vector.broadcast %cst_113 : f32 to vector<2x32xf32>
    %440 = arith.addf %439, %438 : vector<2x32xf32>
    %441 = arith.divf %439, %440 : vector<2x32xf32>
    %442 = arith.mulf %433, %435 : vector<2x32xf32>
    %443 = math.tanh %442 : vector<2x32xf32>
    %444 = arith.mulf %441, %443 : vector<2x32xf32>
    %c0_114 = arith.constant 0 : index
    %c0_115 = arith.constant 0 : index
    %c0_116 = arith.constant 0 : index
    %445 = vector.load %arg19[%c0_114, %c0_115, %c0_116] : memref<1x2x32xf32, #tpu.memory_space<vmem>>, vector<1x2x32xf32>
    %446 = vector.shape_cast %445 : vector<1x2x32xf32> to vector<2x32xf32>
    %447 = vector.shape_cast %444 : vector<2x32xf32> to vector<1x2x32xf32>
    tpu.vector_store %arg19[%c0_114, %c0_115, %c0_116], %447 {strides = array<i32>} : memref<1x2x32xf32, #tpu.memory_space<vmem>>, vector<1x2x32xf32>,
    %c0_117 = arith.constant 0 : index
    %c0_118 = arith.constant 0 : index
    %c0_119 = arith.constant 0 : index
    %448 = vector.load %arg20[%c0_117, %c0_118, %c0_119] : memref<1x2x32xf32, #tpu.memory_space<vmem>>, vector<1x2x32xf32>
    %449 = vector.shape_cast %448 : vector<1x2x32xf32> to vector<2x32xf32>
    %450 = vector.shape_cast %442 : vector<2x32xf32> to vector<1x2x32xf32>
    tpu.vector_store %arg20[%c0_117, %c0_118, %c0_119], %450 {strides = array<i32>} : memref<1x2x32xf32, #tpu.memory_space<vmem>>, vector<1x2x32xf32>,
    %c0_120 = arith.constant 0 : index
    %c0_121 = arith.constant 0 : index
    %c0_122 = arith.constant 0 : index
    %451 = vector.load %arg16[%c0_120, %c0_121, %c0_122] : memref<1x88x32xbf16, #tpu.memory_space<vmem>>, vector<1x88x32xbf16>
    %452 = vector.shape_cast %451 : vector<1x88x32xbf16> to vector<88x32xbf16>
    %453 = vector.extract_strided_slice %452 {offsets = [0, 0], sizes = [32, 32], strides = [1, 1]} : vector<88x32xbf16> to vector<32x32xbf16>
    %454 = arith.truncf %444 : vector<2x32xf32> to vector<2x32xbf16>
    %cst_123 = arith.constant dense<0.000000e+00> : vector<2x32xf32>
    %455 = tpu.matmul %454, %453, %cst_123 {dimension_numbers = #tpu.dot_dimension_numbers<[1], [0], [0], [1], [0, 0, 1, 1], [], []>} : vector<2x32xbf16>, vector<32x32xbf16>, vector<2x32xf32> -> vector<2x32xf32>
    %456 = vector.extract_strided_slice %452 {offsets = [32, 0], sizes = [1, 32], strides = [1, 1]} : vector<88x32xbf16> to vector<1x32xbf16>
    %457 = arith.extf %456 : vector<1x32xbf16> to vector<1x32xf32>
    %458 = vector.broadcast %457 : vector<1x32xf32> to vector<2x32xf32>
    %459 = arith.addf %455, %458 : vector<2x32xf32>
    %460 = vector.extract_strided_slice %452 {offsets = [40, 0], sizes = [32, 32], strides = [1, 1]} : vector<88x32xbf16> to vector<32x32xbf16>
    %461 = arith.truncf %391 : vector<16x32xf32> to vector<16x32xbf16>
    %cst_124 = arith.constant dense<0.000000e+00> : vector<16x32xf32>
    %462 = tpu.matmul %461, %460, %cst_124 {dimension_numbers = #tpu.dot_dimension_numbers<[1], [0], [0], [1], [0, 0, 1, 1], [], []>} : vector<16x32xbf16>, vector<32x32xbf16>, vector<16x32xf32> -> vector<16x32xf32>
    %463 = vector.extract_strided_slice %452 {offsets = [72, 0], sizes = [1, 32], strides = [1, 1]} : vector<88x32xbf16> to vector<1x32xbf16>
    %464 = arith.extf %463 : vector<1x32xbf16> to vector<1x32xf32>
    %465 = vector.broadcast %464 : vector<1x32xf32> to vector<16x32xf32>
    %466 = arith.addf %462, %465 : vector<16x32xf32>
    %467 = vector.shape_cast %466 : vector<16x32xf32> to vector<2x8x32xf32>
    %468 = vector.extract_strided_slice %452 {offsets = [80, 0], sizes = [1, 32], strides = [1, 1]} : vector<88x32xbf16> to vector<1x32xbf16>
    %469 = vector.shape_cast %468 : vector<1x32xbf16> to vector<1x1x32xbf16>
    %470 = vector.shape_cast %459 : vector<2x32xf32> to vector<2x1x32xf32>
    %471 = vector.broadcast %470 : vector<2x1x32xf32> to vector<2x8x32xf32>
    %472 = arith.addf %471, %467 : vector<2x8x32xf32>
    %473 = math.tanh %472 : vector<2x8x32xf32>
    %474 = arith.extf %469 : vector<1x1x32xbf16> to vector<1x1x32xf32>
    %475 = vector.broadcast %474 : vector<1x1x32xf32> to vector<2x8x32xf32>
    %476 = arith.mulf %473, %475 : vector<2x8x32xf32>
    %cst_125 = arith.constant dense<0.000000e+00> : vector<2x8xf32>
    %477 = vector.multi_reduction <add>, %476, %cst_125 [2] : vector<2x8x32xf32> to vector<2x8xf32>
    %c0_126 = arith.constant 0 : index
    %c0_127 = arith.constant 0 : index
    %c0_128 = arith.constant 0 : index
    %478 = vector.load %arg8[%c0_126, %c0_127, %c0_128] : memref<1x2x8xf32, #tpu.memory_space<vmem>>, vector<1x2x8xf32>
    %479 = vector.shape_cast %478 : vector<1x2x8xf32> to vector<2x8xf32>
    %cst_129 = arith.constant 5.000000e-01 : f32
    %480 = vector.broadcast %cst_129 : f32 to vector<2x8xf32>
    %481 = arith.cmpf ogt, %479, %480 : vector<2x8xf32>
    %cst_130 = arith.constant -1.000000e+30 : f32
    %482 = vector.broadcast %cst_130 : f32 to vector<2x8xf32>
    %483 = arith.select %481, %482, %477 : vector<2x8xi1>, vector<2x8xf32>
    %cst_131 = arith.constant dense<0xFF800000> : vector<2xf32>
    %484 = vector.multi_reduction <maximumf>, %483, %cst_131 [1] : vector<2x8xf32> to vector<2xf32>
    %485 = vector.shape_cast %484 : vector<2xf32> to vector<2x1xf32>
    %486 = vector.broadcast %485 : vector<2x1xf32> to vector<2x8xf32>
    %487 = arith.subf %483, %486 : vector<2x8xf32>
    %488 = math.exp %487 : vector<2x8xf32>
    %cst_132 = arith.constant dense<0.000000e+00> : vector<2xf32>
    %489 = vector.multi_reduction <add>, %488, %cst_132 [1] : vector<2x8xf32> to vector<2xf32>
    %490 = vector.shape_cast %489 : vector<2xf32> to vector<2x1xf32>
    %491 = vector.broadcast %490 : vector<2x1xf32> to vector<2x8xf32>
    %492 = arith.divf %488, %491 : vector<2x8xf32>
    %c0_133 = arith.constant 0 : index
    %c0_134 = arith.constant 0 : index
    %c0_135 = arith.constant 0 : index
    %493 = vector.load %arg18[%c0_133, %c0_134, %c0_135] : memref<1x2x8xf32, #tpu.memory_space<vmem>>, vector<1x2x8xf32>
    %494 = vector.shape_cast %493 : vector<1x2x8xf32> to vector<2x8xf32>
    %495 = vector.shape_cast %492 : vector<2x8xf32> to vector<1x2x8xf32>
    tpu.vector_store %arg18[%c0_133, %c0_134, %c0_135], %495 {strides = array<i32>} : memref<1x2x8xf32, #tpu.memory_space<vmem>>, vector<1x2x8xf32>,
    return
  }
  func.func @transform_0(%arg0: i32, %arg1: i32) -> (i32, i32) {
    %c0_i32 = arith.constant 0 : i32
    %c0_i32_0 = arith.constant 0 : i32
    return %arg1, %c0_i32 : i32, i32
  }
  func.func @transform_1(%arg0: i32, %arg1: i32) -> (i32, i32) {
    %c0_i32 = arith.constant 0 : i32
    %c0_i32_0 = arith.constant 0 : i32
    return %arg1, %c0_i32 : i32, i32
  }
  func.func @transform_2(%arg0: i32, %arg1: i32) -> (i32, i32, i32) {
    %c0_i32 = arith.constant 0 : i32
    %c0_i32_0 = arith.constant 0 : i32
    return %arg0, %arg1, %c0_i32 : i32, i32, i32
  }
  func.func @transform_3(%arg0: i32, %arg1: i32) -> (i32, i32, i32) {
    %c0_i32 = arith.constant 0 : i32
    %c0_i32_0 = arith.constant 0 : i32
    return %arg0, %arg1, %c0_i32 : i32, i32, i32
  }
  func.func @transform_4(%arg0: i32, %arg1: i32) -> (i32, i32) {
    %c0_i32 = arith.constant 0 : i32
    %c0_i32_0 = arith.constant 0 : i32
    return %arg1, %c0_i32 : i32, i32
  }
  func.func @transform_5(%arg0: i32, %arg1: i32) -> (i32, i32) {
    %c0_i32 = arith.constant 0 : i32
    %c0_i32_0 = arith.constant 0 : i32
    return %arg1, %c0_i32 : i32, i32
  }
  func.func @transform_6(%arg0: i32, %arg1: i32) -> (i32, i32, i32) {
    %c0_i32 = arith.constant 0 : i32
    %c0_i32_0 = arith.constant 0 : i32
    return %arg0, %arg1, %c0_i32 : i32, i32, i32
  }
  func.func @transform_7(%arg0: i32, %arg1: i32) -> (i32, i32, i32) {
    %c0_i32 = arith.constant 0 : i32
    %c0_i32_0 = arith.constant 0 : i32
    %c0_i32_1 = arith.constant 0 : i32
    return %arg0, %c0_i32, %c0_i32_0 : i32, i32, i32
  }
  func.func @transform_8(%arg0: i32, %arg1: i32) -> (i32, i32, i32) {
    %c0_i32 = arith.constant 0 : i32
    %c0_i32_0 = arith.constant 0 : i32
    %c0_i32_1 = arith.constant 0 : i32
    return %arg0, %c0_i32, %c0_i32_0 : i32, i32, i32
  }
  func.func @transform_9(%arg0: i32, %arg1: i32) -> (i32, i32, i32) {
    %c0_i32 = arith.constant 0 : i32
    %c0_i32_0 = arith.constant 0 : i32
    %c0_i32_1 = arith.constant 0 : i32
    return %arg0, %c0_i32, %c0_i32_0 : i32, i32, i32
  }
  func.func @transform_10(%arg0: i32, %arg1: i32) -> (i32, i32, i32) {
    %c0_i32 = arith.constant 0 : i32
    %c0_i32_0 = arith.constant 0 : i32
    %c0_i32_1 = arith.constant 0 : i32
    return %arg0, %c0_i32, %c0_i32_0 : i32, i32, i32
  }
  func.func @transform_11(%arg0: i32, %arg1: i32) -> (i32, i32, i32) {
    %c0_i32 = arith.constant 0 : i32
    %c0_i32_0 = arith.constant 0 : i32
    %c0_i32_1 = arith.constant 0 : i32
    return %arg0, %c0_i32, %c0_i32_0 : i32, i32, i32
  }
  func.func @transform_12(%arg0: i32, %arg1: i32) -> (i32, i32, i32) {
    %c0_i32 = arith.constant 0 : i32
    %c0_i32_0 = arith.constant 0 : i32
    %c0_i32_1 = arith.constant 0 : i32
    return %arg0, %c0_i32, %c0_i32_0 : i32, i32, i32
  }
  func.func @transform_13(%arg0: i32, %arg1: i32) -> (i32, i32, i32) {
    %c0_i32 = arith.constant 0 : i32
    %c0_i32_0 = arith.constant 0 : i32
    %c0_i32_1 = arith.constant 0 : i32
    return %arg0, %c0_i32, %c0_i32_0 : i32, i32, i32
  }
  func.func @transform_14(%arg0: i32, %arg1: i32) -> (i32, i32, i32) {
    %c0_i32 = arith.constant 0 : i32
    %c0_i32_0 = arith.constant 0 : i32
    %c0_i32_1 = arith.constant 0 : i32
    return %arg0, %c0_i32, %c0_i32_0 : i32, i32, i32
  }
  func.func @transform_15(%arg0: i32, %arg1: i32) -> (i32, i32, i32) {
    %c0_i32 = arith.constant 0 : i32
    %c0_i32_0 = arith.constant 0 : i32
    return %arg0, %arg1, %c0_i32 : i32, i32, i32
  }
  func.func @transform_16(%arg0: i32, %arg1: i32) -> (i32, i32, i32) {
    %c0_i32 = arith.constant 0 : i32
    %c0_i32_0 = arith.constant 0 : i32
    return %arg0, %arg1, %c0_i32 : i32, i32, i32
  }
  func.func @transform_17(%arg0: i32, %arg1: i32) -> (i32, i32, i32) {
    %c0_i32 = arith.constant 0 : i32
    %c0_i32_0 = arith.constant 0 : i32
    return %arg0, %arg1, %c0_i32 : i32, i32, i32
  }
  func.func @transform_18(%arg0: i32, %arg1: i32) -> (i32, i32, i32) {
    %c0_i32 = arith.constant 0 : i32
    %c0_i32_0 = arith.constant 0 : i32
    return %arg0, %arg1, %c0_i32 : i32, i32, i32
  }
}

</mosaic_0001>

<bundles_post_ra>
// kernel: model_forward.2
= control target key start
LH: loop header
LB: loop body
LE: loop exit
PB: predicated region body
PF: predicated region fallthrough
CT: control target
= control target key end

     0   :  { %vm37_vm0 = vcmask 1041408   ;;  %vm150_vm1 = vcmask 1042432   ;;  %v1050_v0 = vmov 0.0   ;;  %v1051_v4 = vmov 65535   ;;  %s1056_s19 = smov 32   ;;  %s1057_s20 = smov 123   ;;  %s1380_s3 = inlined_call_operand.vmem [shape: bf16[16,16], index: 3, kind: input, shape index: {}]   ;;  %s1381_s4 = inlined_call_operand.vmem [shape: bf16[32,64], index: 4, kind: input, shape index: {}]   ;;  %s1382_s0 = inlined_call_operand.vmem [shape: f32[16,4], index: 0, kind: input, shape index: {}]   ;;  %s1383_s1 = inlined_call_operand.vmem [shape: f32[16,20], index: 1, kind: input, shape index: {}]   ;;  %s1384_s5 = inlined_call_operand.vmem [shape: f32[16,16], index: 5, kind: output, shape index: {0}]   ;;  %s1385_s2 = inlined_call_operand.vmem [shape: f32[16,1], index: 2, kind: input, shape index: {}]   ;;  %s1386_s6 = inlined_call_operand.vmem [shape: f32[16,16], index: 6, kind: output, shape index: {1}]  }
   0x1   :  { %898 = vmatprep.subr.bf16.mxu0 %v1050_v0  ;;  %v23_v1 = vld [vmem:[%s1380_s3] sm:$0xf]  ;;  %904 = vmatprep.subr.bf16.mxu1 %v1050_v0  ;;  %v151_v5 = vsel %vm37_vm0, 4294967295, %v1051_v4  ;;  %v26_v7 = vld [vmem:[%s1382_s0 + $0x8] sm:$0xff]  ;;  %vm1052_vm2 = vmmov 0   ;;  %vm33_vm3 = vcmask 31744   ;;  %v29_v16 = vlaneseq }
   0x2   :  { %v91_v2 = vld [vmem:[%s1381_s4] sm:$0xf]  ;;  %v39_v3 = vsel %vm37_vm0, %v23_v1, 0  ;;  %v1113_v8 = vld [vmem:[%s1381_s4 + $0x4] sm:$0xff]   ;;  %v152_v9 = vsel %vm150_vm1, %v151_v5, 0  ;;  %900 = vmatprep.mubr.msk.bf16.mxu0 %vm1052_vm2, %v1050_v0  ;;  %906 = vmatprep.mubr.msk.bf16.mxu1 %vm1052_vm2, %v1050_v0  ;;  %v1053_v12 = vmov 0  }
   0x3   :  { %v25_v6 = vld [vmem:[%s1382_s0] sm:$0xff]  ;;  %899 = vmatpush3.bf16.msra.mxu0 %v39_v3  ;;  %v1117_v11 = vand.u32 %v152_v9, %v91_v2  ;;  %905 = vmatpush3.bf16.msra.mxu1 %v1113_v8  ;;  %v88_v14 = vld [vmem:[%s1383_s1 + $0x8] sm:$0xff]  ;;  %vm146_vm4 = vcmask 39936   ;;  %v30_v17 = vshrl.u32 %v29_v16, 7  ;;  %vm84_vm5 = vcmask 130048   ;;  %s1058_s21 = smov 80  }
   0x4   :  { %v27_v10 = vpack.c.bf16 %v26_v7, %v25_v6  ;;  %910 = vmatprep.subr.bf16.mxu0 %v1050_v0  ;;  %963 = vset.pattern.permute.xlu0 %v1053_v12  ;;  %v87_v13 = vld [vmem:[%s1383_s1] sm:$0xff]  ;;  %v94_v23 = vld [vmem:[%s1381_s4 + $0xc] sm:$0xf]  ;;  %s1059_s22 = smov 118   ;;  %s1060_s23 = smov 113  }
   0x5   :  { %969 = vset.pattern.permute.xlu1 %v1053_v12  ;;  %916 = vmatprep.subr.bf16.mxu1 %v1050_v0  ;;  %v1136_v15 = vpack.c.bf16 %v88_v14, %v87_v13  ;;  %v24_v18 = vld [vmem:[%s1380_s3 + $0x4] sm:$0xf]  ;;  %v31_v20 = vsub.s32 0, %v30_v17  ;;  %v197_v28 = vunpack.c.l.bf16 %v94_v23  ;;  %v1172_v46 = vld [vmem:[%s1385_s2 + $0x8] sm:$0xff] }
   0x6   :  { %901 = vmatmul.mubr.msk.bf16.vlgmr.msra.gmra.mxu0 %vm33_vm3, %v27_v10  ;;  %907 = vmatmul.mubr.bf16.vlgmr.msra.gmra.mxu1 %v1053_v12  ;;  %v28_v19 = vunpack.c.l.bf16 %v24_v18  ;;  %v1167_v45 = vld [vmem:[%s1385_s2] sm:$0xff]  ;;  %vm253_vm7 = vcmp.gt.f32.partialorder %v1172_v46, 0.0  ;;  %s1055_s2 = smov 16   ;;  %vm436_vm9 = vcmp.gt.f32.partialorder %v1172_v46, 1.0  ;;  %vm620_vm11 = vcmp.gt.f32.partialorder %v1172_v46, 2.0 }
   0x7   :  { %911 = vmatpush3.bf16.msra.mxu0 %v1117_v11  ;;  %912 = vmatprep.mubr.msk.bf16.mxu0 %vm1052_vm2, %v1050_v0  ;;  %v1156_v34 = vrot.slane %v197_v28, %v31_v20  ;;  %vm252_vm6 = vcmp.gt.f32.partialorder %v1167_v45, 0.0  ;;  %v861_v49 = vsel %vm253_vm7, 1.0, %v1050_v0  ;;  %vm435_vm8 = vcmp.gt.f32.partialorder %v1167_v45, 1.0 }
   0x8   :  { %922 = vmatprep.subr.bf16.mxu0 %v1050_v0  ;;  %918 = vmatprep.mubr.msk.bf16.mxu1 %vm1052_vm2, %v1050_v0  ;;  %v32_v21 = vrot.slane %v28_v19, %v31_v20  ;;  %v860_v48 = vsel %vm252_vm6, 1.0, %v1050_v0  ;;  %v271_v2 = vsub.f32 1.0, %v861_v49  ;;  %vm619_vm10 = vcmp.gt.f32.partialorder %v1167_v45, 2.0 }
   0x9   :  { %917 = vmatpush3.bf16.msra.mxu1 %v1113_v8  ;;  %v964_v51 = vpack.i.bf16 %v861_v49, %v860_v48  ;;  %v270_v1 = vsub.f32 1.0, %v860_v48  ;;  %vm803_vm12 = vcmp.gt.f32.partialorder %v1167_v45, 3.0  ;;  %vm804_vm13 = vcmp.gt.f32.partialorder %v1172_v46, 3.0 }
   0xa   :  { %928 = vmatprep.subr.bf16.mxu1 %v1050_v0 }
   0xe   :  { %913 = vmatmul.mubr.msk.bf16.vlgmr.msra.gmra.mxu0 %vm146_vm4, %v1136_v15 }
   0xf   :  { %923 = vmatpush3.bf16.msra.mxu0 %v1117_v11  ;;  %924 = vmatprep.mubr.msk.bf16.mxu0 %vm1052_vm2, %v1050_v0 }
  0x10   :  { %934 = vmatprep.subr.bf16.mxu0 %v1050_v0 }
  0xc6   :  { %v75_v22 = vpop.f32.mrf.mxu0  ;;  %v139_v25 = vpop.f32.mrf.mxu1 }
  0xc7   :  { %v76_v24 = vadd.f32 %v75_v22, %v32_v21 }
  0xc8   :  { %v902_v26 = vpop.f32.mrf.mxu0  ;;  %v908_v29 = vpop.f32.mrf.mxu1 }
  0xc9   :  { %v82_v27 = vmax.f32 %v76_v24, 0.0 }
  0xca   :  { %v78_v30 = vpop.f32.mrf.mxu0  ;;  %v142_v32 = vpop.f32.mrf.mxu1 }
  0xcb   :  { %85 = vst.msk [vmem:[%s1384_s5] sm:$0xff] %vm84_vm5, %v82_v27  ;;  %v79_v31 = vadd.f32 %v78_v30, %v32_v21 }
  0xcc   :  { %v903_v33 = vpop.f32.mrf.mxu0  ;;  %v909_v36 = vpop.f32.mrf.mxu1 }
  0xcd   :  { %v83_v35 = vmax.f32 %v79_v31, 0.0 }
  0xce   :  { %v190_v37 = vpop.f32.mrf.mxu0 }
  0xcf   :  { %86 = vst.msk [vmem:[%s1384_s5 + $0x8] sm:$0xff] %vm84_vm5, %v83_v35  ;;  %v191_v38 = vadd.f32 %v190_v37, %v139_v25  ;;  %s1054_s5 = smov 96  }
  0xd0   :  { %v914_v39 = vpop.f32.mrf.mxu0 }
  0xd1   :  { %v202_v40 = vadd.f32 %v1156_v34, %v191_v38 }
  0xd2   :  { %v193_v41 = vpop.f32.mrf.mxu0 }
  0xd3   :  { %986 = vtanh.f32 %v202_v40  ;;  %v194_v42 = vadd.f32 %v193_v41, %v142_v32  ;;  %v858_v52 = vmul.f32 -1.442695, %v202_v40 }
  0xd4   :  { %v915_v43 = vpop.f32.mrf.mxu0 }
  0xd5   :  { %v203_v44 = vadd.f32 %v1156_v34, %v194_v42 }
  0xd7   :  { %988 = vtanh.f32 %v203_v44  ;;  %v859_v53 = vmul.f32 -1.442695, %v203_v44 }
  0xd8   :  { %990 = vpow2.f32 %v858_v52 }
  0xd9   :  { %992 = vpow2.f32 %v859_v53 }
  0xe0   :  { %v987_v47 = vpop.eup %986 }
  0xe1   :  { %222 = vrot.lane.b32.xlu0 %v987_v47, %s1054_s5 }
  0xe4   :  { %v989_v50 = vpop.eup %988 }
  0xe5   :  { %224 = vrot.lane.b32.xlu0 %v989_v50, %s1054_s5  ;;  %v991_v54 = vpop.eup %990 }
  0xe6   :  { %v210_v55 = vadd.f32 1.0, %v991_v54  ;;  %v993_v56 = vpop.eup %992 }
  0xe7   :  { %v211_v57 = vadd.f32 1.0, %v993_v56 }
  0xe8   :  { %994 = vrcp.f32 %v210_v55 }
  0xe9   :  { %965 = vperm.xlu0 %963, %v964_v51   ;;  %996 = vrcp.f32 %v211_v57  ;;  %v866_v57 = vsel %vm435_vm8, 1.0, %v1050_v0 }
  0xf5   :  { %v995_v58 = vpop.eup %994 }
  0xf6   :  { %v997_v61 = vpop.eup %996  ;;  %v218_v3 = vmul.f32 0.0, %v995_v58 }
  0xf7   :  { %v219_v6 = vmul.f32 0.0, %v997_v61 }
 0x153   :  { %v223_v59 = vpop.permute.xlu0 %222 }
 0x154   :  { %v228_v60 = vmul.f32 %v995_v58, %v223_v59 }
 0x156   :  { %232 = vrot.lane.b32.xlu1 %v228_v60, %s1055_s2 }
 0x157   :  { %v225_v62 = vpop.permute.xlu0 %224 }
 0x158   :  { %v229_v63 = vmul.f32 %v997_v61, %v225_v62 }
 0x15a   :  { %234 = vrot.lane.b32.xlu1 %v229_v63, %s1055_s2 }
 0x15e   :  { %274 = vperm.xlu1 %969, %v270_v1  }
 0x162   :  { %279 = vperm.xlu1 %969, %v271_v2   ;;  %v453_v2 = vsub.f32 1.0, %v866_v57 }
 0x164   :  { %v1191_v14 = vpop.permute.xlu0 %965 }
 0x165   :  { %v967_v19 = vunpack.i.l.bf16 %v1191_v14  ;;  %v968_v21 = vunpack.i.h.bf16 %v1191_v14 }
 0x1c8   :  { %v233_v4 = vpop.permute.xlu1 %232 }
 0x1c9   :  { %v1182_v5 = vadd.f32 %v233_v4, %v218_v3 }
 0x1cb   :  { %998 = vtanh.f32 %v1182_v5  ;;  %v286_v3 = vmul.f32 %v967_v19, %v1182_v5 }
 0x1cc   :  { %v235_v7 = vpop.permute.xlu1 %234 }
 0x1cd   :  { %v1185_v9 = vadd.f32 %v235_v7, %v219_v6 }
 0x1cf   :  { %1000 = vtanh.f32 %v1185_v9  ;;  %v287_v6 = vmul.f32 %v968_v21, %v1185_v9 }
 0x1d8   :  { %v999_v10 = vpop.eup %998 }
 0x1d9   :  { %244 = vrot.lane.b32.xlu0 %v999_v10, %s1056_s19  ;;  %v275_v13 = vpop.permute.xlu1 %274 }
 0x1da   :  { %v1197_v24 = vmul.f32 0.0, %v275_v13 }
 0x1dc   :  { %v1001_v12 = vpop.eup %1000  ;;  %v1236_v4 = vadd.f32 %v286_v3, %v1197_v24 }
 0x1dd   :  { %246 = vrot.lane.b32.xlu1 %v1001_v12, %s1056_s19  ;;  %v280_v16 = vpop.permute.xlu1 %279 }
 0x1de   :  { %v1199_v25 = vmul.f32 0.0, %v280_v16 }
 0x1e0   :  { %v1243_v12 = vadd.f32 %v287_v6, %v1199_v25 }
 0x1e1   :  { %339 = vrot.lane.b32.xlu1 %v1136_v15, %s1057_s20 }
 0x24b   :  { %v245_v17 = vpop.permute.xlu0 %244 }
 0x24c   :  { %v250_v18 = vmul.f32 %v995_v58, %v245_v17  ;;  %v867_v58 = vsel %vm436_vm9, 1.0, %v1050_v0 }
 0x24d   :  { %v970_v60 = vpack.i.bf16 %v867_v58, %v866_v57  ;;  %v454_v1 = vsub.f32 1.0, %v867_v58 }
 0x24e   :  { %v268_v22 = vmul.f32 %v967_v19, %v250_v18 }
 0x24f   :  { %v247_v20 = vpop.permute.xlu1 %246 }
 0x250   :  { %v251_v23 = vmul.f32 %v997_v61, %v247_v20  ;;  %v1204_v28 = vadd.f32 %v1197_v24, %v268_v22 }
 0x252   :  { %v269_v26 = vmul.f32 %v968_v21, %v251_v23 }
 0x253   :  { %v340_v27 = vpop.permute.xlu1 %339 }
 0x254   :  { %v1207_v29 = vadd.f32 %v1199_v25, %v269_v26  ;;  %925 = vmatmul.mubr.msk.bf16.vlgmr.msra.gmra.mxu0 %vm146_vm4, %v340_v27 }
 0x255   :  { %935 = vmatpush3.bf16.msra.mxu0 %v1117_v11  ;;  %936 = vmatprep.mubr.msk.bf16.mxu0 %vm1052_vm2, %v1050_v0 }
 0x256   :  { %v290_v30 = vpack.c.bf16 %v1207_v29, %v1204_v28  ;;  %946 = vmatprep.subr.bf16.mxu0 %v1050_v0 }
 0x258   :  { %292 = vrot.lane.b32.xlu0 %v290_v30, %s1058_s21 }
 0x2ca   :  { %v293_v31 = vpop.permute.xlu0 %292 }
 0x2cb   :  { %919 = vmatmul.mubr.msk.bf16.vlgmr.msra.gmra.mxu1 %vm84_vm5, %v293_v31 }
 0x2cc   :  { %929 = vmatpush3.bf16.msra.mxu1 %v1113_v8  ;;  %930 = vmatprep.mubr.msk.bf16.mxu1 %vm1052_vm2, %v1050_v0 }
 0x2cd   :  { %940 = vmatprep.subr.bf16.mxu1 %v1050_v0 }
 0x314   :  { %v378_v32 = vpop.f32.mrf.mxu0 }
 0x316   :  { %v926_v33 = vpop.f32.mrf.mxu0 }
 0x318   :  { %v381_v35 = vpop.f32.mrf.mxu0 }
 0x31a   :  { %v927_v36 = vpop.f32.mrf.mxu0 }
 0x38b   :  { %v331_v37 = vpop.f32.mrf.mxu1 }
 0x38c   :  { %v379_v38 = vadd.f32 %v378_v32, %v331_v37 }
 0x38d   :  { %v920_v39 = vpop.f32.mrf.mxu1 }
 0x38e   :  { %v385_v40 = vadd.f32 %v379_v38, %v1156_v34 }
 0x38f   :  { %v334_v41 = vpop.f32.mrf.mxu1 }
 0x390   :  { %1002 = vtanh.f32 %v385_v40  ;;  %v382_v42 = vadd.f32 %v381_v35, %v334_v41  ;;  %v864_v49 = vmul.f32 -1.442695, %v385_v40 }
 0x391   :  { %v921_v43 = vpop.f32.mrf.mxu1 }
 0x392   :  { %v386_v44 = vadd.f32 %v382_v42, %v1156_v34 }
 0x394   :  { %1004 = vtanh.f32 %v386_v44  ;;  %v865_v50 = vmul.f32 -1.442695, %v386_v44 }
 0x395   :  { %1006 = vpow2.f32 %v864_v49 }
 0x396   :  { %1008 = vpow2.f32 %v865_v50 }
 0x39d   :  { %v1003_v47 = vpop.eup %1002 }
 0x39e   :  { %405 = vrot.lane.b32.xlu0 %v1003_v47, %s1054_s5 }
 0x3a1   :  { %v1005_v48 = vpop.eup %1004 }
 0x3a2   :  { %407 = vrot.lane.b32.xlu1 %v1005_v48, %s1054_s5  ;;  %v1007_v51 = vpop.eup %1006 }
 0x3a3   :  { %v393_v52 = vadd.f32 1.0, %v1007_v51  ;;  %v1009_v53 = vpop.eup %1008 }
 0x3a4   :  { %v394_v54 = vadd.f32 1.0, %v1009_v53 }
 0x3a5   :  { %1010 = vrcp.f32 %v393_v52 }
 0x3a6   :  { %1012 = vrcp.f32 %v394_v54 }
 0x3b2   :  { %v1011_v55 = vpop.eup %1010 }
 0x3b3   :  { %v1013_v61 = vpop.eup %1012  ;;  %v401_v7 = vmul.f32 %v1011_v55, %v1236_v4 }
 0x3b4   :  { %v402_v16 = vmul.f32 %v1013_v61, %v1243_v12 }
 0x410   :  { %v406_v56 = vpop.permute.xlu0 %405 }
 0x411   :  { %v411_v59 = vmul.f32 %v1011_v55, %v406_v56 }
 0x413   :  { %415 = vrot.lane.b32.xlu0 %v411_v59, %s1055_s2  ;;  %v872_v59 = vsel %vm619_vm10, 1.0, %v1050_v0 }
 0x414   :  { %v408_v62 = vpop.permute.xlu1 %407  ;;  %v637_v6 = vsub.f32 1.0, %v872_v59 }
 0x415   :  { %v412_v63 = vmul.f32 %v1013_v61, %v408_v62 }
 0x417   :  { %971 = vperm.xlu0 %963, %v970_v60   ;;  %417 = vrot.lane.b32.xlu1 %v412_v63, %s1055_s2  ;;  %v873_v60 = vsel %vm620_vm11, 1.0, %v1050_v0 }
 0x418   :  { %v975_v62 = vpack.i.bf16 %v873_v60, %v872_v59  ;;  %v638_v3 = vsub.f32 1.0, %v873_v60 }
 0x41b   :  { %462 = vperm.xlu0 %963, %v454_v1   ;;  %457 = vperm.xlu1 %969, %v453_v2  }
 0x485   :  { %v416_v10 = vpop.permute.xlu0 %415 }
 0x486   :  { %v1245_v13 = vadd.f32 %v416_v10, %v401_v7 }
 0x488   :  { %1014 = vtanh.f32 %v1245_v13 }
 0x489   :  { %v418_v5 = vpop.permute.xlu1 %417 }
 0x48a   :  { %v1249_v17 = vadd.f32 %v418_v5, %v402_v16 }
 0x48c   :  { %1016 = vtanh.f32 %v1249_v17 }
 0x492   :  { %v1255_v14 = vpop.permute.xlu0 %971 }
 0x493   :  { %v973_v23 = vunpack.i.l.bf16 %v1255_v14  ;;  %v974_v25 = vunpack.i.h.bf16 %v1255_v14 }
 0x495   :  { %v1015_v18 = vpop.eup %1014  ;;  %v469_v10 = vmul.f32 %v973_v23, %v1245_v13 }
 0x496   :  { %427 = vrot.lane.b32.xlu1 %v1015_v18, %s1056_s19  ;;  %v1257_v19 = vpop.permute.xlu1 %457  ;;  %v1259_v20 = vpop.permute.xlu0 %462  ;;  %v470_v18 = vmul.f32 %v974_v25, %v1249_v17 }
 0x497   :  { %v466_v30 = vmul.f32 %v1259_v20, %v1207_v29  ;;  %v465_v31 = vmul.f32 %v1257_v19, %v1204_v28  ;;  %v471_v7 = vmul.f32 %v1257_v19, %v1236_v4  ;;  %v472_v16 = vmul.f32 %v1259_v20, %v1243_v12 }
 0x499   :  { %v1017_v9 = vpop.eup %1016  ;;  %v1303_v5 = vadd.f32 %v471_v7, %v469_v10 }
 0x49a   :  { %429 = vrot.lane.b32.xlu0 %v1017_v9, %s1056_s19 }
 0x49e   :  { %523 = vrot.lane.b32.xlu0 %v1136_v15, %s1059_s22 }
 0x508   :  { %v428_v21 = vpop.permute.xlu1 %427 }
 0x509   :  { %v433_v22 = vmul.f32 %v1011_v55, %v428_v21 }
 0x50b   :  { %v451_v26 = vmul.f32 %v973_v23, %v433_v22  ;;  %v1309_v22 = vadd.f32 %v472_v16, %v470_v18 }
 0x50c   :  { %v430_v24 = vpop.permute.xlu0 %429 }
 0x50d   :  { %v434_v27 = vmul.f32 %v1013_v61, %v430_v24  ;;  %v1271_v35 = vadd.f32 %v465_v31, %v451_v26 }
 0x50f   :  { %v452_v32 = vmul.f32 %v974_v25, %v434_v27 }
 0x510   :  { %v524_v33 = vpop.permute.xlu0 %523 }
 0x511   :  { %v1273_v36 = vadd.f32 %v466_v30, %v452_v32  ;;  %937 = vmatmul.mubr.msk.bf16.vlgmr.msra.gmra.mxu0 %vm146_vm4, %v524_v33 }
 0x512   :  { %947 = vmatpush3.bf16.msra.mxu0 %v1117_v11  ;;  %948 = vmatprep.mubr.msk.bf16.mxu0 %vm1052_vm2, %v1050_v0 }
 0x513   :  { %v475_v29 = vpack.c.bf16 %v1273_v36, %v1271_v35 }
 0x515   :  { %477 = vrot.lane.b32.xlu1 %v475_v29, %s1058_s21 }
 0x587   :  { %v478_v28 = vpop.permute.xlu1 %477 }
 0x588   :  { %931 = vmatmul.mubr.msk.bf16.vlgmr.msra.gmra.mxu1 %vm84_vm5, %v478_v28 }
 0x589   :  { %941 = vmatpush3.bf16.msra.mxu1 %v1113_v8  ;;  %942 = vmatprep.mubr.msk.bf16.mxu1 %vm1052_vm2, %v1050_v0 }
 0x5d1   :  { %v562_v37 = vpop.f32.mrf.mxu0 }
 0x5d3   :  { %v938_v38 = vpop.f32.mrf.mxu0 }
 0x5d5   :  { %v565_v39 = vpop.f32.mrf.mxu0 }
 0x5d7   :  { %v939_v11 = vpop.f32.mrf.mxu0 }
 0x648   :  { %v516_v40 = vpop.f32.mrf.mxu1 }
 0x649   :  { %v563_v41 = vadd.f32 %v562_v37, %v516_v40 }
 0x64a   :  { %v932_v42 = vpop.f32.mrf.mxu1 }
 0x64b   :  { %v569_v43 = vadd.f32 %v563_v41, %v1156_v34 }
 0x64c   :  { %v519_v44 = vpop.f32.mrf.mxu1 }
 0x64d   :  { %1018 = vtanh.f32 %v569_v43  ;;  %v566_v47 = vadd.f32 %v565_v39, %v519_v44  ;;  %v870_v51 = vmul.f32 -1.442695, %v569_v43 }
 0x64e   :  { %v933_v48 = vpop.f32.mrf.mxu1 }
 0x64f   :  { %v570_v49 = vadd.f32 %v566_v47, %v1156_v34 }
 0x651   :  { %1020 = vtanh.f32 %v570_v49  ;;  %v871_v52 = vmul.f32 -1.442695, %v570_v49 }
 0x652   :  { %1022 = vpow2.f32 %v870_v51 }
 0x653   :  { %1024 = vpow2.f32 %v871_v52 }
 0x65a   :  { %v1019_v8 = vpop.eup %1018 }
 0x65b   :  { %589 = vrot.lane.b32.xlu1 %v1019_v8, %s1054_s5 }
 0x65e   :  { %v1021_v50 = vpop.eup %1020 }
 0x65f   :  { %591 = vrot.lane.b32.xlu0 %v1021_v50, %s1054_s5  ;;  %v1023_v53 = vpop.eup %1022 }
 0x660   :  { %v577_v54 = vadd.f32 1.0, %v1023_v53  ;;  %v1025_v55 = vpop.eup %1024 }
 0x661   :  { %v578_v56 = vadd.f32 1.0, %v1025_v55 }
 0x662   :  { %1026 = vrcp.f32 %v577_v54 }
 0x663   :  { %1028 = vrcp.f32 %v578_v56 }
 0x66f   :  { %v1027_v57 = vpop.eup %1026 }
 0x670   :  { %v1029_v63 = vpop.eup %1028  ;;  %v585_v9 = vmul.f32 %v1027_v57, %v1303_v5 }
 0x671   :  { %v586_v4 = vmul.f32 %v1029_v63, %v1309_v22 }
 0x6cd   :  { %v590_v58 = vpop.permute.xlu1 %589 }
 0x6ce   :  { %v595_v61 = vmul.f32 %v1027_v57, %v590_v58 }
 0x6d0   :  { %599 = vrot.lane.b32.xlu1 %v595_v61, %s1055_s2  ;;  %v878_v61 = vsel %vm803_vm12, 1.0, %v1050_v0 }
 0x6d1   :  { %v592_v1 = vpop.permute.xlu0 %591  ;;  %v821_v45 = vsub.f32 1.0, %v878_v61 }
 0x6d2   :  { %v596_v2 = vmul.f32 %v1029_v63, %v592_v1 }
 0x6d4   :  { %976 = vperm.xlu1 %969, %v975_v62   ;;  %601 = vrot.lane.b32.xlu0 %v596_v2, %s1055_s2  ;;  %v879_v62 = vsel %vm804_vm13, 1.0, %v1050_v0 }
 0x6d5   :  { %v980_v1 = vpack.i.bf16 %v879_v62, %v878_v61  ;;  %v822_v7 = vsub.f32 1.0, %v879_v62 }
 0x6d8   :  { %646 = vperm.xlu1 %969, %v638_v3   ;;  %641 = vperm.xlu0 %963, %v637_v6  }
 0x742   :  { %v600_v21 = vpop.permute.xlu1 %599 }
 0x743   :  { %v1311_v24 = vadd.f32 %v600_v21, %v585_v9 }
 0x745   :  { %1030 = vtanh.f32 %v1311_v24 }
 0x746   :  { %v602_v13 = vpop.permute.xlu0 %601 }
 0x747   :  { %v1315_v19 = vadd.f32 %v602_v13, %v586_v4 }
 0x749   :  { %1032 = vtanh.f32 %v1315_v19 }
 0x74f   :  { %v1321_v14 = vpop.permute.xlu1 %976 }
 0x750   :  { %v978_v27 = vunpack.i.l.bf16 %v1321_v14  ;;  %v979_v31 = vunpack.i.h.bf16 %v1321_v14 }
 0x752   :  { %v1031_v12 = vpop.eup %1030  ;;  %v653_v0 = vmul.f32 %v978_v27, %v1311_v24  ;;  %v654_v18 = vmul.f32 %v979_v31, %v1315_v19 }
 0x753   :  { %611 = vrot.lane.b32.xlu0 %v1031_v12, %s1056_s19  ;;  %v1323_v20 = vpop.permute.xlu0 %641  ;;  %v1325_v23 = vpop.permute.xlu1 %646 }
 0x754   :  { %v649_v29 = vmul.f32 %v1323_v20, %v1271_v35  ;;  %v655_v46 = vmul.f32 %v1323_v20, %v1303_v5  ;;  %v656_v10 = vmul.f32 %v1325_v23, %v1309_v22 }
 0x756   :  { %v1033_v17 = vpop.eup %1032  ;;  %v657_v16 = vadd.f32 %v655_v46, %v653_v0  ;;  %v658_v4 = vadd.f32 %v656_v10, %v654_v18 }
 0x757   :  { %613 = vrot.lane.b32.xlu1 %v1033_v17, %s1056_s19 }
 0x75b   :  { %707 = vrot.lane.b32.xlu1 %v1136_v15, %s1060_s23  ;;  %v650_v15 = vmul.f32 %v1325_v23, %v1273_v36 }
 0x7c5   :  { %v612_v25 = vpop.permute.xlu0 %611 }
 0x7c6   :  { %v617_v26 = vmul.f32 %v1027_v57, %v612_v25 }
 0x7c8   :  { %v635_v32 = vmul.f32 %v978_v27, %v617_v26 }
 0x7c9   :  { %v614_v30 = vpop.permute.xlu1 %613 }
 0x7ca   :  { %v618_v33 = vmul.f32 %v1029_v63, %v614_v30  ;;  %v1337_v38 = vadd.f32 %v649_v29, %v635_v32 }
 0x7cc   :  { %v636_v28 = vmul.f32 %v979_v31, %v618_v33 }
 0x7cd   :  { %v708_v37 = vpop.permute.xlu1 %707 }
 0x7ce   :  { %v1339_v39 = vadd.f32 %v650_v15, %v636_v28  ;;  %949 = vmatmul.mubr.msk.bf16.vlgmr.msra.gmra.mxu0 %vm146_vm4, %v708_v37 }
 0x7d0   :  { %v659_v11 = vpack.c.bf16 %v1339_v39, %v1337_v38 }
 0x7d2   :  { %661 = vrot.lane.b32.xlu0 %v659_v11, %s1058_s21 }
 0x844   :  { %v662_v40 = vpop.permute.xlu0 %661 }
 0x845   :  { %943 = vmatmul.mubr.msk.bf16.vlgmr.msra.gmra.mxu1 %vm84_vm5, %v662_v40 }
 0x88e   :  { %v746_v36 = vpop.f32.mrf.mxu0 }
 0x890   :  { %v950_v35 = vpop.f32.mrf.mxu0 }
 0x892   :  { %v749_v41 = vpop.f32.mrf.mxu0 }
 0x894   :  { %v951_v42 = vpop.f32.mrf.mxu0 }
 0x905   :  { %v700_v43 = vpop.f32.mrf.mxu1 }
 0x906   :  { %v747_v44 = vadd.f32 %v746_v36, %v700_v43 }
 0x907   :  { %v944_v47 = vpop.f32.mrf.mxu1 }
 0x908   :  { %v753_v48 = vadd.f32 %v747_v44, %v1156_v34 }
 0x909   :  { %v703_v49 = vpop.f32.mrf.mxu1 }
 0x90a   :  { %1034 = vtanh.f32 %v753_v48  ;;  %v750_v8 = vadd.f32 %v749_v41, %v703_v49  ;;  %v876_v54 = vmul.f32 -1.442695, %v753_v48 }
 0x90b   :  { %v945_v50 = vpop.f32.mrf.mxu1 }
 0x90c   :  { %v754_v51 = vadd.f32 %v750_v8, %v1156_v34 }
 0x90e   :  { %1036 = vtanh.f32 %v754_v51  ;;  %v877_v55 = vmul.f32 -1.442695, %v754_v51 }
 0x90f   :  { %1038 = vpow2.f32 %v876_v54 }
 0x910   :  { %1040 = vpow2.f32 %v877_v55 }
 0x917   :  { %v1035_v52 = vpop.eup %1034 }
 0x918   :  { %773 = vrot.lane.b32.xlu0 %v1035_v52, %s1054_s5 }
 0x91b   :  { %v1037_v53 = vpop.eup %1036 }
 0x91c   :  { %775 = vrot.lane.b32.xlu1 %v1037_v53, %s1054_s5  ;;  %v1039_v56 = vpop.eup %1038 }
 0x91d   :  { %v761_v57 = vadd.f32 1.0, %v1039_v56  ;;  %v1041_v58 = vpop.eup %1040 }
 0x91e   :  { %v762_v59 = vadd.f32 1.0, %v1041_v58 }
 0x91f   :  { %1042 = vrcp.f32 %v761_v57 }
 0x920   :  { %1044 = vrcp.f32 %v762_v59 }
 0x92c   :  { %v1043_v34 = vpop.eup %1042 }
 0x92d   :  { %v1045_v2 = vpop.eup %1044  ;;  %v769_v9 = vmul.f32 %v1043_v34, %v657_v16 }
 0x92e   :  { %v770_v12 = vmul.f32 %v1045_v2, %v658_v4 }
 0x98a   :  { %v774_v60 = vpop.permute.xlu0 %773 }
 0x98b   :  { %v779_v63 = vmul.f32 %v1043_v34, %v774_v60 }
 0x98d   :  { %783 = vrot.lane.b32.xlu0 %v779_v63, %s1055_s2 }
 0x98e   :  { %v776_v3 = vpop.permute.xlu1 %775 }
 0x98f   :  { %v780_v6 = vmul.f32 %v1045_v2, %v776_v3 }
 0x991   :  { %981 = vperm.xlu0 %963, %v980_v1   ;;  %785 = vrot.lane.b32.xlu1 %v780_v6, %s1055_s2 }
 0x995   :  { %830 = vperm.xlu0 %963, %v822_v7   ;;  %825 = vperm.xlu1 %969, %v821_v45  }
 0x9ff   :  { %v784_v21 = vpop.permute.xlu0 %783 }
 0xa00   :  { %v789_v13 = vadd.f32 %v784_v21, %v769_v9 }
 0xa02   :  { %1046 = vtanh.f32 %v789_v13 }
 0xa03   :  { %v786_v17 = vpop.permute.xlu1 %785 }
 0xa04   :  { %v790_v5 = vadd.f32 %v786_v17, %v770_v12 }
 0xa06   :  { %1048 = vtanh.f32 %v790_v5 }
 0xa0c   :  { %v982_v22 = vpop.permute.xlu0 %981 }
 0xa0d   :  { %v983_v19 = vunpack.i.l.bf16 %v982_v22  ;;  %v984_v32 = vunpack.i.h.bf16 %v982_v22 }
 0xa0f   :  { %v1047_v20 = vpop.eup %1046 }
 0xa10   :  { %795 = vrot.lane.b32.xlu1 %v1047_v20, %s1056_s19  ;;  %v826_v23 = vpop.permute.xlu1 %825  ;;  %v831_v25 = vpop.permute.xlu0 %830 }
 0xa11   :  { %v833_v27 = vmul.f32 %v826_v23, %v1337_v38  ;;  %v834_v29 = vmul.f32 %v831_v25, %v1339_v39 }
 0xa13   :  { %v1049_v24 = vpop.eup %1048 }
 0xa14   :  { %797 = vrot.lane.b32.xlu0 %v1049_v24, %s1056_s19 }
 0xa82   :  { %v796_v14 = vpop.permute.xlu1 %795 }
 0xa83   :  { %v801_v26 = vmul.f32 %v1043_v34, %v796_v14 }
 0xa85   :  { %v819_v30 = vmul.f32 %v983_v19, %v801_v26 }
 0xa86   :  { %v798_v31 = vpop.permute.xlu0 %797 }
 0xa87   :  { %v802_v33 = vmul.f32 %v1045_v2, %v798_v31  ;;  %v835_v15 = vadd.f32 %v833_v27, %v819_v30 }
 0xa89   :  { %v820_v28 = vmul.f32 %v984_v32, %v802_v33  ;;  %839 = vrot.lane.b32.xlu1 %v835_v15, %s1058_s21 }
 0xa8b   :  { %v836_v37 = vadd.f32 %v834_v29, %v820_v28 }
 0xa8d   :  { %841 = vrot.lane.b32.xlu0 %v836_v37, %s1058_s21 }
 0xafb   :  { %v840_v11 = vpop.permute.xlu1 %839 }
 0xafc   :  { %845 = vst.msk [vmem:[%s1386_s6] sm:$0xff] %vm84_vm5, %v840_v11 }
 0xaff   :  { %v842_v38 = vpop.permute.xlu0 %841 }
 0xb00   :  { %846 = vst.msk [vmem:[%s1386_s6 + $0x8] sm:$0xff] %vm84_vm5, %v842_v38 }

// kernel: model_forward.3
= control target key start
LH: loop header
LB: loop body
LE: loop exit
PB: predicated region body
PF: predicated region fallthrough
CT: control target
= control target key end

     0   :  { %s5727_s0 = inlined_call_operand.vmem [shape: f32[16,16], index: 0, kind: input, shape index: {}]   ;;  %s5728_s1 = inlined_call_operand.vmem [shape: f32[16,16], index: 1, kind: input, shape index: {}]   ;;  %s5729_s2 = inlined_call_operand.vmem [shape: f32[2,16,15], index: 2, kind: input, shape index: {}]   ;;  %s5730_s3 = inlined_call_operand.vmem [shape: f32[2,16,1], index: 3, kind: input, shape index: {}]   ;;  %s5731_s4 = inlined_call_operand.vmem [shape: f32[2,6], index: 4, kind: input, shape index: {}]   ;;  %s5732_s5 = inlined_call_operand.vmem [shape: f32[2,32], index: 5, kind: input, shape index: {}]   ;;  %s5733_s6 = inlined_call_operand.vmem [shape: f32[2,2,8], index: 6, kind: input, shape index: {}]   ;;  %s5734_s7 = inlined_call_operand.vmem [shape: bf16[2,32,64], index: 7, kind: input, shape index: {}]   ;;  %s5735_s8 = inlined_call_operand.vmem [shape: bf16[2,56,32], index: 8, kind: input, shape index: {}]   ;;  %s5736_s9 = inlined_call_operand.vmem [shape: bf16[2,40,96], index: 9, kind: input, shape index: {}]   ;;  %s5737_s10 = inlined_call_operand.vmem [shape: bf16[2,40,32], index: 10, kind: input, shape index: {}]   ;;  %s5738_s11 = inlined_call_operand.vmem [shape: bf16[2,96,32], index: 11, kind: input, shape index: {}]   ;;  %s5739_s12 = inlined_call_operand.vmem [shape: bf16[2,88,32], index: 12, kind: input, shape index: {}]   ;;  %s5740_s13 = inlined_call_operand.vmem [shape: bf16[2,72,128], index: 13, kind: input, shape index: {}]   ;;  %s5741_s14 = inlined_call_operand.vmem [shape: bf16[2,88,32], index: 14, kind: input, shape index: {}]   ;;  %s5742_s15 = inlined_call_operand.hbm [shape: f32[2,16,32], index: 15, kind: output, shape index: {0}]   ;;  %s5743_s16 = inlined_call_operand.vmem [shape: f32[2,2,8], index: 16, kind: output, shape index: {1}]   ;;  %s5744_s17 = inlined_call_operand.hbm [shape: f32[2,2,32], index: 17, kind: output, shape index: {2}]   ;;  %s5745_s18 = inlined_call_operand.hbm [shape: f32[2,2,32], index: 18, kind: output, shape index: {3}]  }
   0x1   :  { %5763 = sst [smem:[#allocation13_spill]] %s5727_s0 }
   0x2   :  { %5764 = sst [smem:[#allocation14_spill]] %s5728_s1 }
   0x3   :  { %5765 = sst [smem:[#allocation15_spill]] %s5729_s2 }
   0x4   :  { %5766 = sst [smem:[#allocation16_spill]] %s5730_s3 }
   0x5   :  { %5767 = sst [smem:[#allocation17_spill]] %s5731_s4 }
   0x6   :  { %5768 = sst [smem:[#allocation18_spill]] %s5732_s5 }
   0x7   :  { %5769 = sst [smem:[#allocation19_spill]] %s5733_s6 }
   0x8   :  { %5770 = sst [smem:[#allocation20_spill]] %s5734_s7 }
   0x9   :  { %5771 = sst [smem:[#allocation21_spill]] %s5735_s8 }
   0xa   :  { %5772 = sst [smem:[#allocation22_spill]] %s5736_s9 }
   0xb   :  { %5773 = sst [smem:[#allocation23_spill]] %s5737_s10 }
   0xc   :  { %5774 = sst [smem:[#allocation24_spill]] %s5738_s11 }
   0xd   :  { %5775 = sst [smem:[#allocation25_spill]] %s5739_s12 }
   0xe   :  { %24 = vsyncpa [#allocation3], 0 }
   0xf   :  { %26 = vsyncpa [#allocation3 + $0x1], 0 }
  0x10   :  { %27 = vsyncpa [#allocation5], 0 }
  0x11   :  { %29 = vsyncpa [#allocation5 + $0x1], 0  ;;  %s4915_s27 = smov 0   ;;  %s4917_s28 = smov 0  }
  0x12   :  { %s4919_s29 = smov 0   ;;  %s4921_s30 = smov 0  }
  0x13   :  { %s4923_s0 = smov 0   ;;  %s4925_s19 = smov 0  }
  0x14 LB: > { %5776 = sst [smem:[#allocation9_spill]] %s4781_s29  ;;  %s5749_s1 = sadd.s32 4294967295, %s4793_s19   ;;  %s4793_s19 = sphi %s4925_s19, %s35_s19   ;;  %s4789_s0 = sphi %s4923_s0, %s5811_s0   ;;  %s4785_s30 = sphi %s4921_s30, %s5807_s30   ;;  %s4781_s29 = sphi %s4919_s29, %s5806_s29   ;;  %s4777_s28 = sphi %s4917_s28, %s5810_s28   ;;  %s4773_s27 = sphi %s4915_s27, %s5809_s27  }
  0x15   : > { %5777 = sst [smem:[#allocation10_spill]] %s4789_s0  ;;  %s5748_s20 = sadd.s32 4294967294, %s4793_s19  }
  0x16   : > { %s47_s21 = sadd.s32 1, %s4789_s0  ;;  %s452_s22 = sadd.s32 1, %s4781_s29 }
  0x17   : > { %p49_p0 = scmp.ge.s32.totalorder %s47_s21, 2  ;;  %p462_p1 = scmp.ne.s32.totalorder %s4781_s29, %s4777_s28 }
  0x18   : > { %p463_p2 = scmp.eq.s32.totalorder %s5749_s1, 1  ;;  %p468_p3 = scmp.ne.s32.totalorder %s4777_s28, %s4773_s27 }
  0x19   : > { %s5813_s21 = smov (%p49_p0, %s47_s21), 0  ;;  %p469_p5 = scmp.eq.s32.totalorder %s5748_s20, 1 }
  0x1a   : > { %5778 = sst [smem:[#allocation11_spill]] %s5813_s21  ;;  %p4957_p4 = por %p463_p2, %p462_p1 }
  0x1b   : > { %s447_s23 = ssub.s32 %s4789_s0, %s5813_s21  ;;  %p3995_p6 = scmp.ge.s32.totalorder %s4793_s19, 1 }
  0x1c   : > { %p450_p7 = scmp.eq.s32.totalorder %s447_s23, 0  ;;  %p4966_p8 = por %p469_p5, %p468_p3 }
  0x1d   : > { %p703_p9 = scmp.lt.s32.totalorder %s4793_s19, 3 }
  0x1e   : > { %s4972_s25 = scalar_select %p450_p7, %s4781_s29, %s452_s22  }
  0x1f   : > { %p704_p10 = pnand %p3995_p6, %p703_p9 }
  0x20   : > { %5781 = sst [smem:[#allocation12_spill]] %s4972_s25  ;;  %p865_p11 = scmp.lt.s32.totalorder (!%p704_p10), %s4785_s30, 1 }
  0x21   : > { %707 = sbr.rel (%p704_p10) target bundleno = 7835 (0x1e9b), region = 80  ;;  %s5782_s7 = sld [smem:[#allocation20_spill]] (!%p704_p10) }
  0x22   : > { %s5783_s25 = sld [smem:[#allocation15_spill]] (!%p704_p10)  ;;  %s5753_s20 = smov (!%p704_p10), 96  }
  0x23   : > { %s5784_s3 = sld [smem:[#allocation16_spill]] (!%p704_p10)  ;;  %s4800_s21 = smov (!%p704_p10), 16  }
  0x24   : > { %s5755_s23 = smov (!%p704_p10), 80   ;;  %s5785_s8 = sld [smem:[#allocation21_spill]] (!%p704_p10) }
  0x25   : > { %s5790_s9 = sld [smem:[#allocation22_spill]] (!%p704_p10) }
  0x26   : > { %vm1012_vm0 = vcmask 1041408   ;;  %v4795_v0 = vmov 0.0   ;;  %s4978_s26 = scalar_select %p865_p11, %s4785_s30, 1  ;;  %vm1013_vm1 = vcmask 1042432   ;;  %v4796_v1 = vmov 65535  }
  0x27   : > { %4187 = vmatprep.subr.bf16.mxu0 %v4795_v0  ;;  %4193 = vmatprep.subr.bf16.mxu1 %v4795_v0  ;;  %v1014_v2 = vsel %vm1012_vm0, 4294967295, %v4796_v1  ;;  %vm4797_vm2 = vmmov 0   ;;  %v4798_v3 = vmov 0   ;;  %vm1008_vm3 = vcmask 39936   ;;  %s5792_s10 = sld [smem:[#allocation23_spill]] }
  0x28   : > { %4189 = vmatprep.mubr.msk.bf16.mxu0 %vm4797_vm2, %v4795_v0  ;;  %4195 = vmatprep.mubr.msk.bf16.mxu1 %vm4797_vm2, %v4795_v0  ;;  %s4985_s22 = sshll.u32 %s4978_s26, 4  ;;  %v1015_v4 = vsel %vm1013_vm1, %v1014_v2, 0  ;;  %v1061_v11 = vlaneseq  ;;  %vm963_vm6 = vcmask 130048   ;;  %s4425_s0 = smul.u32 28, %s4978_s26  ;;  %vm1646_vm11 = vcmask 261120  }
  0x29   : > { %4517 = vset.pattern.permute.xlu0 %v4798_v3  ;;  %4523 = vset.pattern.permute.xlu1 %v4798_v3  ;;  %s903_s1 = scalar_lea.vmem %s5782_s7, %s4985_s22  ;;  %s872_s29 = scalar_lea.vmem %s5783_s25, %s4985_s22  ;;  %vm1765_vm12 = vcmask 64512   ;;  %vm1892_vm13 = vcmask 1043456   ;;  %vm3085_vm14 = vcmask 48128   ;;  %vm3340_vm15 = vcmask 254976  }
  0x2a   : > { %v4996_v5 = vld [vmem:[%s903_s1 + $0x4] sm:$0xff]   ;;  %v952_v6 = vld [vmem:[%s903_s1] sm:$0xf]  ;;  %v5017_v12 = vshrl.u32 %v1061_v11, 7  ;;  %v955_v13 = vld [vmem:[%s903_s1 + $0xc] sm:$0xf]  ;;  %s882_s1 = scalar_lea.vmem %s5784_s3, %s4985_s22 }
  0x2b   : > { %v948_v7 = vld [vmem:[%s872_s29] sm:$0xff]  ;;  %v4998_v8 = vand.u32 %v1015_v4, %v952_v6  ;;  %v949_v9 = vld [vmem:[%s872_s29 + $0x8] sm:$0xff]  ;;  %4188 = vmatpush3.bf16.msra.mxu0 %v4996_v5  ;;  %v1060_v14 = vunpack.c.l.bf16 %v955_v13  ;;  %s5757_s25 = smov 32   ;;  %s4802_s22 = smov 123   ;;  %vm3544_vm0 = vcmask 1041409  }
  0x2c   : > { %v5001_v10 = vpack.c.bf16 %v949_v9, %v948_v7  ;;  %4199 = vmatprep.subr.bf16.mxu0 %v4795_v0  ;;  %v5020_v15 = vsub.s32 0, %v5017_v12  ;;  %v5031_v29 = vld [vmem:[%s882_s1] sm:$0xff]  ;;  %v5033_v30 = vld [vmem:[%s882_s1 + $0x8] sm:$0xff]  ;;  %s4804_s29 = smov 118   ;;  %s5787_s3 = smov 80  }
  0x2d   : > { %4194 = vmatpush3.bf16.msra.mxu1 %v4998_v8  ;;  %vm1115_vm4 = vcmp.gt.f32.partialorder %v5031_v29, 0.0  ;;  %vm1116_vm5 = vcmp.gt.f32.partialorder %v5033_v30, 0.0  ;;  %vm1298_vm7 = vcmp.gt.f32.partialorder %v5031_v29, 1.0  ;;  %vm1299_vm8 = vcmp.gt.f32.partialorder %v5033_v30, 1.0  ;;  %s4426_s7 = smul.u32 20, %s4978_s26  ;;  %s5793_s11 = sld [smem:[#allocation24_spill]] }
  0x2e   : > { %4205 = vmatprep.subr.bf16.mxu1 %v4795_v0  ;;  %4190 = vmatmul.mubr.bf16.vlgmr.msra.gmra.mxu0 %v4798_v3  ;;  %v5023_v16 = vrot.slane %v1060_v14, %v5020_v15  ;;  %v4018_v32 = vsel %vm1115_vm4, 1.0, %v4795_v0  ;;  %v4019_v33 = vsel %vm1116_vm5, 1.0, %v4795_v0  ;;  %vm1482_vm9 = vcmp.gt.f32.partialorder %v5031_v29, 2.0  ;;  %s5794_s12 = sld [smem:[#allocation25_spill]] }
  0x2f   : > { %4200 = vmatpush3.bf16.msra.mxu0 %v4996_v5  ;;  %4201 = vmatprep.mubr.msk.bf16.mxu0 %vm4797_vm2, %v4795_v0  ;;  %v4518_v35 = vpack.i.bf16 %v4019_v33, %v4018_v32  ;;  %v1133_v48 = vsub.f32 1.0, %v4018_v32  ;;  %v1134_v49 = vsub.f32 1.0, %v4019_v33  ;;  %vm1483_vm10 = vcmp.gt.f32.partialorder %v5033_v30, 2.0  ;;  %s5795_s4 = sld [smem:[#allocation17_spill]] }
  0x30   : > { %4196 = vmatmul.mubr.msk.bf16.vlgmr.msra.gmra.mxu1 %vm1008_vm3, %v5001_v10  ;;  %4211 = vmatprep.subr.bf16.mxu0 %v4795_v0  ;;  %s5796_s5 = sld [smem:[#allocation18_spill]] }
  0x31   : > { %4206 = vmatpush3.bf16.msra.mxu1 %v4998_v8  ;;  %4207 = vmatprep.mubr.msk.bf16.mxu1 %vm4797_vm2, %v4795_v0  ;;  %s5799_s6 = sld [smem:[#allocation19_spill]] }
  0x32   : > { %4217 = vmatprep.subr.bf16.mxu1 %v4795_v0 }
  0xee   : > { %v1001_v17 = vpop.f32.mrf.mxu0 }
  0xf0   : > { %v1053_v18 = vpop.f32.mrf.mxu1  ;;  %v4191_v20 = vpop.f32.mrf.mxu0 }
  0xf1   : > { %v1054_v19 = vadd.f32 %v1053_v18, %v1001_v17 }
  0xf2   : > { %v4197_v21 = vpop.f32.mrf.mxu1  ;;  %v1004_v23 = vpop.f32.mrf.mxu0 }
  0xf3   : > { %v1065_v22 = vadd.f32 %v5023_v16, %v1054_v19 }
  0xf4   : > { %v1056_v24 = vpop.f32.mrf.mxu1  ;;  %v4192_v26 = vpop.f32.mrf.mxu0 }
  0xf5   : > { %4553 = vtanh.f32 %v1065_v22  ;;  %v1057_v25 = vadd.f32 %v1056_v24, %v1004_v23  ;;  %v4016_v36 = vmul.f32 -1.442695, %v1065_v22 }
  0xf6   : > { %v4198_v27 = vpop.f32.mrf.mxu1 }
  0xf7   : > { %v1066_v28 = vadd.f32 %v5023_v16, %v1057_v25 }
  0xf9   : > { %4555 = vtanh.f32 %v1066_v28  ;;  %v4017_v37 = vmul.f32 -1.442695, %v1066_v28 }
  0xfa   : > { %4557 = vpow2.f32 %v4016_v36 }
  0xfb   : > { %4559 = vpow2.f32 %v4017_v37 }
 0x102   : > { %v4554_v31 = vpop.eup %4553 }
 0x103   : > { %1085 = vrot.lane.b32.xlu0 %v4554_v31, %s5753_s20 }
 0x106   : > { %v4556_v34 = vpop.eup %4555 }
 0x107   : > { %1087 = vrot.lane.b32.xlu0 %v4556_v34, %s5753_s20  ;;  %v4558_v38 = vpop.eup %4557 }
 0x108   : > { %v1073_v39 = vadd.f32 1.0, %v4558_v38  ;;  %v4560_v40 = vpop.eup %4559 }
 0x109   : > { %v1074_v41 = vadd.f32 1.0, %v4560_v40 }
 0x10a   : > { %4561 = vrcp.f32 %v1073_v39 }
 0x10b   : > { %4519 = vperm.xlu0 %4517, %v4518_v35   ;;  %4563 = vrcp.f32 %v1074_v41 }
 0x117   : > { %v4562_v42 = vpop.eup %4561 }
 0x118   : > { %v4564_v45 = vpop.eup %4563  ;;  %v1081_v50 = vmul.f32 0.0, %v4562_v42 }
 0x119   : > { %v1082_v53 = vmul.f32 0.0, %v4564_v45 }
 0x175   : > { %v1086_v43 = vpop.permute.xlu0 %1085 }
 0x176   : > { %v1091_v44 = vmul.f32 %v4562_v42, %v1086_v43  ;;  %v4025_v43 = vsel %vm1299_vm8, 1.0, %v4795_v0 }
 0x178   : > { %1095 = vrot.lane.b32.xlu1 %v1091_v44, %s4800_s21 }
 0x179   : > { %v1088_v46 = vpop.permute.xlu0 %1087 }
 0x17a   : > { %v1092_v47 = vmul.f32 %v4564_v45, %v1088_v46 }
 0x17c   : > { %1097 = vrot.lane.b32.xlu1 %v1092_v47, %s4800_s21 }
 0x180   : > { %1137 = vperm.xlu1 %4523, %v1133_v48  }
 0x184   : > { %1142 = vperm.xlu1 %4523, %v1134_v49   ;;  %v1317_v49 = vsub.f32 1.0, %v4025_v43 }
 0x186   : > { %v5052_v59 = vpop.permute.xlu0 %4519 }
 0x187   : > { %v4521_v63 = vunpack.i.l.bf16 %v5052_v59  ;;  %v4522_v2 = vunpack.i.h.bf16 %v5052_v59 }
 0x1ea   : > { %v1096_v51 = vpop.permute.xlu1 %1095 }
 0x1eb   : > { %v5043_v52 = vadd.f32 %v1096_v51, %v1081_v50 }
 0x1ed   : > { %4565 = vtanh.f32 %v5043_v52  ;;  %v1149_v51 = vmul.f32 %v4521_v63, %v5043_v52 }
 0x1ee   : > { %v1098_v54 = vpop.permute.xlu1 %1097 }
 0x1ef   : > { %v5046_v55 = vadd.f32 %v1098_v54, %v1082_v53 }
 0x1f1   : > { %4567 = vtanh.f32 %v5046_v55  ;;  %v1150_v54 = vmul.f32 %v4522_v2, %v5046_v55 }
 0x1fa   : > { %v4566_v56 = vpop.eup %4565 }
 0x1fb   : > { %1107 = vrot.lane.b32.xlu0 %v4566_v56, %s5757_s25  ;;  %v1138_v58 = vpop.permute.xlu1 %1137 }
 0x1fc   : > { %v5058_v6 = vmul.f32 0.0, %v1138_v58 }
 0x1fe   : > { %v4568_v57 = vpop.eup %4567  ;;  %v5097_v53 = vadd.f32 %v1149_v51, %v5058_v6 }
 0x1ff   : > { %1109 = vrot.lane.b32.xlu1 %v4568_v57, %s5757_s25  ;;  %v1143_v60 = vpop.permute.xlu1 %1142 }
 0x200   : > { %v5060_v7 = vmul.f32 0.0, %v1143_v60 }
 0x202   : > { %v5104_v58 = vadd.f32 %v1150_v54, %v5060_v7 }
 0x203   : > { %1202 = vrot.lane.b32.xlu1 %v5001_v10, %s4802_s22  ;;  %s5169_s22 = scalar_lea.vmem %s5785_s8, %s4425_s0  ;;  %s5788_s0 = sld [smem:[#allocation14_spill]] }
 0x209   : > { %s5789_s1 = smov %s5788_s0 }
 0x26d   : > { %v1108_v61 = vpop.permute.xlu0 %1107 }
 0x26e   : > { %v1113_v62 = vmul.f32 %v4562_v42, %v1108_v61  ;;  %v4024_v42 = vsel %vm1298_vm7, 1.0, %v4795_v0 }
 0x26f   : > { %v1316_v50 = vsub.f32 1.0, %v4024_v42 }
 0x270   : > { %v1131_v3 = vmul.f32 %v4521_v63, %v1113_v62 }
 0x271   : > { %v1110_v1 = vpop.permute.xlu1 %1109 }
 0x272   : > { %v1114_v4 = vmul.f32 %v4564_v45, %v1110_v1  ;;  %v5065_v14 = vadd.f32 %v5058_v6, %v1131_v3  ;;  %v4524_v45 = vpack.i.bf16 %v4025_v43, %v4024_v42 }
 0x274   : > { %v1132_v9 = vmul.f32 %v4522_v2, %v1114_v4 }
 0x275   : > { %v1203_v13 = vpop.permute.xlu1 %1202 }
 0x276   : > { %v5068_v17 = vadd.f32 %v5060_v7, %v1132_v9  ;;  %4208 = vmatmul.mubr.msk.bf16.vlgmr.msra.gmra.mxu1 %vm1008_vm3, %v1203_v13 }
 0x277   : > { %4218 = vmatpush3.bf16.msra.mxu1 %v4998_v8  ;;  %4219 = vmatprep.mubr.msk.bf16.mxu1 %vm4797_vm2, %v4795_v0 }
 0x278   : > { %v1153_v18 = vpack.c.bf16 %v5068_v17, %v5065_v14  ;;  %4229 = vmatprep.subr.bf16.mxu1 %v4795_v0 }
 0x27a   : > { %1155 = vrot.lane.b32.xlu0 %v1153_v18, %s5755_s23 }
 0x2ec   : > { %v1156_v19 = vpop.permute.xlu0 %1155 }
 0x2ed   : > { %4202 = vmatmul.mubr.msk.bf16.vlgmr.msra.gmra.mxu0 %vm963_vm6, %v1156_v19 }
 0x2ee   : > { %4212 = vmatpush3.bf16.msra.mxu0 %v4996_v5  ;;  %4213 = vmatprep.mubr.msk.bf16.mxu0 %vm4797_vm2, %v4795_v0 }
 0x2ef   : > { %4223 = vmatprep.subr.bf16.mxu0 %v4795_v0 }
 0x336   : > { %v1241_v8 = vpop.f32.mrf.mxu1 }
 0x338   : > { %v4209_v20 = vpop.f32.mrf.mxu1 }
 0x33a   : > { %v1244_v21 = vpop.f32.mrf.mxu1 }
 0x33c   : > { %v4210_v22 = vpop.f32.mrf.mxu1 }
 0x3ad   : > { %v1194_v23 = vpop.f32.mrf.mxu0 }
 0x3ae   : > { %v1242_v24 = vadd.f32 %v1241_v8, %v1194_v23 }
 0x3af   : > { %v4203_v25 = vpop.f32.mrf.mxu0 }
 0x3b0   : > { %v1248_v26 = vadd.f32 %v1242_v24, %v5023_v16 }
 0x3b1   : > { %v1197_v27 = vpop.f32.mrf.mxu0 }
 0x3b2   : > { %4569 = vtanh.f32 %v1248_v26  ;;  %v1245_v28 = vadd.f32 %v1244_v21, %v1197_v27  ;;  %v4022_v34 = vmul.f32 -1.442695, %v1248_v26 }
 0x3b3   : > { %v4204_v31 = vpop.f32.mrf.mxu0 }
 0x3b4   : > { %v1249_v5 = vadd.f32 %v1245_v28, %v5023_v16 }
 0x3b6   : > { %4571 = vtanh.f32 %v1249_v5  ;;  %v4023_v35 = vmul.f32 -1.442695, %v1249_v5 }
 0x3b7   : > { %4573 = vpow2.f32 %v4022_v34 }
 0x3b8   : > { %4575 = vpow2.f32 %v4023_v35 }
 0x3bf   : > { %v4570_v32 = vpop.eup %4569 }
 0x3c0   : > { %1268 = vrot.lane.b32.xlu0 %v4570_v32, %s5753_s20 }
 0x3c3   : > { %v4572_v33 = vpop.eup %4571 }
 0x3c4   : > { %1270 = vrot.lane.b32.xlu1 %v4572_v33, %s5753_s20  ;;  %v4574_v36 = vpop.eup %4573 }
 0x3c5   : > { %v1256_v37 = vadd.f32 1.0, %v4574_v36  ;;  %v4576_v38 = vpop.eup %4575 }
 0x3c6   : > { %v1257_v39 = vadd.f32 1.0, %v4576_v38 }
 0x3c7   : > { %4577 = vrcp.f32 %v1256_v37 }
 0x3c8   : > { %4579 = vrcp.f32 %v1257_v39 }
 0x3d4   : > { %v4578_v40 = vpop.eup %4577 }
 0x3d5   : > { %v4580_v46 = vpop.eup %4579  ;;  %v1264_v56 = vmul.f32 %v4578_v40, %v5097_v53 }
 0x3d6   : > { %v1265_v61 = vmul.f32 %v4580_v46, %v5104_v58 }
 0x432   : > { %v1269_v41 = vpop.permute.xlu0 %1268 }
 0x433   : > { %v1274_v44 = vmul.f32 %v4578_v40, %v1269_v41 }
 0x435   : > { %1278 = vrot.lane.b32.xlu0 %v1274_v44, %s4800_s21 }
 0x436   : > { %v1271_v47 = vpop.permute.xlu1 %1270 }
 0x437   : > { %v1275_v48 = vmul.f32 %v4580_v46, %v1271_v47 }
 0x439   : > { %4525 = vperm.xlu0 %4517, %v4524_v45   ;;  %1280 = vrot.lane.b32.xlu1 %v1275_v48, %s4800_s21  ;;  %v4030_v45 = vsel %vm1482_vm9, 1.0, %v4795_v0 }
 0x43a   : > { %v1500_v29 = vsub.f32 1.0, %v4030_v45 }
 0x43d   : > { %1325 = vperm.xlu0 %4517, %v1317_v49   ;;  %1320 = vperm.xlu1 %4523, %v1316_v50  }
 0x4a7   : > { %v1279_v57 = vpop.permute.xlu0 %1278 }
 0x4a8   : > { %v5106_v60 = vadd.f32 %v1279_v57, %v1264_v56 }
 0x4aa   : > { %4581 = vtanh.f32 %v5106_v60 }
 0x4ab   : > { %v1281_v52 = vpop.permute.xlu1 %1280 }
 0x4ac   : > { %v5110_v62 = vadd.f32 %v1281_v52, %v1265_v61 }
 0x4ae   : > { %4583 = vtanh.f32 %v5110_v62 }
 0x4b4   : > { %v5116_v59 = vpop.permute.xlu0 %4525 }
 0x4b5   : > { %v4527_v6 = vunpack.i.l.bf16 %v5116_v59  ;;  %v4528_v9 = vunpack.i.h.bf16 %v5116_v59 }
 0x4b7   : > { %v4582_v63 = vpop.eup %4581  ;;  %v1332_v56 = vmul.f32 %v4527_v6, %v5106_v60  ;;  %v1333_v52 = vmul.f32 %v4528_v9, %v5110_v62 }
 0x4b8   : > { %1290 = vrot.lane.b32.xlu1 %v4582_v63, %s5757_s25  ;;  %v5118_v1 = vpop.permute.xlu1 %1320  ;;  %v5120_v2 = vpop.permute.xlu0 %1325 }
 0x4b9   : > { %v1328_v19 = vmul.f32 %v5118_v1, %v5065_v14  ;;  %v1334_v30 = vmul.f32 %v5118_v1, %v5097_v53  ;;  %v1335_v57 = vmul.f32 %v5120_v2, %v5104_v58  ;;  %v4535_v58 = vld [vmem:[%s5169_s22] sm:$0xff]  }
 0x4bb   : > { %v4584_v55 = vpop.eup %4583  ;;  %v1336_v61 = vadd.f32 %v1334_v30, %v1332_v56 }
 0x4bc   : > { %1292 = vrot.lane.b32.xlu0 %v4584_v55, %s5757_s25 }
 0x4c0   : > { %1386 = vrot.lane.b32.xlu0 %v5001_v10, %s4804_s29  ;;  %v1329_v10 = vmul.f32 %v5120_v2, %v5068_v17  ;;  %s5759_s29 = smov 64  }
 0x52a   : > { %v1291_v3 = vpop.permute.xlu1 %1290 }
 0x52b   : > { %v1296_v4 = vmul.f32 %v4578_v40, %v1291_v3  ;;  %v1337_v3 = vadd.f32 %v1335_v57, %v1333_v52 }
 0x52d   : > { %v1314_v13 = vmul.f32 %v4527_v6, %v1296_v4  ;;  %v4536_v6 = vld [vmem:[%s5169_s22 + $0x8] sm:$0xff]  }
 0x52e   : > { %v1293_v7 = vpop.permute.xlu0 %1292 }
 0x52f   : > { %v1297_v18 = vmul.f32 %v4580_v46, %v1293_v7  ;;  %v5132_v21 = vadd.f32 %v1328_v19, %v1314_v13  ;;  %v4031_v46 = vsel %vm1483_vm10, 1.0, %v4795_v0 }
 0x530   : > { %v4529_v48 = vpack.i.bf16 %v4031_v46, %v4030_v45  ;;  %v1501_v54 = vsub.f32 1.0, %v4031_v46 }
 0x531   : > { %v1315_v8 = vmul.f32 %v4528_v9, %v1297_v18 }
 0x532   : > { %v1387_v20 = vpop.permute.xlu0 %1386 }
 0x533   : > { %v5134_v22 = vadd.f32 %v1329_v10, %v1315_v8  ;;  %4220 = vmatmul.mubr.msk.bf16.vlgmr.msra.gmra.mxu1 %vm1008_vm3, %v1387_v20 }
 0x534   : > { %4231 = vmatprep.mubr.msk.bf16.mxu1 %vm4797_vm2, %v4795_v0  ;;  %4230 = vmatpush3.bf16.msra.mxu1 %v4535_v58 }
 0x535   : > { %v1338_v23 = vpack.c.bf16 %v5134_v22, %v5132_v21  ;;  %4243 = vmatprep.subr.bf16.mxu1 %v4795_v0 }
 0x537   : > { %1340 = vrot.lane.b32.xlu1 %v1338_v23, %s5755_s23  ;;  %s5786_s23 = sld [smem:[#allocation13_spill]] }
 0x53d   : > { %v1523_v62 = vld [vmem:[%s5786_s23] sm:$0xff]  ;;  %v1524_v59 = vld [vmem:[%s5786_s23 + $0x8] sm:$0xff] }
 0x53e   : > { %v1525_v9 = vpack.c.bf16 %v1524_v59, %v1523_v62 }
 0x540   : > { %4232 = vmatmul.mubr.msk.bf16.vlgmr.msra.gmra.mxu1 %vm963_vm6, %v1525_v9 }
 0x541   : > { %4245 = vmatprep.mubr.msk.bf16.mxu1 %vm4797_vm2, %v4795_v0 }
 0x5a9   : > { %v1341_v17 = vpop.permute.xlu1 %1340 }
 0x5aa   : > { %4214 = vmatmul.mubr.msk.bf16.vlgmr.msra.gmra.mxu0 %vm963_vm6, %v1341_v17 }
 0x5ab   : > { %4225 = vmatprep.mubr.msk.bf16.mxu0 %vm4797_vm2, %v4795_v0  ;;  %4224 = vmatpush3.bf16.msra.mxu0 %v4536_v6 }
 0x5ac   : > { %4235 = vmatprep.subr.bf16.mxu0 %v4795_v0 }
 0x5f3   : > { %v1425_v14 = vpop.f32.mrf.mxu1 }
 0x5f5   : > { %v4221_v24 = vpop.f32.mrf.mxu1 }
 0x5f7   : > { %v1428_v25 = vpop.f32.mrf.mxu1 }
 0x5f9   : > { %v4222_v26 = vpop.f32.mrf.mxu1 }
 0x66a   : > { %v1379_v27 = vpop.f32.mrf.mxu0 }
 0x66b   : > { %v1426_v28 = vadd.f32 %v1425_v14, %v1379_v27 }
 0x66c   : > { %v4215_v31 = vpop.f32.mrf.mxu0 }
 0x66d   : > { %v1432_v5 = vadd.f32 %v1426_v28, %v5023_v16 }
 0x66e   : > { %v1382_v32 = vpop.f32.mrf.mxu0 }
 0x66f   : > { %4585 = vtanh.f32 %v1432_v5  ;;  %v1429_v33 = vadd.f32 %v1428_v25, %v1382_v32  ;;  %v4028_v38 = vmul.f32 -1.442695, %v1432_v5  ;;  %v1526_v5 = vld [vmem:[%s5788_s0] sm:$0xff]  ;;  %s4807_s0 = smov 120  }
 0x670   : > { %v4216_v34 = vpop.f32.mrf.mxu0 }
 0x671   : > { %v1433_v35 = vadd.f32 %v1429_v33, %v5023_v16 }
 0x673   : > { %4587 = vtanh.f32 %v1433_v35  ;;  %v4029_v39 = vmul.f32 -1.442695, %v1433_v35 }
 0x674   : > { %4589 = vpow2.f32 %v4028_v38 }
 0x675   : > { %4591 = vpow2.f32 %v4029_v39 }
 0x67c   : > { %v4586_v36 = vpop.eup %4585 }
 0x67d   : > { %1452 = vrot.lane.b32.xlu1 %v4586_v36, %s5753_s20  ;;  %v1632_v36 = vpop.f32.mrf.mxu1 }
 0x680   : > { %v4588_v37 = vpop.eup %4587 }
 0x681   : > { %1454 = vrot.lane.b32.xlu0 %v4588_v37, %s5753_s20  ;;  %v4590_v40 = vpop.eup %4589  ;;  %v4233_v37 = vpop.f32.mrf.mxu1  ;;  %s4806_s20 = smov 88  }
 0x682   : > { %v1440_v41 = vadd.f32 1.0, %v4590_v40  ;;  %v4592_v42 = vpop.eup %4591  ;;  %v4103_v40 = vld [vmem:[%s5169_s22 + $0x10] sm:$0xff]  }
 0x683   : > { %v1441_v43 = vadd.f32 1.0, %v4592_v42  ;;  %v1635_v38 = vpop.f32.mrf.mxu1  ;;  %v4098_v59 = vunpack.c.h.bf16 %v4103_v40 }
 0x684   : > { %4593 = vrcp.f32 %v1440_v41  ;;  %v4097_v41 = vunpack.c.l.bf16 %v4103_v40 }
 0x685   : > { %4595 = vrcp.f32 %v1441_v43  ;;  %v4234_v39 = vpop.f32.mrf.mxu1  ;;  %v1678_v9 = vrot.slane %v4098_v59, %v5020_v15 }
 0x686   : > { %v1643_v42 = vrot.slane %v4097_v41, %v5020_v15 }
 0x691   : > { %v4594_v16 = vpop.eup %4593 }
 0x692   : > { %v4596_v49 = vpop.eup %4595  ;;  %v1448_v63 = vmul.f32 %v4594_v16, %v1336_v61 }
 0x693   : > { %v1449_v7 = vmul.f32 %v4596_v49, %v1337_v3 }
 0x6ef   : > { %v1453_v44 = vpop.permute.xlu1 %1452 }
 0x6f0   : > { %v1458_v47 = vmul.f32 %v4594_v16, %v1453_v44 }
 0x6f2   : > { %1462 = vrot.lane.b32.xlu1 %v1458_v47, %s4800_s21 }
 0x6f3   : > { %v1455_v50 = vpop.permute.xlu0 %1454 }
 0x6f4   : > { %v1459_v51 = vmul.f32 %v4596_v49, %v1455_v50 }
 0x6f6   : > { %4530 = vperm.xlu1 %4523, %v4529_v48   ;;  %1464 = vrot.lane.b32.xlu0 %v1459_v51, %s4800_s21  ;;  %s5211_s21 = scalar_lea.vmem %s5790_s9, %s4426_s7 }
 0x6fa   : > { %1509 = vperm.xlu1 %4523, %v1501_v54   ;;  %1504 = vperm.xlu0 %4517, %v1500_v29  }
 0x764   : > { %v1463_v55 = vpop.permute.xlu1 %1462 }
 0x765   : > { %v1468_v4 = vadd.f32 %v1463_v55, %v1448_v63 }
 0x767   : > { %4597 = vtanh.f32 %v1468_v4  ;;  %v4537_v4 = vld [vmem:[%s5211_s21 + $0x8] sm:$0xff]  }
 0x768   : > { %v1465_v13 = vpop.permute.xlu0 %1464 }
 0x769   : > { %v1469_v53 = vadd.f32 %v1465_v13, %v1449_v7  ;;  %v4538_v7 = vld [vmem:[%s5211_s21] sm:$0xff]  }
 0x76b   : > { %4599 = vtanh.f32 %v1469_v53 }
 0x771   : > { %v4531_v2 = vpop.permute.xlu1 %4530 }
 0x772   : > { %v4532_v8 = vunpack.i.l.bf16 %v4531_v2  ;;  %v4533_v24 = vunpack.i.h.bf16 %v4531_v2  ;;  %v1522_v2 = vld [vmem:[%s5169_s22 + $0x18] sm:$0xf]  ;;  %s5791_s22 = smov 96  }
 0x774   : > { %v4598_v1 = vpop.eup %4597 }
 0x775   : > { %1474 = vrot.lane.b32.xlu0 %v4598_v1, %s5757_s25  ;;  %v1505_v18 = vpop.permute.xlu0 %1504  ;;  %v1510_v10 = vpop.permute.xlu1 %1509 }
 0x776   : > { %v1512_v23 = vmul.f32 %v1505_v18, %v5132_v21  ;;  %v1513_v27 = vmul.f32 %v1510_v10, %v5134_v22  ;;  %v1527_v21 = vld [vmem:[%s5789_s1 + $0x8] sm:$0xff]  ;;  %v1681_v10 = vunpack.c.l.bf16 %v1522_v2 }
 0x778   : > { %v4600_v60 = vpop.eup %4599 }
 0x779   : > { %1476 = vrot.lane.b32.xlu1 %v4600_v60, %s5757_s25  ;;  %s5310_s25 = scalar_lea.vmem %s5792_s10, %s4426_s7  ;;  %s4810_s7 = smov 48  }
 0x7e7   : > { %v1475_v19 = vpop.permute.xlu0 %1474 }
 0x7e8   : > { %v1480_v20 = vmul.f32 %v4594_v16, %v1475_v19 }
 0x7ea   : > { %v1498_v17 = vmul.f32 %v4532_v8, %v1480_v20 }
 0x7eb   : > { %v1477_v14 = vpop.permute.xlu1 %1476 }
 0x7ec   : > { %v1481_v25 = vmul.f32 %v4596_v49, %v1477_v14  ;;  %v1514_v26 = vadd.f32 %v1512_v23, %v1498_v17  ;;  %v1685_v23 = vrot.slane %v1681_v10, %v5020_v15 }
 0x7ee   : > { %v1499_v28 = vmul.f32 %v4533_v24, %v1481_v25  ;;  %1530 = vrot.lane.b32.xlu0 %v1514_v26, %s5787_s3  ;;  %v1692_v26 = vld [vmem:[%s5211_s21 + $0x10] sm:$0xf]  ;;  %s4808_s21 = smov 56  }
 0x7f0   : > { %v1515_v31 = vadd.f32 %v1513_v27, %v1499_v28  ;;  %v1694_v27 = vunpack.c.l.bf16 %v1692_v26 }
 0x7f2   : > { %1532 = vrot.lane.b32.xlu1 %v1515_v31, %s5787_s3  ;;  %v1698_v28 = vrot.slane %v1694_v27, %v5020_v15 }
 0x860   : > { %v1531_v32 = vpop.permute.xlu0 %1530 }
 0x861   : > { %v1536_v34 = vadd.f32 %v1531_v32, %v1526_v5 }
 0x864   : > { %v1533_v33 = vpop.permute.xlu1 %1532 }
 0x865   : > { %v1537_v35 = vadd.f32 %v1533_v33, %v1527_v21 }
 0x867   : > { %v1538_v22 = vpack.c.bf16 %v1537_v35, %v1536_v34 }
 0x869   : > { %4226 = vmatmul.mubr.msk.bf16.vlgmr.msra.gmra.mxu0 %vm963_vm6, %v1538_v22 }
 0x86a   : > { %4239 = vmatprep.mubr.msk.bf16.mxu0 %vm4797_vm2, %v4795_v0  ;;  %4236 = vmatpush3.bf16.msra.mxu0 %v4537_v4 }
 0x86b   : > { %4237 = vmatprep.subr.bf16.mxu0 %v4795_v0 }
 0x86e   : > { %4238 = vmatpush3.bf16.msra.mxu0 %v4538_v7 }
 0x86f   : > { %4249 = vmatprep.subr.bf16.mxu0 %v4795_v0 }
 0x929   : > { %v1582_v43 = vpop.f32.mrf.mxu0 }
 0x92a   : > { %v1633_v16 = vadd.f32 %v1632_v36, %v1582_v43 }
 0x92b   : > { %v4227_v44 = vpop.f32.mrf.mxu0 }
 0x92c   : > { %v1644_v45 = vadd.f32 %v1643_v42, %v1633_v16 }
 0x92d   : > { %v1585_v46 = vpop.f32.mrf.mxu0 }
 0x92e   : > { %v1636_v47 = vadd.f32 %v1635_v38, %v1585_v46  ;;  %v1647_v48 = vsel %vm1646_vm11, %v1644_v45, 0.0 }
 0x92f   : > { %v4228_v49 = vpop.f32.mrf.mxu0  ;;  %1648 = vadd.xlane.f32.xlu0 %v1647_v48 }
 0x930   : > { %v1645_v50 = vadd.f32 %v1643_v42, %v1636_v47 }
 0x932   : > { %v1650_v51 = vsel %vm1646_vm11, %v1645_v50, 0.0 }
 0x933   : > { %1651 = vadd.xlane.f32.xlu1 %v1650_v51 }
 0x9b8   : > { %v1649_v54 = vpop.xlane.xlu0 %1648 }
 0x9b9   : > { %v1654_v29 = vmul.f32 0.03125, %v1649_v54 }
 0x9bb   : > { %v1656_v30 = vsub.f32 %v1644_v45, %v1654_v29 }
 0x9bc   : > { %v1652_v56 = vpop.xlane.xlu1 %1651 }
 0x9bd   : > { %v1655_v57 = vmul.f32 0.03125, %v1652_v56  ;;  %v1658_v61 = vmul.f32 %v1656_v30, %v1656_v30 }
 0x9bf   : > { %v1657_v52 = vsub.f32 %v1645_v50, %v1655_v57  ;;  %v1660_v63 = vsel %vm1646_vm11, %v1658_v61, 0.0 }
 0x9c0   : > { %1661 = vadd.xlane.f32.xlu0 %v1660_v63 }
 0x9c1   : > { %v1659_v55 = vmul.f32 %v1657_v52, %v1657_v52 }
 0x9c3   : > { %v1663_v3 = vsel %vm1646_vm11, %v1659_v55, 0.0 }
 0x9c4   : > { %1664 = vadd.xlane.f32.xlu0 %v1663_v3 }
 0xa49   : > { %v1662_v13 = vpop.xlane.xlu0 %1661 }
 0xa4a   : > { %v1666_v53 = vmul.f32 0.03125, %v1662_v13 }
 0xa4c   : > { %v1668_v1 = vadd.f32 1e-05, %v1666_v53 }
 0xa4d   : > { %v1665_v58 = vpop.xlane.xlu0 %1664 }
 0xa4e   : > { %4601 = vrsqrt.f32 %v1668_v1  ;;  %v1667_v60 = vmul.f32 0.03125, %v1665_v58 }
 0xa50   : > { %v1669_v62 = vadd.f32 1e-05, %v1667_v60 }
 0xa52   : > { %4603 = vrsqrt.f32 %v1669_v62 }
 0xa5b   : > { %v4602_v6 = vpop.eup %4601 }
 0xa5c   : > { %v1672_v18 = vmul.f32 %v4602_v6, %v1656_v30 }
 0xa5e   : > { %v1679_v20 = vmul.f32 %v1678_v9, %v1672_v18 }
 0xa5f   : > { %v4604_v19 = vpop.eup %4603 }
 0xa60   : > { %v1673_v8 = vmul.f32 %v4604_v19, %v1657_v52  ;;  %v5220_v14 = vadd.f32 %v1685_v23, %v1679_v20 }
 0xa62   : > { %v1680_v17 = vmul.f32 %v1678_v9, %v1673_v8 }
 0xa64   : > { %v5222_v24 = vadd.f32 %v1685_v23, %v1680_v17 }
 0xa66   : > { %v1693_v25 = vpack.c.bf16 %v5222_v24, %v5220_v14 }
 0xa68   : > { %4240 = vmatmul.mubr.msk.bf16.vlgmr.msra.gmra.mxu0 %vm1646_vm11, %v1693_v25 }
 0xa69   : > { %4251 = vmatprep.mubr.msk.bf16.mxu0 %vm4797_vm2, %v4795_v0 }
 0xb28   : > { %v1748_v31 = vpop.f32.mrf.mxu0 }
 0xb29   : > { %v1749_v5 = vadd.f32 %v1748_v31, %v1698_v28 }
 0xb2a   : > { %v4241_v32 = vpop.f32.mrf.mxu0 }
 0xb2b   : > { %v5231_v21 = vpack.c.bf16 %v1749_v5, %v1749_v5 }
 0xb2c   : > { %v1751_v33 = vpop.f32.mrf.mxu0 }
 0xb2d   : > { %v1752_v34 = vadd.f32 %v1751_v33, %v1698_v28  ;;  %1763 = vrot.lane.b32.xlu1 %v5231_v21, %s5791_s22 }
 0xb2e   : > { %v4242_v35 = vpop.f32.mrf.mxu0 }
 0xb2f   : > { %v5235_v22 = vpack.c.bf16 %v1752_v34, %v1752_v34 }
 0xb31   : > { %1813 = vrot.lane.b32.xlu0 %v5235_v22, %s5791_s22 }
 0xb9f   : > { %v1764_v36 = vpop.permute.xlu1 %1763 }
 0xba0   : > { %v1770_v37 = vsel %vm1765_vm12, %v1764_v36, 0 }
 0xba1   : > { %4244 = vmatpush3.bf16.xpose.msra.mxu1 %v1770_v37 }
 0xba2   : > { %4255 = vmatprep.subr.bf16.mxu1 %v4795_v0 }
 0xba3   : > { %v1814_v38 = vpop.permute.xlu0 %1813 }
 0xba4   : > { %v1819_v39 = vsel %vm1765_vm12, %v1814_v38, 0 }
 0xba5   : > { %4250 = vmatpush3.bf16.xpose.msra.mxu0 %v1819_v39 }
 0xba6   : > { %4261 = vmatprep.subr.bf16.mxu0 %v4795_v0 }
 0xba8   : > { %4246 = vmatmul.mubr.msk.bf16.vlgmr.msra.gmra.mxu1 %vm1765_vm12, %v5231_v21 }
 0xba9   : > { %4257 = vmatprep.mubr.msk.bf16.mxu1 %vm4797_vm2, %v4795_v0 }
 0xbac   : > { %4252 = vmatmul.mubr.msk.bf16.vlgmr.msra.gmra.mxu0 %vm1765_vm12, %v5235_v22 }
 0xbad   : > { %4263 = vmatprep.mubr.msk.bf16.mxu0 %vm4797_vm2, %v4795_v0 }
 0xc68   : > { %v1806_v40 = vpop.f32.mrf.mxu1 }
 0xc69   : > { %v1861_v41 = vmul.f32 0.35355338, %v1806_v40 }
 0xc6a   : > { %v4247_v42 = vpop.f32.mrf.mxu1 }
 0xc6b   : > { %v1863_v43 = vsel %vm1765_vm12, %v1861_v41, -inf }
 0xc6c   : > { %v1855_v16 = vpop.f32.mrf.mxu0  ;;  %1864 = vmax.xlane.f32.xlu1 %v1863_v43  ;;  %v1809_v44 = vpop.f32.mrf.mxu1 }
 0xc6d   : > { %v1862_v45 = vmul.f32 0.35355338, %v1855_v16 }
 0xc6e   : > { %v4248_v46 = vpop.f32.mrf.mxu1  ;;  %v4253_v47 = vpop.f32.mrf.mxu0 }
 0xc6f   : > { %v1866_v48 = vsel %vm1765_vm12, %v1862_v45, -inf }
 0xc70   : > { %1867 = vmax.xlane.f32.xlu0 %v1866_v48  ;;  %v1858_v49 = vpop.f32.mrf.mxu0 }
 0xc72   : > { %v4254_v50 = vpop.f32.mrf.mxu0 }
 0xc7d   : > { %1887 = vrot.lane.b32.xlu1 %v5231_v21, %s5759_s29 }
 0xcf5   : > { %v1865_v51 = vpop.xlane.xlu1 %1864 }
 0xcf6   : > { %v1869_v54 = vsub.f32 %v1861_v41, %v1865_v51 }
 0xcf8   : > { %v1871_v29 = vmul.f32 1.442695, %v1869_v54 }
 0xcf9   : > { %v1868_v30 = vpop.xlane.xlu0 %1867  ;;  %v1888_v56 = vpop.permute.xlu1 %1887 }
 0xcfa   : > { %4605 = vpow2.f32 %v1871_v29  ;;  %v1870_v57 = vsub.f32 %v1862_v45, %v1868_v30  ;;  %v1894_v61 = vsel %vm1892_vm13, %v1888_v56, 0 }
 0xcfb   : > { %4256 = vmatpush3.bf16.msra.mxu1 %v1894_v61 }
 0xcfc   : > { %v1873_v52 = vmul.f32 1.442695, %v1870_v57  ;;  %4267 = vmatprep.subr.bf16.mxu1 %v4795_v0 }
 0xcfe   : > { %4607 = vpow2.f32 %v1873_v52 }
 0xd07   : > { %v4606_v63 = vpop.eup %4605 }
 0xd08   : > { %v1875_v55 = vsel %vm1765_vm12, %v4606_v63, 0.0 }
 0xd09   : > { %1876 = vadd.xlane.f32.xlu1 %v1875_v55 }
 0xd0b   : > { %v4608_v3 = vpop.eup %4607 }
 0xd0c   : > { %v1878_v4 = vsel %vm1765_vm12, %v4608_v3, 0.0 }
 0xd0d   : > { %1879 = vadd.xlane.f32.xlu0 %v1878_v4 }
 0xd1a   : > { %1987 = vrot.lane.b32.xlu1 %v5231_v21, %s4806_s20 }
 0xd1e   : > { %2037 = vrot.lane.b32.xlu1 %v5235_v22, %s4806_s20  ;;  %s4809_s20 = smov 112  }
 0xd22   : > { %2035 = vrot.lane.b32.xlu1 %v5235_v22, %s4807_s0 }
 0xd23   : > { %1936 = vrot.lane.b32.xlu0 %v5235_v22, %s5759_s29 }
 0xd27   : > { %1985 = vrot.lane.b32.xlu0 %v5231_v21, %s4807_s0  ;;  %s5529_s0 = sand.u32 1, %s4777_s28  }
 0xd92   : > { %v1877_v7 = vpop.xlane.xlu1 %1876 }
 0xd93   : > { %4609 = vrcp.f32 %v1877_v7 }
 0xd96   : > { %v1880_v13 = vpop.xlane.xlu0 %1879  ;;  %v1988_v60 = vpop.permute.xlu1 %1987 }
 0xd97   : > { %4611 = vrcp.f32 %v1880_v13  ;;  %v1993_v6 = vsel %vm1765_vm12, %v1988_v60, 0  ;;  %v1755_v13 = vld [vmem:[%s5310_s25] sm:$0xf] }
 0xd9a   : > { %v1937_v53 = vpop.permute.xlu0 %1936  ;;  %v2038_v18 = vpop.permute.xlu1 %2037 }
 0xd9b   : > { %v1942_v1 = vsel %vm1892_vm13, %v1937_v53, 0  ;;  %v2043_v19 = vsel %vm1765_vm12, %v2038_v18, 0 }
 0xd9c   : > { %4262 = vmatpush3.bf16.msra.mxu0 %v1942_v1 }
 0xd9d   : > { %4273 = vmatprep.subr.bf16.mxu0 %v4795_v0 }
 0xd9e   : > { %v1986_v8 = vpop.permute.xlu0 %1985  ;;  %v2036_v20 = vpop.permute.xlu1 %2035 }
 0xda0   : > { %v4610_v58 = vpop.eup %4609 }
 0xda1   : > { %v1883_v62 = vmul.f32 %v4610_v58, %v4606_v63  ;;  %v2259_v58 = vsel %vm1892_vm13, %v1755_v13, 0 }
 0xda3   : > { %v1885_v59 = vpack.c.bf16 %v1883_v62, %v1883_v62 }
 0xda4   : > { %v4612_v2 = vpop.eup %4611 }
 0xda5   : > { %4258 = vmatmul.mubr.msk.bf16.vlgmr.msra.gmra.mxu1 %vm1765_vm12, %v1885_v59  ;;  %v1884_v9 = vmul.f32 %v4612_v2, %v4608_v3 }
 0xda6   : > { %4268 = vmatpush3.bf16.xpose.msra.mxu1 %v1993_v6  ;;  %4269 = vmatprep.mubr.msk.bf16.mxu1 %vm4797_vm2, %v4795_v0  ;;  %v1756_v6 = vld [vmem:[%s5310_s25 + $0x4] sm:$0xf] }
 0xda7   : > { %v1886_v10 = vpack.c.bf16 %v1884_v9, %v1884_v9  ;;  %4279 = vmatprep.subr.bf16.mxu1 %v4795_v0  ;;  %v2212_v9 = vsel %vm1892_vm13, %v1756_v6, 0 }
 0xda9   : > { %4264 = vmatmul.mubr.msk.bf16.vlgmr.msra.gmra.mxu0 %vm1765_vm12, %v1886_v10 }
 0xdaa   : > { %4274 = vmatpush3.bf16.xpose.msra.mxu0 %v2043_v19  ;;  %4275 = vmatprep.mubr.msk.bf16.mxu0 %vm4797_vm2, %v4795_v0 }
 0xdab   : > { %4285 = vmatprep.subr.bf16.mxu0 %v4795_v0 }
 0xdad   : > { %4270 = vmatmul.mubr.msk.bf16.vlgmr.msra.gmra.mxu1 %vm1765_vm12, %v1986_v8 }
 0xdae   : > { %4281 = vmatprep.mubr.msk.bf16.mxu1 %vm4797_vm2, %v4795_v0 }
 0xdb1   : > { %4276 = vmatmul.mubr.msk.bf16.vlgmr.msra.gmra.mxu0 %vm1765_vm12, %v2036_v20 }
 0xdb2   : > { %4287 = vmatprep.mubr.msk.bf16.mxu0 %vm4797_vm2, %v4795_v0 }
 0xe65   : > { %v5283_v23 = vpop.f32.mrf.mxu1 }
 0xe67   : > { %v4259_v17 = vpop.f32.mrf.mxu1 }
 0xe69   : > { %v1933_v25 = vpop.f32.mrf.mxu1  ;;  %v5285_v26 = vpop.f32.mrf.mxu0 }
 0xe6a   : > { %v1984_v27 = vpack.c.bf16 %v5285_v26, %v5283_v23 }
 0xe6b   : > { %v4260_v28 = vpop.f32.mrf.mxu1  ;;  %v4265_v31 = vpop.f32.mrf.mxu0 }
 0xe6d   : > { %v1981_v5 = vpop.f32.mrf.mxu0  ;;  %v2029_v32 = vpop.f32.mrf.mxu1 }
 0xe6e   : > { %v2085_v33 = vmul.f32 0.35355338, %v2029_v32 }
 0xe6f   : > { %v4266_v34 = vpop.f32.mrf.mxu0  ;;  %v4271_v35 = vpop.f32.mrf.mxu1 }
 0xe70   : > { %v2087_v36 = vsel %vm1765_vm12, %v2085_v33, -inf }
 0xe71   : > { %v2079_v37 = vpop.f32.mrf.mxu0  ;;  %2088 = vmax.xlane.f32.xlu0 %v2087_v36  ;;  %v2032_v38 = vpop.f32.mrf.mxu1 }
 0xe72   : > { %v2086_v39 = vmul.f32 0.35355338, %v2079_v37 }
 0xe73   : > { %v4272_v40 = vpop.f32.mrf.mxu1  ;;  %v4277_v41 = vpop.f32.mrf.mxu0 }
 0xe74   : > { %v2090_v42 = vsel %vm1765_vm12, %v2086_v39, -inf }
 0xe75   : > { %2091 = vmax.xlane.f32.xlu1 %v2090_v42  ;;  %v2082_v43 = vpop.f32.mrf.mxu0 }
 0xe77   : > { %v4278_v16 = vpop.f32.mrf.mxu0 }
 0xe86   : > { %2111 = vrot.lane.b32.xlu1 %v5231_v21, %s4808_s21 }
 0xe8a   : > { %2304 = vrot.lane.b32.xlu1 %v5231_v21, %s5787_s3 }
 0xe8e   : > { %2354 = vrot.lane.b32.xlu1 %v5235_v22, %s5787_s3  ;;  %s4813_s3 = smov 40  }
 0xe92   : > { %2352 = vrot.lane.b32.xlu1 %v5235_v22, %s4809_s20 }
 0xefa   : > { %v2089_v44 = vpop.xlane.xlu0 %2088 }
 0xefb   : > { %v2093_v45 = vsub.f32 %v2085_v33, %v2089_v44 }
 0xefd   : > { %v2095_v46 = vmul.f32 1.442695, %v2093_v45 }
 0xefe   : > { %v2092_v47 = vpop.xlane.xlu1 %2091 }
 0xeff   : > { %4613 = vpow2.f32 %v2095_v46  ;;  %v2094_v48 = vsub.f32 %v2086_v39, %v2092_v47 }
 0xf01   : > { %v2097_v49 = vmul.f32 1.442695, %v2094_v48 }
 0xf02   : > { %v2112_v50 = vpop.permute.xlu1 %2111 }
 0xf03   : > { %4615 = vpow2.f32 %v2097_v49  ;;  %v2117_v51 = vsel %vm1892_vm13, %v2112_v50, 0 }
 0xf04   : > { %4280 = vmatpush3.bf16.msra.mxu1 %v2117_v51 }
 0xf05   : > { %4291 = vmatprep.subr.bf16.mxu1 %v4795_v0 }
 0xf06   : > { %v2305_v60 = vpop.permute.xlu1 %2304 }
 0xf07   : > { %v2310_v25 = vsel %vm1765_vm12, %v2305_v60, 0 }
 0xf0a   : > { %v2355_v62 = vpop.permute.xlu1 %2354 }
 0xf0b   : > { %v2360_v59 = vsel %vm1765_vm12, %v2355_v62, 0 }
 0xf0c   : > { %v4614_v54 = vpop.eup %4613 }
 0xf0d   : > { %v2099_v29 = vsel %vm1765_vm12, %v4614_v54, 0.0 }
 0xf0e   : > { %2100 = vadd.xlane.f32.xlu0 %v2099_v29  ;;  %v2353_v2 = vpop.permute.xlu1 %2352 }
 0xf10   : > { %v4616_v30 = vpop.eup %4615 }
 0xf11   : > { %v2102_v56 = vsel %vm1765_vm12, %v4616_v30, 0.0 }
 0xf12   : > { %2103 = vadd.xlane.f32.xlu0 %v2102_v56 }
 0xf28   : > { %2159 = vrot.lane.b32.xlu0 %v5235_v22, %s4808_s21  ;;  %s4811_s21 = smov 72  }
 0xf2c   : > { %2302 = vrot.lane.b32.xlu0 %v5231_v21, %s4809_s20  ;;  %s4812_s20 = smov 104  }
 0xf97   : > { %v2101_v57 = vpop.xlane.xlu0 %2100 }
 0xf98   : > { %4617 = vrcp.f32 %v2101_v57 }
 0xf9b   : > { %v2104_v61 = vpop.xlane.xlu0 %2103 }
 0xf9c   : > { %4619 = vrcp.f32 %v2104_v61 }
 0xf9f   : > { %v2160_v52 = vpop.permute.xlu0 %2159 }
 0xfa0   : > { %v2165_v63 = vsel %vm1892_vm13, %v2160_v52, 0 }
 0xfa1   : > { %4286 = vmatpush3.bf16.msra.mxu0 %v2165_v63 }
 0xfa2   : > { %4297 = vmatprep.subr.bf16.mxu0 %v4795_v0 }
 0xfa3   : > { %v2303_v31 = vpop.permute.xlu0 %2302 }
 0xfa5   : > { %v4618_v55 = vpop.eup %4617 }
 0xfa6   : > { %v2107_v3 = vmul.f32 %v4618_v55, %v4614_v54 }
 0xfa8   : > { %v2109_v4 = vpack.c.bf16 %v2107_v3, %v2107_v3 }
 0xfa9   : > { %v4620_v7 = vpop.eup %4619 }
 0xfaa   : > { %4282 = vmatmul.mubr.msk.bf16.vlgmr.msra.gmra.mxu1 %vm1765_vm12, %v2109_v4  ;;  %v2108_v53 = vmul.f32 %v4620_v7, %v4616_v30 }
 0xfab   : > { %4293 = vmatprep.mubr.msk.bf16.mxu1 %vm4797_vm2, %v4795_v0  ;;  %4292 = vmatpush3.bf16.msra.mxu1 %v2212_v9 }
 0xfac   : > { %v2110_v1 = vpack.c.bf16 %v2108_v53, %v2108_v53  ;;  %4303 = vmatprep.subr.bf16.mxu1 %v4795_v0 }
 0xfae   : > { %4288 = vmatmul.mubr.msk.bf16.vlgmr.msra.gmra.mxu0 %vm1765_vm12, %v2110_v1 }
 0xfaf   : > { %4298 = vmatpush3.bf16.msra.mxu0 %v2259_v58  ;;  %4299 = vmatprep.mubr.msk.bf16.mxu0 %vm4797_vm2, %v4795_v0 }
 0xfb0   : > { %4309 = vmatprep.subr.bf16.mxu0 %v4795_v0 }
 0xfb6   : > { %4300 = vmatmul.mubr.msk.bf16.vlgmr.msra.gmra.mxu0 %vm1765_vm12, %v1984_v27 }
 0xfb7   : > { %4310 = vmatpush3.bf16.xpose.msra.mxu0 %v2360_v59  ;;  %4311 = vmatprep.mubr.msk.bf16.mxu0 %vm4797_vm2, %v4795_v0 }
 0xfb8   : > { %4321 = vmatprep.subr.bf16.mxu0 %v4795_v0 }
 0xfbe   : > { %4312 = vmatmul.mubr.msk.bf16.vlgmr.msra.gmra.mxu0 %vm1765_vm12, %v2353_v2 }
 0xfbf   : > { %4323 = vmatprep.mubr.msk.bf16.mxu0 %vm4797_vm2, %v4795_v0 }
0x106a   : > { %v2153_v18 = vpop.f32.mrf.mxu1 }
0x106c   : > { %v4283_v10 = vpop.f32.mrf.mxu1 }
0x106e   : > { %v2156_v19 = vpop.f32.mrf.mxu1  ;;  %v2201_v8 = vpop.f32.mrf.mxu0 }
0x106f   : > { %v2207_v20 = vpack.c.bf16 %v2201_v8, %v2153_v18  ;;  %v1757_v18 = vld [vmem:[%s5310_s25 + $0x8] sm:$0xf] }
0x1070   : > { %v4284_v23 = vpop.f32.mrf.mxu1  ;;  %v4289_v17 = vpop.f32.mrf.mxu0  ;;  %v2529_v10 = vsel %vm1892_vm13, %v1757_v18, 0 }
0x1071   : > { %4294 = vmatmul.mubr.msk.bf16.vlgmr.msra.gmra.mxu1 %vm1765_vm12, %v2207_v20 }
0x1072   : > { %4304 = vmatpush3.bf16.xpose.msra.mxu1 %v2310_v25  ;;  %v2204_v26 = vpop.f32.mrf.mxu0  ;;  %4305 = vmatprep.mubr.msk.bf16.mxu1 %vm4797_vm2, %v4795_v0 }
0x1073   : > { %4315 = vmatprep.subr.bf16.mxu1 %v4795_v0 }
0x1074   : > { %v4290_v27 = vpop.f32.mrf.mxu0 }
0x1076   : > { %v5340_v28 = vpop.f32.mrf.mxu0 }
0x1078   : > { %v4301_v5 = vpop.f32.mrf.mxu0 }
0x1079   : > { %4306 = vmatmul.mubr.msk.bf16.vlgmr.msra.gmra.mxu1 %vm1765_vm12, %v2303_v31 }
0x107a   : > { %v5343_v32 = vpop.f32.mrf.mxu0  ;;  %4317 = vmatprep.mubr.msk.bf16.mxu1 %vm4797_vm2, %v4795_v0 }
0x107c   : > { %v4302_v33 = vpop.f32.mrf.mxu0 }
0x107e   : > { %v2396_v34 = vpop.f32.mrf.mxu0 }
0x107f   : > { %v2403_v35 = vmul.f32 0.35355338, %v2396_v34 }
0x1080   : > { %v4313_v36 = vpop.f32.mrf.mxu0 }
0x1081   : > { %v2407_v37 = vsel %vm1765_vm12, %v2403_v35, -inf }
0x1082   : > { %2408 = vmax.xlane.f32.xlu1 %v2407_v37  ;;  %v2399_v38 = vpop.f32.mrf.mxu0 }
0x1084   : > { %v4314_v39 = vpop.f32.mrf.mxu0 }
0x1093   : > { %2428 = vrot.lane.b32.xlu1 %v5231_v21, %s4810_s7 }
0x1097   : > { %2576 = vrot.lane.b32.xlu1 %v5231_v21, %s4811_s21 }
0x109b   : > { %2626 = vrot.lane.b32.xlu1 %v5235_v22, %s4811_s21 }
0x109f   : > { %2624 = vrot.lane.b32.xlu1 %v5235_v22, %s4812_s20 }
0x110b   : > { %v2409_v40 = vpop.xlane.xlu1 %2408 }
0x110c   : > { %v2411_v43 = vsub.f32 %v2403_v35, %v2409_v40 }
0x110e   : > { %v2414_v16 = vmul.f32 1.442695, %v2411_v43 }
0x110f   : > { %v2429_v41 = vpop.permute.xlu1 %2428 }
0x1110   : > { %v2434_v42 = vsel %vm1892_vm13, %v2429_v41, 0  ;;  %4621 = vpow2.f32 %v2414_v16 }
0x1111   : > { %4316 = vmatpush3.bf16.msra.mxu1 %v2434_v42 }
0x1112   : > { %4327 = vmatprep.subr.bf16.mxu1 %v4795_v0 }
0x1113   : > { %v2577_v58 = vpop.permute.xlu1 %2576 }
0x1114   : > { %v2582_v62 = vsel %vm1765_vm12, %v2577_v58, 0  ;;  %v1758_v58 = vld [vmem:[%s5310_s25 + $0xc] sm:$0xf] }
0x1117   : > { %v2627_v25 = vpop.permute.xlu1 %2626 }
0x1118   : > { %v2632_v36 = vsel %vm1765_vm12, %v2627_v25, 0 }
0x111b   : > { %v2625_v40 = vpop.permute.xlu1 %2624 }
0x111d   : > { %v4622_v54 = vpop.eup %4621 }
0x111e   : > { %v2419_v56 = vsel %vm1765_vm12, %v4622_v54, 0.0 }
0x1131   : > { %v5356_v44 = vpop.f32.mrf.mxu1 }
0x1133   : > { %v4295_v45 = vpop.f32.mrf.mxu1 }
0x1135   : > { %v5358_v46 = vpop.f32.mrf.mxu1 }
0x1137   : > { %v4296_v47 = vpop.f32.mrf.mxu1 }
0x1138   : > { %v2296_v47 = vadd.f32 %v5340_v28, %v5356_v44 }
0x1139   : > { %v2346_v48 = vpop.f32.mrf.mxu1 }
0x113a   : > { %v2402_v49 = vmul.f32 0.35355338, %v2346_v48 }
0x113b   : > { %v4307_v50 = vpop.f32.mrf.mxu1 }
0x113c   : > { %v2404_v51 = vsel %vm1765_vm12, %v2402_v49, -inf }
0x113d   : > { %2405 = vmax.xlane.f32.xlu0 %v2404_v51  ;;  %v2349_v29 = vpop.f32.mrf.mxu1  ;;  %v2299_v51 = vadd.f32 %v5343_v32, %v5358_v46 }
0x113f   : > { %v4308_v30 = vpop.f32.mrf.mxu1 }
0x1141   : > { %2420 = vadd.xlane.f32.xlu0 %v2419_v56 }
0x11c6   : > { %v2406_v57 = vpop.xlane.xlu0 %2405 }
0x11c7   : > { %v2410_v61 = vsub.f32 %v2402_v49, %v2406_v57 }
0x11c9   : > { %v2412_v52 = vmul.f32 1.442695, %v2410_v61 }
0x11ca   : > { %v2421_v3 = vpop.xlane.xlu0 %2420 }
0x11cb   : > { %4623 = vpow2.f32 %v2412_v52 }
0x11cc   : > { %4625 = vrcp.f32 %v2421_v3 }
0x11d8   : > { %v4624_v63 = vpop.eup %4623 }
0x11d9   : > { %v2416_v55 = vsel %vm1765_vm12, %v4624_v63, 0.0  ;;  %v4626_v4 = vpop.eup %4625 }
0x11da   : > { %2417 = vadd.xlane.f32.xlu0 %v2416_v55  ;;  %v2425_v13 = vmul.f32 %v4626_v4, %v4622_v54 }
0x11dc   : > { %v2427_v60 = vpack.c.bf16 %v2425_v13, %v2425_v13 }
0x11f0   : > { %2476 = vrot.lane.b32.xlu0 %v5235_v22, %s4810_s7  ;;  %s5762_s7 = sshll.u32 %s5529_s0, 1 }
0x11f4   : > { %2574 = vrot.lane.b32.xlu0 %v5231_v21, %s4812_s20  ;;  %s4428_s20 = smul.u32 44, %s4978_s26 }
0x11f6   : > { %s5447_s1 = scalar_lea.vmem %s5794_s12, %s4428_s20 }
0x1263   : > { %v2418_v7 = vpop.xlane.xlu0 %2417 }
0x1264   : > { %4627 = vrcp.f32 %v2418_v7 }
0x1267   : > { %v2477_v53 = vpop.permute.xlu0 %2476 }
0x1268   : > { %v2482_v1 = vsel %vm1892_vm13, %v2477_v53, 0 }
0x1269   : > { %4322 = vmatpush3.bf16.msra.mxu0 %v2482_v1 }
0x126a   : > { %4333 = vmatprep.subr.bf16.mxu0 %v4795_v0 }
0x126b   : > { %v2575_v6 = vpop.permute.xlu0 %2574 }
0x126c   : > { %4324 = vmatmul.mubr.msk.bf16.vlgmr.msra.gmra.mxu0 %vm1765_vm12, %v2427_v60  ;;  %v2801_v60 = vsel %vm1892_vm13, %v1758_v58, 0 }
0x126d   : > { %4334 = vmatpush3.bf16.xpose.msra.mxu0 %v2582_v62  ;;  %4335 = vmatprep.mubr.msk.bf16.mxu0 %vm4797_vm2, %v4795_v0 }
0x126e   : > { %4345 = vmatprep.subr.bf16.mxu0 %v4795_v0 }
0x1271   : > { %v4628_v59 = vpop.eup %4627 }
0x1272   : > { %v2424_v2 = vmul.f32 %v4628_v59, %v4624_v63 }
0x1274   : > { %4336 = vmatmul.mubr.msk.bf16.vlgmr.msra.gmra.mxu0 %vm1765_vm12, %v2575_v6  ;;  %v2426_v9 = vpack.c.bf16 %v2424_v2, %v2424_v2 }
0x1275   : > { %4347 = vmatprep.mubr.msk.bf16.mxu0 %vm4797_vm2, %v4795_v0 }
0x1276   : > { %4318 = vmatmul.mubr.msk.bf16.vlgmr.msra.gmra.mxu1 %vm1765_vm12, %v2426_v9 }
0x1277   : > { %4329 = vmatprep.mubr.msk.bf16.mxu1 %vm4797_vm2, %v4795_v0  ;;  %4328 = vmatpush3.bf16.msra.mxu1 %v2529_v10 }
0x1278   : > { %4339 = vmatprep.subr.bf16.mxu1 %v4795_v0 }
0x132c   : > { %v2518_v19 = vpop.f32.mrf.mxu0 }
0x132e   : > { %v4325_v8 = vpop.f32.mrf.mxu0 }
0x1330   : > { %v2521_v20 = vpop.f32.mrf.mxu0 }
0x1332   : > { %v4326_v23 = vpop.f32.mrf.mxu0 }
0x1334   : > { %v2618_v17 = vpop.f32.mrf.mxu0 }
0x1335   : > { %v2674_v26 = vmul.f32 0.35355338, %v2618_v17 }
0x1336   : > { %v2470_v27 = vpop.f32.mrf.mxu1  ;;  %v4337_v31 = vpop.f32.mrf.mxu0 }
0x1337   : > { %v2524_v5 = vpack.c.bf16 %v2518_v19, %v2470_v27  ;;  %v2676_v33 = vsel %vm1765_vm12, %v2674_v26, -inf  ;;  %v1759_v27 = vld [vmem:[%s5310_s25 + $0x10] sm:$0xf]  ;;  %s4427_s25 = smul.u32 48, %s4978_s26 }
0x1338   : > { %2677 = vmax.xlane.f32.xlu0 %v2676_v33  ;;  %v4319_v34 = vpop.f32.mrf.mxu1  ;;  %v2621_v35 = vpop.f32.mrf.mxu0  ;;  %v2846_v31 = vunpack.c.l.bf16 %v1759_v27 }
0x1339   : > { %4330 = vmatmul.mubr.msk.bf16.vlgmr.msra.gmra.mxu1 %vm1765_vm12, %v2524_v5  ;;  %s5435_s21 = scalar_lea.vmem %s5793_s11, %s4427_s25  ;;  %s5797_s25 = smov 64  }
0x133a   : > { %4340 = vmatpush3.bf16.xpose.msra.mxu1 %v2632_v36  ;;  %v2473_v37 = vpop.f32.mrf.mxu1  ;;  %v4338_v38 = vpop.f32.mrf.mxu0  ;;  %4341 = vmatprep.mubr.msk.bf16.mxu1 %vm4797_vm2, %v4795_v0  ;;  %v2850_v5 = vrot.slane %v2846_v31, %v5020_v15 }
0x133b   : > { %4351 = vmatprep.subr.bf16.mxu1 %v4795_v0 }
0x133c   : > { %v4320_v39 = vpop.f32.mrf.mxu1 }
0x1341   : > { %4342 = vmatmul.mubr.msk.bf16.vlgmr.msra.gmra.mxu1 %vm1765_vm12, %v2625_v40 }
0x1342   : > { %4353 = vmatprep.mubr.msk.bf16.mxu1 %vm4797_vm2, %v4795_v0 }
0x13c1   : > { %v2678_v41 = vpop.xlane.xlu0 %2677 }
0x13c2   : > { %v2682_v42 = vsub.f32 %v2674_v26, %v2678_v41 }
0x13c4   : > { %v2684_v43 = vmul.f32 1.442695, %v2682_v42 }
0x13c6   : > { %4629 = vpow2.f32 %v2684_v43 }
0x13d3   : > { %v4630_v16 = vpop.eup %4629 }
0x13d4   : > { %v2688_v45 = vsel %vm1765_vm12, %v4630_v16, 0.0 }
0x13d5   : > { %2689 = vadd.xlane.f32.xlu0 %v2688_v45 }
0x13f9   : > { %v2565_v48 = vpop.f32.mrf.mxu1 }
0x13fa   : > { %v5395_v49 = vadd.f32 %v2565_v48, %v2296_v47 }
0x13fb   : > { %v4331_v50 = vpop.f32.mrf.mxu1 }
0x13fd   : > { %v2568_v54 = vpop.f32.mrf.mxu1 }
0x13fe   : > { %v5399_v29 = vadd.f32 %v2568_v54, %v2299_v51 }
0x13ff   : > { %v4332_v30 = vpop.f32.mrf.mxu1 }
0x1401   : > { %v2668_v56 = vpop.f32.mrf.mxu1 }
0x1402   : > { %v2675_v57 = vmul.f32 0.35355338, %v2668_v56  ;;  %v4540_v56 = vld [vmem:[%s5435_s21] sm:$0xff]  }
0x1403   : > { %v4343_v61 = vpop.f32.mrf.mxu1 }
0x1404   : > { %v2679_v52 = vsel %vm1765_vm12, %v2675_v57, -inf }
0x1405   : > { %2680 = vmax.xlane.f32.xlu1 %v2679_v52  ;;  %v2671_v63 = vpop.f32.mrf.mxu1 }
0x1407   : > { %v4344_v55 = vpop.f32.mrf.mxu1 }
0x1416   : > { %2700 = vrot.lane.b32.xlu1 %v5231_v21, %s4813_s3 }
0x145e   : > { %v2690_v28 = vpop.xlane.xlu0 %2689 }
0x145f   : > { %4631 = vrcp.f32 %v2690_v28 }
0x146c   : > { %v4632_v44 = vpop.eup %4631 }
0x146d   : > { %v2696_v4 = vmul.f32 %v4632_v44, %v4630_v16  ;;  %v4104_v44 = vld [vmem:[%s5435_s21 + $0x28] sm:$0xff]  }
0x146f   : > { %v2698_v53 = vpack.c.bf16 %v2696_v4, %v2696_v4  ;;  %v4102_v4 = vunpack.c.h.bf16 %v4104_v44 }
0x148e   : > { %v2681_v3 = vpop.xlane.xlu1 %2680 }
0x148f   : > { %v2683_v32 = vsub.f32 %v2675_v57, %v2681_v3  ;;  %v4101_v3 = vunpack.c.l.bf16 %v4104_v44 }
0x1491   : > { %v2686_v46 = vmul.f32 1.442695, %v2683_v32 }
0x1492   : > { %v2701_v7 = vpop.permute.xlu1 %2700 }
0x1493   : > { %4633 = vpow2.f32 %v2686_v46  ;;  %v2706_v13 = vsel %vm1892_vm13, %v2701_v7, 0  ;;  %v5451_v7 = vrot.slane %v4101_v3, %v5020_v15 }
0x1494   : > { %4346 = vmatpush3.bf16.msra.mxu0 %v2706_v13 }
0x1495   : > { %4357 = vmatprep.subr.bf16.mxu0 %v4795_v0 }
0x1497   : > { %4348 = vmatmul.mubr.msk.bf16.vlgmr.msra.gmra.mxu0 %vm1765_vm12, %v2698_v53 }
0x1498   : > { %4359 = vmatprep.mubr.msk.bf16.mxu0 %vm4797_vm2, %v4795_v0  ;;  %4358 = vmatpush3.bf16.msra.mxu0 %v2801_v60  ;;  %v3067_v60 = vld [vmem:[%s5447_s1] sm:$0xf] }
0x1499   : > { %4371 = vmatprep.subr.bf16.mxu0 %v4795_v0 }
0x14a0   : > { %v4634_v21 = vpop.eup %4633 }
0x14a1   : > { %v2691_v1 = vsel %vm1765_vm12, %v4634_v21, 0.0 }
0x14a2   : > { %2692 = vadd.xlane.f32.xlu0 %v2691_v1  ;;  %v5455_v1 = vrot.slane %v4102_v4, %v5020_v15 }
0x14b8   : > { %2748 = vrot.lane.b32.xlu0 %v5235_v22, %s4813_s3  ;;  %s4094_s3 = sshll.u32 %s4785_s30, 8 }
0x152b   : > { %v2693_v62 = vpop.xlane.xlu0 %2692 }
0x152c   : > { %4635 = vrcp.f32 %v2693_v62 }
0x152f   : > { %v2749_v59 = vpop.permute.xlu0 %2748 }
0x1530   : > { %v2754_v2 = vsel %vm1892_vm13, %v2749_v59, 0 }
0x1531   : > { %4352 = vmatpush3.bf16.msra.mxu1 %v2754_v2 }
0x1532   : > { %4363 = vmatprep.subr.bf16.mxu1 %v4795_v0 }
0x1539   : > { %v4636_v6 = vpop.eup %4635 }
0x153a   : > { %v2697_v9 = vmul.f32 %v4636_v6, %v4634_v21  ;;  %v3090_v6 = vsel %vm1013_vm1, %v3067_v60, 0 }
0x153c   : > { %v2699_v18 = vpack.c.bf16 %v2697_v9, %v2697_v9  ;;  %v3078_v9 = vld [vmem:[%s5795_s4] sm:$0x3] }
0x153e   : > { %4354 = vmatmul.mubr.msk.bf16.vlgmr.msra.gmra.mxu1 %vm1765_vm12, %v2699_v18  ;;  %v3079_v18 = vpack.c.bf16 %v3078_v9, %v3078_v9 }
0x153f   : > { %4367 = vmatprep.mubr.msk.bf16.mxu1 %vm4797_vm2, %v4795_v0 }
0x1557   : > { %v2742_v22 = vpop.f32.mrf.mxu0 }
0x1559   : > { %v4349_v10 = vpop.f32.mrf.mxu0 }
0x155a   : > { %v4542_v10 = vld [vmem:[%s5447_s1 + $0x10] sm:$0xff]  }
0x155b   : > { %v2745_v19 = vpop.f32.mrf.mxu0 }
0x155c   : > { %v4543_v19 = vld [vmem:[%s5435_s21 + $0x14] sm:$0xff]  }
0x155d   : > { %v4350_v8 = vpop.f32.mrf.mxu0 }
0x155e   : > { %v4544_v8 = vld [vmem:[%s5447_s1 + $0x8] sm:$0xff]  }
0x15fe   : > { %v2790_v20 = vpop.f32.mrf.mxu1 }
0x15ff   : > { %v2796_v23 = vpack.c.bf16 %v2790_v20, %v2742_v22  ;;  %v4541_v22 = vld [vmem:[%s5435_s21 + $0x1c] sm:$0xff]   ;;  %v2857_v20 = vld [vmem:[%s5435_s21 + $0x10] ss:$20 sps:$4 sm:$0xff]  }
0x1600   : > { %v4355_v17 = vpop.f32.mrf.mxu1 }
0x1601   : > { %4360 = vmatmul.mubr.msk.bf16.vlgmr.msra.gmra.mxu0 %vm1765_vm12, %v2796_v23  ;;  %v2908_v23 = vunpack.c.l.bf16 %v2857_v20  ;;  %v3068_v17 = vld [vmem:[%s5447_s1 + $0x4] ss:$36 sps:$4 sm:$0xff]  }
0x1602   : > { %v2793_v25 = vpop.f32.mrf.mxu1  ;;  %4375 = vmatprep.mubr.msk.bf16.mxu0 %vm4797_vm2, %v4795_v0  ;;  %4372 = vmatpush3.bf16.msra.mxu0 %v4541_v22  ;;  %v3080_v27 = vunpack.c.l.bf16 %v3068_v17 }
0x1603   : > { %4373 = vmatprep.subr.bf16.mxu0 %v4795_v0  ;;  %v2912_v25 = vrot.slane %v2908_v23, %v5020_v15 }
0x1604   : > { %v4356_v26 = vpop.f32.mrf.mxu1 }
0x1606   : > { %4374 = vmatpush3.bf16.msra.mxu0 %v4543_v19 }
0x1607   : > { %4385 = vmatprep.subr.bf16.mxu0 %v4795_v0 }
0x16c1   : > { %v2837_v33 = vpop.f32.mrf.mxu0 }
0x16c2   : > { %v2844_v34 = vadd.f32 %v2837_v33, %v5395_v49 }
0x16c3   : > { %v4361_v35 = vpop.f32.mrf.mxu0 }
0x16c4   : > { %v2851_v36 = vadd.f32 %v2850_v5, %v2844_v34  ;;  %v3084_v35 = vrot.slane %v3080_v27, %v5020_v15 }
0x16c5   : > { %v2840_v37 = vpop.f32.mrf.mxu0 }
0x16c6   : > { %v2845_v38 = vadd.f32 %v2840_v37, %v5399_v29  ;;  %v2865_v39 = vadd.f32 %v2851_v36, %v5220_v14 }
0x16c7   : > { %v4362_v40 = vpop.f32.mrf.mxu0 }
0x16c8   : > { %v2852_v41 = vadd.f32 %v2850_v5, %v2845_v38  ;;  %v2867_v42 = vsel %vm1646_vm11, %v2865_v39, 0.0  ;;  %v4545_v40 = vld [vmem:[%s5447_s1 + $0x20] sm:$0xff]  }
0x16c9   : > { %2868 = vadd.xlane.f32.xlu1 %v2867_v42 }
0x16ca   : > { %v2866_v43 = vadd.f32 %v2852_v41, %v5222_v24  ;;  %v4539_v24 = vld [vmem:[%s5435_s21 + $0x8] sm:$0xff]   ;;  %s5761_s21 = sshll.u32 %s4978_s26, 1 }
0x16cb   : > { %4364 = vmatpush3.bf16.msra.mxu1 %v4539_v24 }
0x16cc   : > { %v2870_v16 = vsel %vm1646_vm11, %v2866_v43, 0.0  ;;  %4365 = vmatprep.subr.bf16.mxu1 %v4795_v0 }
0x16cd   : > { %2871 = vadd.xlane.f32.xlu0 %v2870_v16 }
0x16cf   : > { %4366 = vmatpush3.bf16.msra.mxu1 %v4540_v56 }
0x16d0   : > { %4379 = vmatprep.subr.bf16.mxu1 %v4795_v0 }
0x1752   : > { %v2869_v45 = vpop.xlane.xlu1 %2868 }
0x1753   : > { %v2873_v47 = vmul.f32 0.03125, %v2869_v45 }
0x1755   : > { %v2875_v48 = vsub.f32 %v2865_v39, %v2873_v47  ;;  %v4546_v47 = vld [vmem:[%s5447_s1 + $0x18] sm:$0xff]   ;;  %s4429_s1 = smul.u32 36, %s4978_s26 }
0x1756   : > { %v2872_v49 = vpop.xlane.xlu0 %2871 }
0x1757   : > { %v2874_v50 = vmul.f32 0.03125, %v2872_v49  ;;  %v2877_v51 = vmul.f32 %v2875_v48, %v2875_v48  ;;  %s5509_s29 = scalar_lea.vmem %s5740_s13, %s4429_s1  ;;  %s5534_s1 = scalar_lea.vmem [#allocation6], %s5762_s7 }
0x1758   : > { %v3256_v22 = vld [vmem:[%s5509_s29 + $0x20] sm:$0xf]  ;;  %s5601_s7 = scalar_lea.hbm %s5742_s15, %s4094_s3 }
0x1759   : > { %v2876_v14 = vsub.f32 %v2866_v43, %v2874_v50  ;;  %v2879_v54 = vsel %vm1646_vm11, %v2877_v51, 0.0  ;;  %v4547_v51 = vld [vmem:[%s5509_s29 + $0x8] sm:$0xff]  }
0x175a   : > { %2880 = vadd.xlane.f32.xlu1 %v2879_v54  ;;  %v2972_v54 = vunpack.c.h.bf16 %v2857_v20 }
0x175b   : > { %v2878_v29 = vmul.f32 %v2876_v14, %v2876_v14 }
0x175d   : > { %v2882_v30 = vsel %vm1646_vm11, %v2878_v29, 0.0  ;;  %v2976_v29 = vrot.slane %v2972_v54, %v5020_v15 }
0x175e   : > { %2883 = vadd.xlane.f32.xlu0 %v2882_v30 }
0x17e3   : > { %v2881_v57 = vpop.xlane.xlu1 %2880 }
0x17e4   : > { %v2885_v61 = vmul.f32 0.03125, %v2881_v57 }
0x17e6   : > { %v2887_v52 = vadd.f32 1e-05, %v2885_v61 }
0x17e7   : > { %v2884_v63 = vpop.xlane.xlu0 %2883 }
0x17e8   : > { %4637 = vrsqrt.f32 %v2887_v52  ;;  %v2886_v55 = vmul.f32 0.03125, %v2884_v63  ;;  %v3245_v52 = vunpack.c.h.bf16 %v3068_v17 }
0x17ea   : > { %v2888_v28 = vadd.f32 1e-05, %v2886_v55 }
0x17ec   : > { %4639 = vrsqrt.f32 %v2888_v28 }
0x17f5   : > { %v4638_v32 = vpop.eup %4637 }
0x17f6   : > { %v2891_v46 = vmul.f32 %v4638_v32, %v2875_v48  ;;  %v3133_v48 = vld [vmem:[%s5796_s5] sm:$0x3] }
0x17f7   : > { %v3134_v50 = vpack.c.bf16 %v3133_v48, %v3133_v48 }
0x17f8   : > { %v2898_v21 = vmul.f32 %v5451_v7, %v2891_v46  ;;  %v3249_v46 = vrot.slane %v3245_v52, %v5020_v15 }
0x17f9   : > { %v4640_v13 = vpop.eup %4639 }
0x17fa   : > { %v2892_v53 = vmul.f32 %v4640_v13, %v2876_v14  ;;  %v5460_v62 = vadd.f32 %v5455_v1, %v2898_v21  ;;  %v4548_v14 = vld [vmem:[%s5509_s29] sm:$0xff]   ;;  %s5545_s29 = scalar_lea.vmem %s5741_s14, %s4428_s20 }
0x17fc   : > { %v2899_v58 = vmul.f32 %v5451_v7, %v2892_v53 }
0x17fe   : > { %v5463_v59 = vadd.f32 %v5455_v1, %v2899_v58 }
0x1800   : > { %v2907_v2 = vpack.c.bf16 %v5463_v59, %v5460_v62 }
0x1802   : > { %4368 = vmatmul.mubr.msk.bf16.vlgmr.msra.gmra.mxu1 %vm1646_vm11, %v2907_v2 }
0x1803   : > { %4380 = vmatpush3.bf16.msra.mxu1 %v3090_v6  ;;  %4381 = vmatprep.mubr.msk.bf16.mxu1 %vm4797_vm2, %v4795_v0 }
0x1804   : > { %4393 = vmatprep.subr.bf16.mxu1 %v4795_v0 }
0x180a   : > { %4382 = vmatmul.mubr.msk.bf16.vlgmr.msra.gmra.mxu1 %vm3085_vm14, %v3079_v18 }
0x180b   : > { %4397 = vmatprep.mubr.msk.bf16.mxu1 %vm4797_vm2, %v4795_v0  ;;  %4394 = vmatpush3.bf16.msra.mxu1 %v4542_v10  ;;  %v3258_v10 = vunpack.c.l.bf16 %v3256_v22 }
0x180c   : > { %4395 = vmatprep.subr.bf16.mxu1 %v4795_v0 }
0x180f   : > { %4396 = vmatpush3.bf16.msra.mxu1 %v4544_v8 }
0x1810   : > { %4409 = vmatprep.subr.bf16.mxu1 %v4795_v0 }
0x18c2   : > { %v2962_v26 = vpop.f32.mrf.mxu1 }
0x18c3   : > { %v2963_v5 = vadd.f32 %v2962_v26, %v2912_v25 }
0x18c4   : > { %v4369_v31 = vpop.f32.mrf.mxu1 }
0x18c5   : > { %v2969_v37 = vmax.f32 %v2963_v5, 0.0 }
0x18c6   : > { %v2965_v33 = vpop.f32.mrf.mxu1 }
0x18c7   : > { %v2966_v34 = vadd.f32 %v2965_v33, %v2912_v25 }
0x18c8   : > { %v4370_v36 = vpop.f32.mrf.mxu1 }
0x18c9   : > { %v2970_v38 = vmax.f32 %v2966_v34, 0.0 }
0x18ca   : > { %v3126_v39 = vpop.f32.mrf.mxu1 }
0x18cb   : > { %v2971_v41 = vpack.c.bf16 %v2970_v38, %v2969_v37  ;;  %v3127_v42 = vadd.f32 %v3126_v39, %v3084_v35 }
0x18cc   : > { %v4383_v43 = vpop.f32.mrf.mxu1 }
0x18cd   : > { %v3132_v16 = vpack.c.bf16 %v3127_v42, %v3127_v42  ;;  %4376 = vmatmul.mubr.msk.bf16.vlgmr.msra.gmra.mxu0 %vm1646_vm11, %v2971_v41 }
0x18ce   : > { %4386 = vmatpush3.bf16.msra.mxu0 %v4545_v40  ;;  %v3129_v45 = vpop.f32.mrf.mxu1  ;;  %4389 = vmatprep.mubr.msk.bf16.mxu0 %vm4797_vm2, %v4795_v0 }
0x18cf   : > { %4398 = vmatmul.mubr.msk.bf16.vlgmr.msra.gmra.mxu1 %vm1646_vm11, %v3132_v16  ;;  %4387 = vmatprep.subr.bf16.mxu0 %v4795_v0 }
0x18d0   : > { %v4384_v49 = vpop.f32.mrf.mxu1  ;;  %4413 = vmatprep.mubr.msk.bf16.mxu1 %vm4797_vm2, %v4795_v0 }
0x18d2   : > { %4388 = vmatpush3.bf16.msra.mxu0 %v4546_v47 }
0x18d3   : > { %4401 = vmatprep.subr.bf16.mxu0 %v4795_v0 }
0x18d5   : > { %4390 = vmatmul.mubr.msk.bf16.vlgmr.msra.gmra.mxu0 %vm1646_vm11, %v3134_v50  ;;  %v4549_v50 = vld [vmem:[%s5545_s29 + $0x1c] sm:$0xff]  }
0x18d6   : > { %4405 = vmatprep.mubr.msk.bf16.mxu0 %vm4797_vm2, %v4795_v0  ;;  %4402 = vmatpush3.bf16.msra.mxu0 %v4547_v51 }
0x18d7   : > { %4403 = vmatprep.subr.bf16.mxu0 %v4795_v0 }
0x18da   : > { %4404 = vmatpush3.bf16.msra.mxu0 %v4548_v14  ;;  %v4550_v14 = vld [vmem:[%s5545_s29 + $0x14] sm:$0xff]  }
0x18db   : > { %4417 = vmatprep.subr.bf16.mxu0 %v4795_v0 }
0x198d   : > { %v3026_v30 = vpop.f32.mrf.mxu0 }
0x198e   : > { %v3027_v24 = vadd.f32 %v3026_v30, %v2976_v29 }
0x198f   : > { %v4377_v56 = vpop.f32.mrf.mxu0  ;;  %v3239_v57 = vpop.f32.mrf.mxu1 }
0x1990   : > { %v3033_v61 = vadd.f32 %v3027_v24, %v5460_v62  ;;  %v4551_v24 = vld [vmem:[%s5545_s29 + $0x8] sm:$0xff]   ;;  %v4552_v56 = vld [vmem:[%s5545_s29] sm:$0xff]  }
0x1991   : > { %v3029_v63 = vpop.f32.mrf.mxu0  ;;  %v4399_v55 = vpop.f32.mrf.mxu1  ;;  %4410 = vmatpush3.bf16.msra.mxu1 %v4551_v24 }
0x1992   : > { %v3030_v28 = vadd.f32 %v3029_v63, %v2976_v29  ;;  %v3035_v44 = vsel %vm1646_vm11, %v3033_v61, 0.0  ;;  %4411 = vmatprep.subr.bf16.mxu1 %v4795_v0 }
0x1993   : > { %3036 = vadd.xlane.f32.xlu0 %v3035_v44  ;;  %v4378_v3 = vpop.f32.mrf.mxu0  ;;  %v3242_v32 = vpop.f32.mrf.mxu1 }
0x1994   : > { %v3034_v4 = vadd.f32 %v3030_v28, %v5463_v59  ;;  %v3262_v59 = vrot.slane %v3258_v10, %v5020_v15 }
0x1995   : > { %v3184_v13 = vpop.f32.mrf.mxu0  ;;  %v4400_v53 = vpop.f32.mrf.mxu1  ;;  %4412 = vmatpush3.bf16.msra.mxu1 %v4552_v56 }
0x1996   : > { %v3240_v21 = vadd.f32 %v3239_v57, %v3184_v13  ;;  %v3038_v58 = vsel %vm1646_vm11, %v3034_v4, 0.0 }
0x1997   : > { %3039 = vadd.xlane.f32.xlu0 %v3038_v58  ;;  %v4391_v60 = vpop.f32.mrf.mxu0 }
0x1998   : > { %v3250_v62 = vadd.f32 %v3249_v46, %v3240_v21  ;;  %v3347_v60 = vld [vmem:[%s5545_s29 + $0x10] sm:$0xf] }
0x1999   : > { %v3187_v2 = vpop.f32.mrf.mxu0 }
0x199a   : > { %v3251_v6 = vmax.f32 %v3250_v62, 0.0  ;;  %v4814_v62 = vmov 1966171168  }
0x199b   : > { %v4392_v9 = vpop.f32.mrf.mxu0  ;;  %v3482_v2 = vunpack.c.l.s4 %v4814_v62 }
0x199c   : > { %v3257_v18 = vpack.c.bf16 %v3251_v6, %v3251_v6  ;;  %v3355_v6 = vunpack.c.l.bf16 %v3347_v60  ;;  %v3352_v9 = vld [vmem:[%s5545_s29 + $0x24] sm:$0xff]  }
0x199e   : > { %4406 = vmatmul.mubr.msk.bf16.vlgmr.msra.gmra.mxu0 %vm1646_vm11, %v3257_v18  ;;  %v3419_v18 = vunpack.c.l.bf16 %v3352_v9 }
0x199f   : > { %4421 = vmatprep.mubr.msk.bf16.mxu0 %vm4797_vm2, %v4795_v0  ;;  %4418 = vmatpush3.bf16.msra.mxu0 %v4549_v50  ;;  %vm3548_vm2 = vcmask 58368  }
0x19a0   : > { %4419 = vmatprep.subr.bf16.mxu0 %v4795_v0 }
0x19a3   : > { %4420 = vmatpush3.bf16.msra.mxu0 %v4550_v14 }
0x1a1c   : > { %v3037_v26 = vpop.xlane.xlu0 %3036 }
0x1a1d   : > { %v3041_v27 = vmul.f32 0.03125, %v3037_v26 }
0x1a1f   : > { %v3043_v31 = vsub.f32 %v3033_v61, %v3041_v27 }
0x1a20   : > { %v3040_v41 = vpop.xlane.xlu0 %3039 }
0x1a21   : > { %v3045_v5 = vmul.f32 %v3043_v31, %v3043_v31  ;;  %v3042_v42 = vmul.f32 0.03125, %v3040_v41 }
0x1a23   : > { %v3047_v33 = vsel %vm1646_vm11, %v3045_v5, 0.0  ;;  %v3044_v43 = vsub.f32 %v3034_v4, %v3042_v42 }
0x1a25   : > { %v3046_v16 = vmul.f32 %v3044_v43, %v3044_v43 }
0x1a27   : > { %v3050_v45 = vsel %vm1646_vm11, %v3046_v16, 0.0 }
0x1a5e   : > { %v3312_v19 = vpop.f32.mrf.mxu0 }
0x1a5f   : > { %v3313_v8 = vadd.f32 %v3312_v19, %v3262_v59 }
0x1a60   : > { %v4407_v20 = vpop.f32.mrf.mxu0 }
0x1a61   : > { %4641 = vtanh.f32 %v3313_v8  ;;  %v4075_v34 = vmul.f32 -1.442695, %v3313_v8  ;;  %v3423_v8 = vrot.slane %v3419_v18, %v5020_v15 }
0x1a62   : > { %v3315_v23 = vpop.f32.mrf.mxu0 }
0x1a63   : > { %4643 = vpow2.f32 %v4075_v34 }
0x1a64   : > { %v4408_v17 = vpop.f32.mrf.mxu0 }
0x1a6e   : > { %v4642_v25 = vpop.eup %4641 }
0x1a6f   : > { %3326 = vrot.lane.b32.xlu1 %v4642_v25, %s5797_s25  ;;  %s5798_s25 = smov 32  }
0x1a70   : > { %v4644_v35 = vpop.eup %4643 }
0x1a71   : > { %v3321_v36 = vadd.f32 1.0, %v4644_v35 }
0x1a73   : > { %4645 = vrcp.f32 %v3321_v36 }
0x1a80   : > { %v4646_v37 = vpop.eup %4645 }
0x1a93   : > { %3048 = vadd.xlane.f32.xlu1 %v3047_v33 }
0x1ae1   : > { %v3327_v38 = vpop.permute.xlu1 %3326 }
0x1ae2   : > { %v3329_v39 = vmul.f32 %v4646_v37, %v3327_v38 }
0x1ae4   : > { %4647 = vtanh.f32 %v3329_v39  ;;  %3342 = vst.msk [vmem:[%s5534_s1] sm:$0x3] %vm3340_vm15, %v3329_v39 }
0x1af1   : > { %v4648_v40 = vpop.eup %4647 }
0x1af2   : > { %3332 = vrot.lane.b32.xlu0 %v4648_v40, %s5791_s22  ;;  %s3996_s22 = sshll.u32 %s5529_s0, 4 }
0x1af3   : > { %s5554_s20 = scalar_lea.vmem [#allocation2], %s3996_s22  ;;  %s898_s22 = scalar_lea.vmem %s5799_s6, %s5761_s21 }
0x1af4   : > { %s3594_s29 = sshll.u32 %s5554_s20, 4  ;;  %s4815_s6 = smov [#allocation2]   ;;  %s5603_s29 = int_to_ptr.vmem [resolvable:$true] %s3594_s29 }
0x1af5   : > { %s4661_s5 = scalar_lea.vmem %s5603_s29, 256 }
0x1af6   : > { %p4662_p12 = scmp.ne.s32.totalorder %s5603_s29, %s4661_s5 }
0x1af8   : > { %p4663_p13 = pnand %p4662_p12, %p4957_p4 }
0x1afa   : > { %p4664_p0 = pneg %p4663_p13 }
0x1b11   : > { %3051 = vadd.xlane.f32.xlu0 %v3050_v45  ;;  %v3535_v45 = vand.u32 127, %v1061_v11 }
0x1b1c   : > { %v3049_v47 = vpop.xlane.xlu1 %3048 }
0x1b1d   : > { %v3053_v48 = vmul.f32 0.03125, %v3049_v47 }
0x1b1f   : > { %v3055_v49 = vadd.f32 1e-05, %v3053_v48  ;;  %v3530_v48 = vld [vmem:[%s898_s22] sm:$0x3] }
0x1b20   : > { %vm3531_vm1 = vcmp.gt.f32.partialorder %v3530_v48, 0.5 }
0x1b21   : > { %4649 = vrsqrt.f32 %v3055_v49 }
0x1b2e   : > { %v4650_v51 = vpop.eup %4649 }
0x1b2f   : > { %v3059_v54 = vmul.f32 %v4650_v51, %v3043_v31 }
0x1b31   : > { %v3061_v29 = vmul.f32 %v3059_v54, %v5451_v7 }
0x1b33   : > { %v3063_v30 = vadd.f32 %v3061_v29, %v5455_v1 }
0x1b35   : > { %3065 = vst.msk [vmem:[%s5554_s20] sm:$0xff] %vm1646_vm11, %v3063_v30 }
0x1b64   : > { %v3333_v57 = vpop.permute.xlu0 %3332 }
0x1b65   : > { %v5560_v61 = vmul.f32 %v4646_v37, %v3333_v57  ;;  %v3517_v37 = vunpack.c.h.bf16 %v3352_v9 }
0x1b67   : > { %v3354_v52 = vpack.c.bf16 %v5560_v61, %v5560_v61  ;;  %v3521_v38 = vrot.slane %v3517_v37, %v5020_v15 }
0x1b69   : > { %3361 = vrot.lane.b32.xlu1 %v3354_v52, %s5798_s25 }
0x1b9a   : > { %v3052_v63 = vpop.xlane.xlu0 %3051 }
0x1b9b   : > { %v3054_v55 = vmul.f32 0.03125, %v3052_v63 }
0x1b9d   : > { %v3056_v28 = vadd.f32 1e-05, %v3054_v55 }
0x1b9f   : > { %4651 = vrsqrt.f32 %v3056_v28 }
0x1bac   : > { %v4652_v44 = vpop.eup %4651 }
0x1bad   : > { %v3060_v3 = vmul.f32 %v4652_v44, %v3044_v43 }
0x1baf   : > { %v3062_v32 = vmul.f32 %v3060_v3, %v5451_v7  ;;  %v3483_v7 = vunpack.c.0.s8 %v3482_v2 }
0x1bb1   : > { %v3064_v0 = vadd.f32 %v3062_v32, %v5455_v1  ;;  %v3359_v1 = vrot.slane %v3355_v6, %v5020_v15  ;;  %v3486_v22 = vsub.s32 %v3483_v7, %v5017_v12 }
0x1bb3   : > { %v3418_v46 = vpack.c.bf16 %v3064_v0, %v3063_v30  ;;  %3066 = vst.msk [vmem:[%s5554_s20 + $0x8] sm:$0xff] %vm1646_vm11, %v3064_v0 }
0x1bb5   : > { %4422 = vmatmul.mubr.msk.bf16.vlgmr.msra.gmra.mxu0 %vm1646_vm11, %v3418_v46 }
0x1bdb   : > { %v3362_v4 = vpop.permute.xlu1 %3361 }
0x1bdc   : > { %4414 = vmatmul.mubr.msk.bf16.vlgmr.msra.gmra.mxu1 %vm1646_vm11, %v3362_v4 }
0x1c75   : > { %v3473_v13 = vpop.f32.mrf.mxu0 }
0x1c76   : > { %v3474_v27 = vadd.f32 %v3473_v13, %v3423_v8 }
0x1c77   : > { %v4423_v53 = vpop.f32.mrf.mxu0 }
0x1c79   : > { %v3476_v21 = vpop.f32.mrf.mxu0 }
0x1c7a   : > { %v3477_v33 = vadd.f32 %v3476_v21, %v3423_v8 }
0x1c7b   : > { %v4424_v58 = vpop.f32.mrf.mxu0 }
0x1c9c   : > { %v3412_v10 = vpop.f32.mrf.mxu1 }
0x1c9d   : > { %v3413_v59 = vadd.f32 %v3412_v10, %v3359_v1 }
0x1c9e   : > { %v4415_v19 = vpop.f32.mrf.mxu1 }
0x1c9f   : > { %v3487_v20 = vrot.slane %v3413_v59, %v3486_v22 }
0x1ca0   : > { %v3415_v23 = vpop.f32.mrf.mxu1 }
0x1ca1   : > { %v3488_v17 = vcombine.high %v3487_v20, %v3487_v20  ;;  %v3495_v25 = vrot.slane %v3487_v20, %v3486_v22 }
0x1ca2   : > { %v4416_v26 = vpop.f32.mrf.mxu1 }
0x1ca3   : > { %v3502_v31 = vrot.slane %v3488_v17, %v3486_v22  ;;  %v3506_v5 = vrot.slane %v3495_v25, %v5020_v15 }
0x1ca5   : > { %v3510_v34 = vrot.slane %v3502_v31, %v5020_v15  ;;  %v3513_v35 = vadd.f32 %v3506_v5, %v3474_v27  ;;  %v3538_v15 = vsub.s32 %v3535_v45, %v5017_v12 }
0x1ca7   : > { %v3514_v36 = vadd.f32 %v3510_v34, %v3477_v33  ;;  %4653 = vtanh.f32 %v3513_v35 }
0x1ca9   : > { %4655 = vtanh.f32 %v3514_v36 }
0x1cb4   : > { %v4654_v39 = vpop.eup %4653 }
0x1cb5   : > { %v3522_v40 = vmul.f32 %v4654_v39, %v3521_v38 }
0x1cb6   : > { %v4656_v41 = vpop.eup %4655 }
0x1cb7   : > { %v3524_v42 = vsel %vm1646_vm11, %v3522_v40, 0.0  ;;  %v3523_v43 = vmul.f32 %v4656_v41, %v3521_v38 }
0x1cb8   : > { %3525 = vadd.xlane.f32.xlu0 %v3524_v42 }
0x1cb9   : > { %v3527_v16 = vsel %vm1646_vm11, %v3523_v43, 0.0 }
0x1cbc   : > { %3528 = vadd.xlane.f32.xlu0 %v3527_v16 }
0x1d41   : > { %v3526_v47 = vpop.xlane.xlu0 %3525 }
0x1d42   : > { %v3539_v50 = vrot.slane %v3526_v47, %v3538_v15 }
0x1d45   : > { %v3529_v49 = vpop.xlane.xlu0 %3528 }
0x1d46   : > { %v3543_v51 = vrot.slane %v3529_v49, %v3538_v15 }
0x1d48   : > { %v3545_v14 = vsel %vm3544_vm0, %v3543_v51, %v3539_v50 }
0x1d49   : > { %v3547_v11 = vsel %vm3531_vm1, -1e+30, %v3545_v14 }
0x1d4a   : > { %v3549_v54 = vsel %vm3548_vm2, %v3547_v11, -inf }
0x1d4b   : > { %3550 = vmax.xlane.f32.xlu1 %v3549_v54 }
0x1dd4   : > { %v3551_v29 = vpop.xlane.xlu1 %3550 }
0x1dd5   : > { %v3552_v30 = vsub.f32 %v3547_v11, %v3551_v29 }
0x1dd7   : > { %v3553_v24 = vmul.f32 1.442695, %v3552_v30 }
0x1dd9   : > { %4657 = vpow2.f32 %v3553_v24 }
0x1de6   : > { %v5590_v12 = vpop.eup %4657 }
0x1de7   : > { %v3555_v56 = vsel %vm3548_vm2, %v5590_v12, 0.0 }
0x1de8   : > { %3556 = vadd.xlane.f32.xlu0 %v3555_v56 }
0x1dfe   : > { %3337 = vrot.lane.b32.xlu0 %v5560_v61, %s5798_s25  ;;  %s4665_s25 = sshll.u32 %s4815_s6, 4  ;;  %s4666_s25 = int_to_ptr.vmem [resolvable:$false] %s4665_s25 }
0x1dff   : > { %s4667_s20 = scalar_lea.vmem %s4666_s25, 512  ;;  %p4668_p1 = scmp.lt.s32.totalorder %s5603_s29, %s4666_s25 }
0x1e00   : > { %p4669_p2 = scmp.lt.s32.totalorder %s4667_s20, %s4661_s5 }
0x1e02   : > { %p4670_p3 = por %p4669_p2, %p4668_p1 }
0x1e04   : > { %p4671_p5 = pnand %p4670_p3, %p4664_p0 }
0x1e06   : > { %4674 = shalt.err (!%p4671_p5)
}
0x1e07   : > { %s4675_s21 = scalar_lea.hbm %s5601_s7, 256  ;;  %s4679_s6 = scalar_lea.hbm %s5742_s15, 512 }
0x1e08   : > { %p4676_p6 = scmp.ne.s32.totalorder %s5601_s7, %s4675_s21  ;;  %p4680_p10 = scmp.lt.s32.totalorder %s5601_s7, %s5742_s15 }
0x1e09   : > { %p4681_p11 = scmp.lt.s32.totalorder %s4679_s6, %s4675_s21 }
0x1e0a   : > { %p4677_p7 = pnand %p4676_p6, %p4957_p4 }
0x1e0b   : > { %p4682_p12 = por %p4681_p11, %p4680_p10 }
0x1e0c   : > { %p4678_p9 = pneg %p4677_p7 }
0x1e0e   : > { %p4683_p13 = pnand %p4682_p12, %p4678_p9 }
0x1e10   : > { %4686 = shalt.err (!%p4683_p13)
}
0x1e11   : > { %s4816_s5 = smov 128   ;;  %s4817_s25 = smov 8  }
0x1e12   : > { %s5800_s20 = scalar_lea.sflag [#allocation3], %s5529_s0  ;;  %s5801_s3 = sadd.s32 4294967295, %s4793_s19  }
0x1e13   : > { %4430 = dma.vmem_to_hbm [thread:$0]  (%p4957_p4), %s5603_s29, 256, %s5601_s7, %s5800_s20, %s4816_s5, %s4816_s5, %s4817_s25  }
0x1e14   : > { %s5630_s4 = sand.u32 1, %s5801_s3   ;;  %s4087_s8 = sshll.u32 %s4785_s30, 5 }
0x1e15   : > { %s5802_s21 = sshll.u32 %s5529_s0, 1  ;;  %s3628_s9 = sshll.u32 %s5534_s1, 4  ;;  %s5648_s9 = int_to_ptr.vmem [resolvable:$true] %s3628_s9 }
0x1e16   : > { %s844_s22 = scalar_lea.vmem [#allocation4], %s5802_s21  ;;  %s5639_s12 = scalar_lea.hbm %s5744_s17, %s4087_s8 }
0x1e17   : > { %s3614_s6 = sshll.u32 %s844_s22, 4  ;;  %s5646_s30 = scalar_lea.hbm %s5745_s18, %s4087_s8  ;;  %s5641_s6 = int_to_ptr.vmem [resolvable:$true] %s3614_s6 }
0x1e18   : > { %s3574_s0 = scalar_lea.sflag [#allocation5], %s5630_s4  ;;  %s4687_s1 = scalar_lea.vmem %s5641_s6, 32 }
0x1e19   : > { %p4688_p0 = scmp.ne.s32.totalorder %s5641_s6, %s4687_s1  ;;  %s4818_s10 = smov [#allocation4]  }
0x1e1a   : > { %s4691_s11 = sshll.u32 %s4818_s10, 4  ;;  %s4692_s11 = int_to_ptr.vmem [resolvable:$false] %s4691_s11 }
0x1e1b   : > { %p4689_p1 = pnand %p4688_p0, %p4957_p4  ;;  %s4693_s5 = scalar_lea.vmem %s4692_s11, 64 }
0x1e1c   : > { %p4694_p3 = scmp.lt.s32.totalorder %s5641_s6, %s4692_s11  ;;  %p4695_p5 = scmp.lt.s32.totalorder %s4693_s5, %s4687_s1 }
0x1e1d   : > { %p4690_p2 = pneg %p4689_p1 }
0x1e1e   : > { %p4696_p6 = por %p4695_p5, %p4694_p3 }
0x1e20   : > { %p4697_p7 = pnand %p4696_p6, %p4690_p2 }
0x1e71   : > { %v3557_v57 = vpop.xlane.xlu0 %3556 }
0x1e72   : > { %4659 = vrcp.f32 %v3557_v57 }
0x1e75   : > { %v3338_v61 = vpop.permute.xlu0 %3337 }
0x1e76   : > { %3341 = vst.msk [vmem:[%s844_s22] sm:$0x3] %vm3340_vm15, %v3338_v61 }
0x1e77   : > { %4700 = shalt.err (!%p4697_p7)
}
0x1e78   : > { %s4701_s25 = scalar_lea.hbm %s5639_s12, 32  ;;  %s4705_s8 = scalar_lea.hbm %s5744_s17, 64 }
0x1e79   : > { %p4702_p9 = scmp.ne.s32.totalorder %s5639_s12, %s4701_s25  ;;  %p4706_p12 = scmp.lt.s32.totalorder %s5639_s12, %s5744_s17 }
0x1e7a   : > { %p4707_p13 = scmp.lt.s32.totalorder %s4705_s8, %s4701_s25 }
0x1e7b   : > { %p4703_p10 = pnand %p4702_p9, %p4957_p4 }
0x1e7c   : > { %p4708_p0 = por %p4707_p13, %p4706_p12 }
0x1e7d   : > { %p4704_p11 = pneg %p4703_p10 }
0x1e7f   : > { %p4709_p1 = pnand %p4708_p0, %p4704_p11 }
0x1e81   : > { %4712 = shalt.err (!%p4709_p1)
}
0x1e82   : > { %4431 = dma.vmem_to_hbm [thread:$0]  (%p4957_p4), %s5641_s6, 32, %s5639_s12, %s3574_s0  }
0x1e83   : > { %s4713_s7 = scalar_lea.vmem %s5648_s9, 32  ;;  %s4819_s29 = smov [#allocation6]  }
0x1e84   : > { %p4714_p2 = scmp.ne.s32.totalorder %s5648_s9, %s4713_s7  ;;  %s4717_s1 = sshll.u32 %s4819_s29, 4  ;;  %s4718_s1 = int_to_ptr.vmem [resolvable:$false] %s4717_s1 }
0x1e85   : > { %s4719_s10 = scalar_lea.vmem %s4718_s1, 64  ;;  %p4720_p6 = scmp.lt.s32.totalorder %s5648_s9, %s4718_s1 }
0x1e86   : > { %p4715_p3 = pnand %p4714_p2, %p4957_p4  ;;  %p4721_p7 = scmp.lt.s32.totalorder %s4719_s10, %s4713_s7 }
0x1e88   : > { %p4716_p5 = pneg %p4715_p3  ;;  %p4722_p9 = por %p4721_p7, %p4720_p6 }
0x1e8a   : > { %p4723_p10 = pnand %p4722_p9, %p4716_p5 }
0x1e8c   : > { %4726 = shalt.err (!%p4723_p10)
}
0x1e8d   : > { %s4727_s11 = scalar_lea.hbm %s5646_s30, 32  ;;  %s4731_s5 = scalar_lea.hbm %s5745_s18, 64 }
0x1e8e   : > { %p4728_p11 = scmp.ne.s32.totalorder %s5646_s30, %s4727_s11  ;;  %p4732_p0 = scmp.lt.s32.totalorder %s5646_s30, %s5745_s18 }
0x1e8f   : > { %p4733_p1 = scmp.lt.s32.totalorder %s4731_s5, %s4727_s11 }
0x1e90   : > { %p4729_p12 = pnand %p4728_p11, %p4957_p4 }
0x1e91   : > { %p4734_p2 = por %p4733_p1, %p4732_p0 }
0x1e92   : > { %p4730_p13 = pneg %p4729_p12 }
0x1e94   : > { %p4735_p3 = pnand %p4734_p2, %p4730_p13 }
0x1e96   : > { %4738 = shalt.err (!%p4735_p3)
}
0x1e97   : > { %4432 = dma.vmem_to_hbm [thread:$0]  (%p4957_p4), %s5648_s9, 32, %s5646_s30, %s3574_s0   ;;  %v4660_v52 = vpop.eup %4659 }
0x1e98   : > { %s5803_s3 = sshll.u32 %s4978_s26, 1  ;;  %v3559_v63 = vmul.f32 %v4660_v52, %v5590_v12 }
0x1e99   : > { %s946_s22 = scalar_lea.vmem %s5743_s16, %s5803_s3 }
0x1e9a   : > { %3560 = vst.msk [vmem:[%s946_s22] sm:$0x3] %vm3548_vm2, %v3559_v63 }
0x1e9b PF: > { %p4446_p5 = scmp.ge.s32.totalorder %s4793_s19, 2  ;;  %s3640_s2 = sand.u32 1, %s4773_s27  }
0x1e9c   : > { %s3641_s9 = scalar_lea.sflag [#allocation3], %s3640_s2 }
0x1e9d   : > { %p4437_p6 = pnand %p4446_p5, %p4966_p8 }
0x1e9f   : > { %p4438_p7 = pneg %p4437_p6 }
0x1ea1   : > { %4764 = dma.done.wait (%p4438_p7), %s3641_s9, 256  }
0x1ea2   : > { %4766 = vsyncadd (%p4438_p7), %s3641_s9, 4294967040  ;;  %s5804_s26 = sadd.s32 4294967294, %s4793_s19  }
0x1ea3   : > { %s3659_s4 = sand.u32 1, %s5804_s26  }
0x1ea4   : > { %s3660_s30 = scalar_lea.sflag [#allocation5], %s3659_s4 }
0x1ea5   : > { %4768 = dma.done.wait (%p4438_p7), %s3660_s30, 64  }
0x1ea6   : > { %4770 = vsyncadd (%p4438_p7), %s3660_s30, 4294967232  ;;  %s35_s19 = sadd.s32 1, %s4793_s19   ;;  %s5805_s0 = sld [smem:[#allocation9_spill]] }
0x1ea7   : > { %p32_p4 = scmp.ge.s32.totalorder %s35_s19, 4   ;;  %s5806_s29 = sld [smem:[#allocation12_spill]] }
0x1ea8   : > { %s5807_s30 = sld [smem:[#allocation10_spill]]  ;;  %s5809_s27 = smov %s4777_s28 }
0x1ea9   : > { %s5808_s7 = sld [smem:[#allocation11_spill]] }
0x1eab   :  { %34 = sbr.rel (!%p32_p4) target bundleno = 20 (0x14), region = 201 }
0x1eac   : > { %s5810_s28 = smov %s5805_s0 }
0x1eaf   : > { %s5811_s0 = smov %s5808_s7 }
0x1eb0   :  { %3674 = vsyncpa [#allocation3], 1 }
0x1eb1   :  { %3676 = vsyncpa [#allocation3 + $0x1], 1 }
0x1eb2   :  { %3677 = vsyncpa [#allocation5], 1 }
0x1eb3   :  { %3679 = vsyncpa [#allocation5 + $0x1], 1 }

</bundles_post_ra>
